<compile_context>
chip_gen: v5e
topology: v5e:2x2
jax: 0.10.0
libtpu: 0.0.40
codegen_flags: <defaults>
</compile_context>

<pallas_src>
import functools
import math

import jax
import jax.numpy as jnp
import numpy as np
from jax.experimental import pallas as pl
from jax.experimental.pallas import tpu as pltpu

L = 30                 # sequence length implied by fc1 (100 channels * 30 = 3000)
C1, C2, C3 = 200, 100, 100
F1 = 200               # fc1 output features
MAX_BT = 128           # max samples per grid step (multiple of 8)


def _round_up(x, m):
    return ((x + m - 1) // m) * m


# ----------------------------- Pallas kernel ------------------------------- #

def _fused_kernel(x_ref, w1_ref, b1_ref, w2_ref, b2_ref, w3_ref, b3_ref,
                  fw1_ref, fb1_ref, fw2_ref, fb2_ref, out_ref,
                  s1_ref, s2_ref, *, bt):
    """Fused conv1..3 + ReLU + (flatten) + fc1 + ReLU + fc2 for BT samples.

    Activations are a stacked 2D matrix with row r = l*BT + b and channels on
    the lane axis, so every conv is a plain MXU matmul.  conv1's taps are
    pre-fused along K by the wrapper; conv2/conv3 taps come from sublane-offset
    views of a zero-bordered VMEM scratch (no shifted copies).
    """
    rows = L * bt
    k3 = x_ref.shape[-1]                                   # 3 * Cin
    x = x_ref[...].reshape(rows, k3)                       # (L,BT,3Cin) -> (L*BT,3Cin)

    # conv1: one K=3*Cin matmul (taps fused along K in the wrapper / prepare_params).
    y1 = jnp.maximum(
        jnp.dot(x, w1_ref[...], preferred_element_type=jnp.float32) + b1_ref[...],
        0.0)                                               # (L*BT, C1)

    # conv2: zero-bordered scratch gives the padding=1 zeros for the l-1 / l+1 taps.
    s1_ref[pl.ds(0, bt), :] = jnp.zeros((bt, C1), jnp.float32)
    s1_ref[pl.ds(bt + rows, bt), :] = jnp.zeros((bt, C1), jnp.float32)
    s1_ref[pl.ds(bt, rows), :] = y1
    acc2 = (jnp.dot(s1_ref[pl.ds(0, rows), :], w2_ref[0],
                    preferred_element_type=jnp.float32)        # x[l-1] tap
            + jnp.dot(y1, w2_ref[1], preferred_element_type=jnp.float32)
            + jnp.dot(s1_ref[pl.ds(2 * bt, rows), :], w2_ref[2],
                      preferred_element_type=jnp.float32))     # x[l+1] tap
    y2 = jnp.maximum(acc2 + b2_ref[...], 0.0)              # (L*BT, C2)

    # conv3: same scheme.
    s2_ref[pl.ds(0, bt), :] = jnp.zeros((bt, C2), jnp.float32)
    s2_ref[pl.ds(bt + rows, bt), :] = jnp.zeros((bt, C2), jnp.float32)
    s2_ref[pl.ds(bt, rows), :] = y2
    acc3 = (jnp.dot(s2_ref[pl.ds(0, rows), :], w3_ref[0],
                    preferred_element_type=jnp.float32)
            + jnp.dot(y2, w3_ref[1], preferred_element_type=jnp.float32)
            + jnp.dot(s2_ref[pl.ds(2 * bt, rows), :], w3_ref[2],
                      preferred_element_type=jnp.float32))
    y3 = jnp.maximum(acc3 + b3_ref[...], 0.0)              # (L*BT, C3)

    # fc1: accumulate over L directly into a (BT, F1) f32 accumulator (no
    # (L,BT,F1) intermediate, no axis-0 VPU reduce).  The channel-major Flatten
    # (feature = c*L + l) is folded into fw1's (L, C3, F1) layout.
    # TODO(synk): training-mode dropout (random masking) not implemented (eval = identity).
    acc = jnp.zeros((bt, F1), jnp.float32)
    for l in range(L):
        acc = acc + jnp.dot(y3[l * bt:(l + 1) * bt, :], fw1_ref[l],
                            preferred_element_type=jnp.float32)
    h = jnp.maximum(acc + fb1_ref[...], 0.0)               # (BT, F1)

    # fc2 as a single (1,F1) x (BT,F1)^T contraction -> lane-dense (1, BT) row.
    row = jax.lax.dot_general(
        fw2_ref[...], h,
        dimension_numbers=(((1,), (1,)), ((), ())),
        preferred_element_type=jnp.float32) + fb2_ref[...]     # (1, BT)
    out_ref[...] = row.reshape(1, 1, bt)


# ---------------------- one-time parameter preparation ---------------------- #

def prepare_params(params):
    """Hoisted layout glue (PyTorch layout -> kernel layout).  Call ONCE."""
    (w1, b1, w2, b2, w3, b3, fw1, fb1, fw2, fb2) = params
    cin = w1.shape[1]

    # conv1: fuse the 3 taps along K -> (3*Cin, C1); row index k*Cin + c matches
    # the wrapper's [x[l-1] | x[l] | x[l+1]] lane concat.
    w1k = jnp.transpose(w1, (2, 1, 0)).reshape(3 * cin, C1)

    def conv_w(w):                                         # (Cout, Cin, 3) -> (3, Cin, Cout)
        return jnp.transpose(w, (2, 1, 0))

    # fw1[o, c*L + l] -> fw1_r[l, c, o]
    fw1_r = jnp.transpose(fw1.reshape(F1, C3, L), (2, 1, 0))     # (L, C3, F1)
    return (w1k, b1.reshape(1, C1),
            conv_w(w2), b2.reshape(1, C2),
            conv_w(w3), b3.reshape(1, C3),
            fw1_r, fb1.reshape(1, F1),
            fw2.reshape(1, F1), fb2.reshape(1, 1))


# --------------------------------- wrapper ---------------------------------- #

@jax.jit
def cnn_3conv_forward(x, prepared):
    """x: (B, C_in, 30) float32.  `prepared` = prepare_params(pytorch_params).
    Returns (B,) float32 (dropout = identity / inference mode)."""
    (w1k, b1k, w2k, b2k, w3k, b3k, fw1r, fb1k, fw2k, fb2k) = prepared
    B, cin, Lx = x.shape
    assert Lx == L, f"sequence length must be {L} (fc1 expects {C3 * L} features)"

    bt = min(MAX_BT, _round_up(B, 8))
    b_pad = _round_up(B, bt)
    # Prefer >= 2 grid steps so the "parallel" batch axis can shard across the
    # 2 TensorCores on v7x (no-op cost on single-TC chips, tiny batches keep bt=8).
    if b_pad // bt < 2 and bt > 8:
        bt = max(8, _round_up(bt // 2, 8))
        b_pad = _round_up(B, bt)
    nblk = b_pad // bt

    # Per-call input glue only: pad batch to a BT multiple, go to (L, B_pad, Cin)
    # (row r = l*BT + b inside each block), and build conv1's three taps on lanes.
    xp = jnp.pad(x, ((0, b_pad - B), (0, 0), (0, 0)))
    xl = jnp.transpose(xp, (2, 0, 1))                      # (L, B_pad, Cin)
    z = jnp.zeros((1, b_pad, cin), xl.dtype)
    x_taps = jnp.concatenate(
        [jnp.concatenate([z, xl[:-1]], axis=0),            # x[l-1] (0 at l == 0)
         xl,                                               # x[l]
         jnp.concatenate([xl[1:], z], axis=0)],            # x[l+1] (0 at l == L-1)
        axis=-1)                                           # (L, B_pad, 3*Cin)

    flops = (2 * b_pad * L * (3 * cin * C1 + 3 * C1 * C2 + 3 * C2 * C3 + C3 * F1)
             + 2 * b_pad * F1)
    bytes_accessed = 4 * (x_taps.size + w1k.size + w2k.size + w3k.size + fw1r.size
                          + fw2k.size + C1 + C2 + C3 + F1 + 1 + b_pad)

    const2 = lambda i: (0, 0)
    const3 = lambda i: (0, 0, 0)

    out = pl.pallas_call(
        functools.partial(_fused_kernel, bt=bt),
        out_shape=jax.ShapeDtypeStruct((nblk, 1, bt), jnp.float32),
        grid=(nblk,),
        in_specs=[
            pl.BlockSpec((L, bt, 3 * cin), lambda i: (0, i, 0)),   # input batch block (taps fused)
            pl.BlockSpec((3 * cin, C1), const2),                   # conv1 weight, taps along K
            pl.BlockSpec((1, C1), const2),
            pl.BlockSpec((3, C1, C2), const3),                     # conv2 weight (tap, Cin, Cout)
            pl.BlockSpec((1, C2), const2),
            pl.BlockSpec((3, C2, C3), const3),                     # conv3 weight
            pl.BlockSpec((1, C3), const2),
            pl.BlockSpec((L, C3, F1), const3),                     # fc1 weight, flatten folded in
            pl.BlockSpec((1, F1), const2),
            pl.BlockSpec((1, F1), const2),                         # fc2 weight as a lane row
            pl.BlockSpec((1, 1), const2),
        ],
        out_specs=pl.BlockSpec((1, 1, bt), lambda i: (i, 0, 0)),   # lane-dense output row
        scratch_shapes=[
            pltpu.VMEM(((L + 2) * bt, C1), jnp.float32),           # zero-bordered conv2 input
            pltpu.VMEM(((L + 2) * bt, C2), jnp.float32),           # zero-bordered conv3 input
        ],
        compiler_params=pltpu.CompilerParams(
            dimension_semantics=("parallel",),                     # v7x: shard batch over 2 TCs
            vmem_limit_bytes=48 * 1024 * 1024),
        cost_estimate=pl.CostEstimate(
            flops=flops, transcendentals=0, bytes_accessed=bytes_accessed),
    )(x_taps, w1k, b1k, w2k, b2k, w3k, b3k, fw1r, fb1k, fw2k, fb2k)

    return out.reshape(b_pad)[:B]                                  # x.view(size)


# --------------------------- pure-JAX reference ----------------------------- #

def _ref_forward(x, params):
    (w1, b1, w2, b2, w3, b3, fw1, fb1, fw2, fb2) = params

    def conv1d(inp, w, b):
        y = jax.lax.conv_general_dilated(
            inp, w, window_strides=(1,), padding=((1, 1),),
            dimension_numbers=("NCH", "OIH", "NCH"))
        return y + b[None, :, None]

    y = jax.nn.relu(conv1d(x, w1, b1))
    y = jax.nn.relu(conv1d(y, w2, b2))
    y = jax.nn.relu(conv1d(y, w3, b3))
    f = y.reshape(x.shape[0], -1)
    h = jax.nn.relu(f @ fw1.T + fb1)
    return (h @ fw2.T + fb2).reshape(x.shape[0])


# --------------------------------- main ------------------------------------ #

if __name__ == "__main__":
    B, Cin = 2, 4
    key = jax.random.PRNGKey(0)
    ks = jax.random.split(key, 11)

    def init(k, shape, fan_in):
        bound = 1.0 / math.sqrt(fan_in)
        return jax.random.uniform(k, shape, jnp.float32, -bound, bound)

    # Parameters in PyTorch layout (deterministic, kaiming-uniform-ish).
    w1 = init(ks[0], (C1, Cin, 3), Cin * 3); b1 = init(ks[1], (C1,), Cin * 3)
    w2 = init(ks[2], (C2, C1, 3), C1 * 3);   b2 = init(ks[3], (C2,), C1 * 3)
    w3 = init(ks[4], (C3, C2, 3), C2 * 3);   b3 = init(ks[5], (C3,), C2 * 3)
    fw1 = init(ks[6], (F1, C3 * L), C3 * L); fb1 = init(ks[7], (F1,), C3 * L)
    fw2 = init(ks[8], (1, F1), F1);          fb2 = init(ks[9], (1,), F1)
    params = (w1, b1, w2, b2, w3, b3, fw1, fb1, fw2, fb2)

    x = jax.random.normal(ks[10], (B, Cin, L), jnp.float32)

    prepared = prepare_params(params)          # one-time layout glue, reused per forward
    out = jax.block_until_ready(cnn_3conv_forward(x, prepared))
    ref = jax.block_until_ready(_ref_forward(x, params))

    assert out.shape == (B,)
    np.testing.assert_allclose(np.asarray(out), np.asarray(ref), rtol=1e-3, atol=1e-3)
    print("KERNEL_OK")
</pallas_src>

<mosaic_0001>
module attributes {stable_mosaic.version = 11 : i64} {
  func.func @_fused_kernel(%arg0: i32, %arg1: memref<30x8x12xf32, #tpu.memory_space<vmem>>, %arg2: memref<12x200xf32, #tpu.memory_space<vmem>>, %arg3: memref<1x200xf32, #tpu.memory_space<vmem>>, %arg4: memref<3x200x100xf32, #tpu.memory_space<vmem>>, %arg5: memref<1x100xf32, #tpu.memory_space<vmem>>, %arg6: memref<3x100x100xf32, #tpu.memory_space<vmem>>, %arg7: memref<1x100xf32, #tpu.memory_space<vmem>>, %arg8: memref<30x100x200xf32, #tpu.memory_space<vmem>>, %arg9: memref<1x200xf32, #tpu.memory_space<vmem>>, %arg10: memref<1x200xf32, #tpu.memory_space<vmem>>, %arg11: memref<1x1xf32, #tpu.memory_space<vmem>>, %arg12: memref<1x1x8xf32, #tpu.memory_space<vmem>>, %arg13: memref<256x200xf32, #tpu.memory_space<vmem>>, %arg14: memref<256x100xf32, #tpu.memory_space<vmem>>) attributes {dimension_semantics = [#tpu.dimension_semantics<parallel>], iteration_bounds = array<i64: 1>, scalar_prefetch = 0 : i64, scratch_operands = 2 : i64, tpu.core_type = #tpu.core_type<tc>, window_params = [{transform_indices = @transform_0, window_bounds = array<i64: 30, 8, 12>}, {pipeline_mode = #tpu.pipeline_mode<synchronous>, transform_indices = @transform_1, window_bounds = array<i64: 12, 200>}, {pipeline_mode = #tpu.pipeline_mode<synchronous>, transform_indices = @transform_2, window_bounds = array<i64: 1, 200>}, {pipeline_mode = #tpu.pipeline_mode<synchronous>, transform_indices = @transform_3, window_bounds = array<i64: 3, 200, 100>}, {pipeline_mode = #tpu.pipeline_mode<synchronous>, transform_indices = @transform_4, window_bounds = array<i64: 1, 100>}, {pipeline_mode = #tpu.pipeline_mode<synchronous>, transform_indices = @transform_5, window_bounds = array<i64: 3, 100, 100>}, {pipeline_mode = #tpu.pipeline_mode<synchronous>, transform_indices = @transform_6, window_bounds = array<i64: 1, 100>}, {pipeline_mode = #tpu.pipeline_mode<synchronous>, transform_indices = @transform_7, window_bounds = array<i64: 30, 100, 200>}, {pipeline_mode = #tpu.pipeline_mode<synchronous>, transform_indices = @transform_8, window_bounds = array<i64: 1, 200>}, {pipeline_mode = #tpu.pipeline_mode<synchronous>, transform_indices = @transform_9, window_bounds = array<i64: 1, 200>}, {pipeline_mode = #tpu.pipeline_mode<synchronous>, transform_indices = @transform_10, window_bounds = array<i64: 1, 1>}, {transform_indices = @transform_11, window_bounds = array<i64: 1, 1, 8>}]} {
    %c0 = arith.constant 0 : index
    %c0_0 = arith.constant 0 : index
    %c0_1 = arith.constant 0 : index
    %0 = vector.load %arg1[%c0, %c0_0, %c0_1] : memref<30x8x12xf32, #tpu.memory_space<vmem>>, vector<30x8x12xf32>
    %1 = vector.shape_cast %0 : vector<30x8x12xf32> to vector<240x12xf32>
    %c0_2 = arith.constant 0 : index
    %c0_3 = arith.constant 0 : index
    %2 = vector.load %arg2[%c0_2, %c0_3] : memref<12x200xf32, #tpu.memory_space<vmem>>, vector<12x200xf32>
    %cst = arith.constant dense<0.000000e+00> : vector<240x200xf32>
    %3 = tpu.matmul %1, %2, %cst {dimension_numbers = #tpu.dot_dimension_numbers<[1], [0], [0], [1], [0, 0, 1, 1], [], []>} : vector<240x12xf32>, vector<12x200xf32>, vector<240x200xf32> -> vector<240x200xf32>
    %c0_4 = arith.constant 0 : index
    %c0_5 = arith.constant 0 : index
    %4 = vector.load %arg3[%c0_4, %c0_5] : memref<1x200xf32, #tpu.memory_space<vmem>>, vector<1x200xf32>
    %5 = vector.broadcast %4 : vector<1x200xf32> to vector<240x200xf32>
    %6 = arith.addf %3, %5 : vector<240x200xf32>
    %cst_6 = arith.constant 0.000000e+00 : f32
    %7 = vector.broadcast %cst_6 : f32 to vector<240x200xf32>
    %8 = arith.maximumf %6, %7 : vector<240x200xf32>
    %cst_7 = arith.constant 0.000000e+00 : f32
    %9 = vector.broadcast %cst_7 : f32 to vector<8x200xf32>
    %c0_8 = arith.constant 0 : index
    %c0_9 = arith.constant 0 : index
    %10 = vector.load %arg13[%c0_8, %c0_9] : memref<256x200xf32, #tpu.memory_space<vmem>>, vector<8x200xf32>
    tpu.vector_store %arg13[%c0_8, %c0_9], %9 {strides = array<i32>} : memref<256x200xf32, #tpu.memory_space<vmem>>, vector<8x200xf32>,
    %cst_10 = arith.constant 0.000000e+00 : f32
    %11 = vector.broadcast %cst_10 : f32 to vector<8x200xf32>
    %c248 = arith.constant 248 : index
    %c0_11 = arith.constant 0 : index
    %12 = vector.load %arg13[%c248, %c0_11] : memref<256x200xf32, #tpu.memory_space<vmem>>, vector<8x200xf32>
    tpu.vector_store %arg13[%c248, %c0_11], %11 {strides = array<i32>} : memref<256x200xf32, #tpu.memory_space<vmem>>, vector<8x200xf32>,
    %c8 = arith.constant 8 : index
    %c0_12 = arith.constant 0 : index
    %13 = vector.load %arg13[%c8, %c0_12] : memref<256x200xf32, #tpu.memory_space<vmem>>, vector<240x200xf32>
    tpu.vector_store %arg13[%c8, %c0_12], %8 {strides = array<i32>} : memref<256x200xf32, #tpu.memory_space<vmem>>, vector<240x200xf32>,
    %c0_13 = arith.constant 0 : index
    %c0_14 = arith.constant 0 : index
    %14 = vector.load %arg13[%c0_13, %c0_14] : memref<256x200xf32, #tpu.memory_space<vmem>>, vector<240x200xf32>
    %c0_15 = arith.constant 0 : index
    %c0_16 = arith.constant 0 : index
    %c0_17 = arith.constant 0 : index
    %15 = vector.load %arg4[%c0_15, %c0_16, %c0_17] : memref<3x200x100xf32, #tpu.memory_space<vmem>>, vector<1x200x100xf32>
    %16 = vector.shape_cast %15 : vector<1x200x100xf32> to vector<200x100xf32>
    %cst_18 = arith.constant dense<0.000000e+00> : vector<240x100xf32>
    %17 = tpu.matmul %14, %16, %cst_18 {dimension_numbers = #tpu.dot_dimension_numbers<[1], [0], [0], [1], [0, 0, 1, 1], [], []>} : vector<240x200xf32>, vector<200x100xf32>, vector<240x100xf32> -> vector<240x100xf32>
    %c1 = arith.constant 1 : index
    %c0_19 = arith.constant 0 : index
    %c0_20 = arith.constant 0 : index
    %18 = vector.load %arg4[%c1, %c0_19, %c0_20] : memref<3x200x100xf32, #tpu.memory_space<vmem>>, vector<1x200x100xf32>
    %19 = vector.shape_cast %18 : vector<1x200x100xf32> to vector<200x100xf32>
    %cst_21 = arith.constant dense<0.000000e+00> : vector<240x100xf32>
    %20 = tpu.matmul %8, %19, %cst_21 {dimension_numbers = #tpu.dot_dimension_numbers<[1], [0], [0], [1], [0, 0, 1, 1], [], []>} : vector<240x200xf32>, vector<200x100xf32>, vector<240x100xf32> -> vector<240x100xf32>
    %21 = arith.addf %17, %20 : vector<240x100xf32>
    %c16 = arith.constant 16 : index
    %c0_22 = arith.constant 0 : index
    %22 = vector.load %arg13[%c16, %c0_22] : memref<256x200xf32, #tpu.memory_space<vmem>>, vector<240x200xf32>
    %c2 = arith.constant 2 : index
    %c0_23 = arith.constant 0 : index
    %c0_24 = arith.constant 0 : index
    %23 = vector.load %arg4[%c2, %c0_23, %c0_24] : memref<3x200x100xf32, #tpu.memory_space<vmem>>, vector<1x200x100xf32>
    %24 = vector.shape_cast %23 : vector<1x200x100xf32> to vector<200x100xf32>
    %cst_25 = arith.constant dense<0.000000e+00> : vector<240x100xf32>
    %25 = tpu.matmul %22, %24, %cst_25 {dimension_numbers = #tpu.dot_dimension_numbers<[1], [0], [0], [1], [0, 0, 1, 1], [], []>} : vector<240x200xf32>, vector<200x100xf32>, vector<240x100xf32> -> vector<240x100xf32>
    %26 = arith.addf %21, %25 : vector<240x100xf32>
    %c0_26 = arith.constant 0 : index
    %c0_27 = arith.constant 0 : index
    %27 = vector.load %arg5[%c0_26, %c0_27] : memref<1x100xf32, #tpu.memory_space<vmem>>, vector<1x100xf32>
    %28 = vector.broadcast %27 : vector<1x100xf32> to vector<240x100xf32>
    %29 = arith.addf %26, %28 : vector<240x100xf32>
    %cst_28 = arith.constant 0.000000e+00 : f32
    %30 = vector.broadcast %cst_28 : f32 to vector<240x100xf32>
    %31 = arith.maximumf %29, %30 : vector<240x100xf32>
    %cst_29 = arith.constant 0.000000e+00 : f32
    %32 = vector.broadcast %cst_29 : f32 to vector<8x100xf32>
    %c0_30 = arith.constant 0 : index
    %c0_31 = arith.constant 0 : index
    %33 = vector.load %arg14[%c0_30, %c0_31] : memref<256x100xf32, #tpu.memory_space<vmem>>, vector<8x100xf32>
    tpu.vector_store %arg14[%c0_30, %c0_31], %32 {strides = array<i32>} : memref<256x100xf32, #tpu.memory_space<vmem>>, vector<8x100xf32>,
    %cst_32 = arith.constant 0.000000e+00 : f32
    %34 = vector.broadcast %cst_32 : f32 to vector<8x100xf32>
    %c248_33 = arith.constant 248 : index
    %c0_34 = arith.constant 0 : index
    %35 = vector.load %arg14[%c248_33, %c0_34] : memref<256x100xf32, #tpu.memory_space<vmem>>, vector<8x100xf32>
    tpu.vector_store %arg14[%c248_33, %c0_34], %34 {strides = array<i32>} : memref<256x100xf32, #tpu.memory_space<vmem>>, vector<8x100xf32>,
    %c8_35 = arith.constant 8 : index
    %c0_36 = arith.constant 0 : index
    %36 = vector.load %arg14[%c8_35, %c0_36] : memref<256x100xf32, #tpu.memory_space<vmem>>, vector<240x100xf32>
    tpu.vector_store %arg14[%c8_35, %c0_36], %31 {strides = array<i32>} : memref<256x100xf32, #tpu.memory_space<vmem>>, vector<240x100xf32>,
    %c0_37 = arith.constant 0 : index
    %c0_38 = arith.constant 0 : index
    %37 = vector.load %arg14[%c0_37, %c0_38] : memref<256x100xf32, #tpu.memory_space<vmem>>, vector<240x100xf32>
    %c0_39 = arith.constant 0 : index
    %c0_40 = arith.constant 0 : index
    %c0_41 = arith.constant 0 : index
    %38 = vector.load %arg6[%c0_39, %c0_40, %c0_41] : memref<3x100x100xf32, #tpu.memory_space<vmem>>, vector<1x100x100xf32>
    %39 = vector.shape_cast %38 : vector<1x100x100xf32> to vector<100x100xf32>
    %cst_42 = arith.constant dense<0.000000e+00> : vector<240x100xf32>
    %40 = tpu.matmul %37, %39, %cst_42 {dimension_numbers = #tpu.dot_dimension_numbers<[1], [0], [0], [1], [0, 0, 1, 1], [], []>} : vector<240x100xf32>, vector<100x100xf32>, vector<240x100xf32> -> vector<240x100xf32>
    %c1_43 = arith.constant 1 : index
    %c0_44 = arith.constant 0 : index
    %c0_45 = arith.constant 0 : index
    %41 = vector.load %arg6[%c1_43, %c0_44, %c0_45] : memref<3x100x100xf32, #tpu.memory_space<vmem>>, vector<1x100x100xf32>
    %42 = vector.shape_cast %41 : vector<1x100x100xf32> to vector<100x100xf32>
    %cst_46 = arith.constant dense<0.000000e+00> : vector<240x100xf32>
    %43 = tpu.matmul %31, %42, %cst_46 {dimension_numbers = #tpu.dot_dimension_numbers<[1], [0], [0], [1], [0, 0, 1, 1], [], []>} : vector<240x100xf32>, vector<100x100xf32>, vector<240x100xf32> -> vector<240x100xf32>
    %44 = arith.addf %40, %43 : vector<240x100xf32>
    %c16_47 = arith.constant 16 : index
    %c0_48 = arith.constant 0 : index
    %45 = vector.load %arg14[%c16_47, %c0_48] : memref<256x100xf32, #tpu.memory_space<vmem>>, vector<240x100xf32>
    %c2_49 = arith.constant 2 : index
    %c0_50 = arith.constant 0 : index
    %c0_51 = arith.constant 0 : index
    %46 = vector.load %arg6[%c2_49, %c0_50, %c0_51] : memref<3x100x100xf32, #tpu.memory_space<vmem>>, vector<1x100x100xf32>
    %47 = vector.shape_cast %46 : vector<1x100x100xf32> to vector<100x100xf32>
    %cst_52 = arith.constant dense<0.000000e+00> : vector<240x100xf32>
    %48 = tpu.matmul %45, %47, %cst_52 {dimension_numbers = #tpu.dot_dimension_numbers<[1], [0], [0], [1], [0, 0, 1, 1], [], []>} : vector<240x100xf32>, vector<100x100xf32>, vector<240x100xf32> -> vector<240x100xf32>
    %49 = arith.addf %44, %48 : vector<240x100xf32>
    %c0_53 = arith.constant 0 : index
    %c0_54 = arith.constant 0 : index
    %50 = vector.load %arg7[%c0_53, %c0_54] : memref<1x100xf32, #tpu.memory_space<vmem>>, vector<1x100xf32>
    %51 = vector.broadcast %50 : vector<1x100xf32> to vector<240x100xf32>
    %52 = arith.addf %49, %51 : vector<240x100xf32>
    %cst_55 = arith.constant 0.000000e+00 : f32
    %53 = vector.broadcast %cst_55 : f32 to vector<240x100xf32>
    %54 = arith.maximumf %52, %53 : vector<240x100xf32>
    %cst_56 = arith.constant 0.000000e+00 : f32
    %55 = vector.broadcast %cst_56 : f32 to vector<8x200xf32>
    %56 = vector.extract_strided_slice %54 {offsets = [0, 0], sizes = [8, 100], strides = [1, 1]} : vector<240x100xf32> to vector<8x100xf32>
    %c0_57 = arith.constant 0 : index
    %c0_58 = arith.constant 0 : index
    %c0_59 = arith.constant 0 : index
    %57 = vector.load %arg8[%c0_57, %c0_58, %c0_59] : memref<30x100x200xf32, #tpu.memory_space<vmem>>, vector<1x100x200xf32>
    %58 = vector.shape_cast %57 : vector<1x100x200xf32> to vector<100x200xf32>
    %cst_60 = arith.constant dense<0.000000e+00> : vector<8x200xf32>
    %59 = tpu.matmul %56, %58, %cst_60 {dimension_numbers = #tpu.dot_dimension_numbers<[1], [0], [0], [1], [0, 0, 1, 1], [], []>} : vector<8x100xf32>, vector<100x200xf32>, vector<8x200xf32> -> vector<8x200xf32>
    %60 = arith.addf %55, %59 : vector<8x200xf32>
    %61 = vector.extract_strided_slice %54 {offsets = [8, 0], sizes = [8, 100], strides = [1, 1]} : vector<240x100xf32> to vector<8x100xf32>
    %c1_61 = arith.constant 1 : index
    %c0_62 = arith.constant 0 : index
    %c0_63 = arith.constant 0 : index
    %62 = vector.load %arg8[%c1_61, %c0_62, %c0_63] : memref<30x100x200xf32, #tpu.memory_space<vmem>>, vector<1x100x200xf32>
    %63 = vector.shape_cast %62 : vector<1x100x200xf32> to vector<100x200xf32>
    %cst_64 = arith.constant dense<0.000000e+00> : vector<8x200xf32>
    %64 = tpu.matmul %61, %63, %cst_64 {dimension_numbers = #tpu.dot_dimension_numbers<[1], [0], [0], [1], [0, 0, 1, 1], [], []>} : vector<8x100xf32>, vector<100x200xf32>, vector<8x200xf32> -> vector<8x200xf32>
    %65 = arith.addf %60, %64 : vector<8x200xf32>
    %66 = vector.extract_strided_slice %54 {offsets = [16, 0], sizes = [8, 100], strides = [1, 1]} : vector<240x100xf32> to vector<8x100xf32>
    %c2_65 = arith.constant 2 : index
    %c0_66 = arith.constant 0 : index
    %c0_67 = arith.constant 0 : index
    %67 = vector.load %arg8[%c2_65, %c0_66, %c0_67] : memref<30x100x200xf32, #tpu.memory_space<vmem>>, vector<1x100x200xf32>
    %68 = vector.shape_cast %67 : vector<1x100x200xf32> to vector<100x200xf32>
    %cst_68 = arith.constant dense<0.000000e+00> : vector<8x200xf32>
    %69 = tpu.matmul %66, %68, %cst_68 {dimension_numbers = #tpu.dot_dimension_numbers<[1], [0], [0], [1], [0, 0, 1, 1], [], []>} : vector<8x100xf32>, vector<100x200xf32>, vector<8x200xf32> -> vector<8x200xf32>
    %70 = arith.addf %65, %69 : vector<8x200xf32>
    %71 = vector.extract_strided_slice %54 {offsets = [24, 0], sizes = [8, 100], strides = [1, 1]} : vector<240x100xf32> to vector<8x100xf32>
    %c3 = arith.constant 3 : index
    %c0_69 = arith.constant 0 : index
    %c0_70 = arith.constant 0 : index
    %72 = vector.load %arg8[%c3, %c0_69, %c0_70] : memref<30x100x200xf32, #tpu.memory_space<vmem>>, vector<1x100x200xf32>
    %73 = vector.shape_cast %72 : vector<1x100x200xf32> to vector<100x200xf32>
    %cst_71 = arith.constant dense<0.000000e+00> : vector<8x200xf32>
    %74 = tpu.matmul %71, %73, %cst_71 {dimension_numbers = #tpu.dot_dimension_numbers<[1], [0], [0], [1], [0, 0, 1, 1], [], []>} : vector<8x100xf32>, vector<100x200xf32>, vector<8x200xf32> -> vector<8x200xf32>
    %75 = arith.addf %70, %74 : vector<8x200xf32>
    %76 = vector.extract_strided_slice %54 {offsets = [32, 0], sizes = [8, 100], strides = [1, 1]} : vector<240x100xf32> to vector<8x100xf32>
    %c4 = arith.constant 4 : index
    %c0_72 = arith.constant 0 : index
    %c0_73 = arith.constant 0 : index
    %77 = vector.load %arg8[%c4, %c0_72, %c0_73] : memref<30x100x200xf32, #tpu.memory_space<vmem>>, vector<1x100x200xf32>
    %78 = vector.shape_cast %77 : vector<1x100x200xf32> to vector<100x200xf32>
    %cst_74 = arith.constant dense<0.000000e+00> : vector<8x200xf32>
    %79 = tpu.matmul %76, %78, %cst_74 {dimension_numbers = #tpu.dot_dimension_numbers<[1], [0], [0], [1], [0, 0, 1, 1], [], []>} : vector<8x100xf32>, vector<100x200xf32>, vector<8x200xf32> -> vector<8x200xf32>
    %80 = arith.addf %75, %79 : vector<8x200xf32>
    %81 = vector.extract_strided_slice %54 {offsets = [40, 0], sizes = [8, 100], strides = [1, 1]} : vector<240x100xf32> to vector<8x100xf32>
    %c5 = arith.constant 5 : index
    %c0_75 = arith.constant 0 : index
    %c0_76 = arith.constant 0 : index
    %82 = vector.load %arg8[%c5, %c0_75, %c0_76] : memref<30x100x200xf32, #tpu.memory_space<vmem>>, vector<1x100x200xf32>
    %83 = vector.shape_cast %82 : vector<1x100x200xf32> to vector<100x200xf32>
    %cst_77 = arith.constant dense<0.000000e+00> : vector<8x200xf32>
    %84 = tpu.matmul %81, %83, %cst_77 {dimension_numbers = #tpu.dot_dimension_numbers<[1], [0], [0], [1], [0, 0, 1, 1], [], []>} : vector<8x100xf32>, vector<100x200xf32>, vector<8x200xf32> -> vector<8x200xf32>
    %85 = arith.addf %80, %84 : vector<8x200xf32>
    %86 = vector.extract_strided_slice %54 {offsets = [48, 0], sizes = [8, 100], strides = [1, 1]} : vector<240x100xf32> to vector<8x100xf32>
    %c6 = arith.constant 6 : index
    %c0_78 = arith.constant 0 : index
    %c0_79 = arith.constant 0 : index
    %87 = vector.load %arg8[%c6, %c0_78, %c0_79] : memref<30x100x200xf32, #tpu.memory_space<vmem>>, vector<1x100x200xf32>
    %88 = vector.shape_cast %87 : vector<1x100x200xf32> to vector<100x200xf32>
    %cst_80 = arith.constant dense<0.000000e+00> : vector<8x200xf32>
    %89 = tpu.matmul %86, %88, %cst_80 {dimension_numbers = #tpu.dot_dimension_numbers<[1], [0], [0], [1], [0, 0, 1, 1], [], []>} : vector<8x100xf32>, vector<100x200xf32>, vector<8x200xf32> -> vector<8x200xf32>
    %90 = arith.addf %85, %89 : vector<8x200xf32>
    %91 = vector.extract_strided_slice %54 {offsets = [56, 0], sizes = [8, 100], strides = [1, 1]} : vector<240x100xf32> to vector<8x100xf32>
    %c7 = arith.constant 7 : index
    %c0_81 = arith.constant 0 : index
    %c0_82 = arith.constant 0 : index
    %92 = vector.load %arg8[%c7, %c0_81, %c0_82] : memref<30x100x200xf32, #tpu.memory_space<vmem>>, vector<1x100x200xf32>
    %93 = vector.shape_cast %92 : vector<1x100x200xf32> to vector<100x200xf32>
    %cst_83 = arith.constant dense<0.000000e+00> : vector<8x200xf32>
    %94 = tpu.matmul %91, %93, %cst_83 {dimension_numbers = #tpu.dot_dimension_numbers<[1], [0], [0], [1], [0, 0, 1, 1], [], []>} : vector<8x100xf32>, vector<100x200xf32>, vector<8x200xf32> -> vector<8x200xf32>
    %95 = arith.addf %90, %94 : vector<8x200xf32>
    %96 = vector.extract_strided_slice %54 {offsets = [64, 0], sizes = [8, 100], strides = [1, 1]} : vector<240x100xf32> to vector<8x100xf32>
    %c8_84 = arith.constant 8 : index
    %c0_85 = arith.constant 0 : index
    %c0_86 = arith.constant 0 : index
    %97 = vector.load %arg8[%c8_84, %c0_85, %c0_86] : memref<30x100x200xf32, #tpu.memory_space<vmem>>, vector<1x100x200xf32>
    %98 = vector.shape_cast %97 : vector<1x100x200xf32> to vector<100x200xf32>
    %cst_87 = arith.constant dense<0.000000e+00> : vector<8x200xf32>
    %99 = tpu.matmul %96, %98, %cst_87 {dimension_numbers = #tpu.dot_dimension_numbers<[1], [0], [0], [1], [0, 0, 1, 1], [], []>} : vector<8x100xf32>, vector<100x200xf32>, vector<8x200xf32> -> vector<8x200xf32>
    %100 = arith.addf %95, %99 : vector<8x200xf32>
    %101 = vector.extract_strided_slice %54 {offsets = [72, 0], sizes = [8, 100], strides = [1, 1]} : vector<240x100xf32> to vector<8x100xf32>
    %c9 = arith.constant 9 : index
    %c0_88 = arith.constant 0 : index
    %c0_89 = arith.constant 0 : index
    %102 = vector.load %arg8[%c9, %c0_88, %c0_89] : memref<30x100x200xf32, #tpu.memory_space<vmem>>, vector<1x100x200xf32>
    %103 = vector.shape_cast %102 : vector<1x100x200xf32> to vector<100x200xf32>
    %cst_90 = arith.constant dense<0.000000e+00> : vector<8x200xf32>
    %104 = tpu.matmul %101, %103, %cst_90 {dimension_numbers = #tpu.dot_dimension_numbers<[1], [0], [0], [1], [0, 0, 1, 1], [], []>} : vector<8x100xf32>, vector<100x200xf32>, vector<8x200xf32> -> vector<8x200xf32>
    %105 = arith.addf %100, %104 : vector<8x200xf32>
    %106 = vector.extract_strided_slice %54 {offsets = [80, 0], sizes = [8, 100], strides = [1, 1]} : vector<240x100xf32> to vector<8x100xf32>
    %c10 = arith.constant 10 : index
    %c0_91 = arith.constant 0 : index
    %c0_92 = arith.constant 0 : index
    %107 = vector.load %arg8[%c10, %c0_91, %c0_92] : memref<30x100x200xf32, #tpu.memory_space<vmem>>, vector<1x100x200xf32>
    %108 = vector.shape_cast %107 : vector<1x100x200xf32> to vector<100x200xf32>
    %cst_93 = arith.constant dense<0.000000e+00> : vector<8x200xf32>
    %109 = tpu.matmul %106, %108, %cst_93 {dimension_numbers = #tpu.dot_dimension_numbers<[1], [0], [0], [1], [0, 0, 1, 1], [], []>} : vector<8x100xf32>, vector<100x200xf32>, vector<8x200xf32> -> vector<8x200xf32>
    %110 = arith.addf %105, %109 : vector<8x200xf32>
    %111 = vector.extract_strided_slice %54 {offsets = [88, 0], sizes = [8, 100], strides = [1, 1]} : vector<240x100xf32> to vector<8x100xf32>
    %c11 = arith.constant 11 : index
    %c0_94 = arith.constant 0 : index
    %c0_95 = arith.constant 0 : index
    %112 = vector.load %arg8[%c11, %c0_94, %c0_95] : memref<30x100x200xf32, #tpu.memory_space<vmem>>, vector<1x100x200xf32>
    %113 = vector.shape_cast %112 : vector<1x100x200xf32> to vector<100x200xf32>
    %cst_96 = arith.constant dense<0.000000e+00> : vector<8x200xf32>
    %114 = tpu.matmul %111, %113, %cst_96 {dimension_numbers = #tpu.dot_dimension_numbers<[1], [0], [0], [1], [0, 0, 1, 1], [], []>} : vector<8x100xf32>, vector<100x200xf32>, vector<8x200xf32> -> vector<8x200xf32>
    %115 = arith.addf %110, %114 : vector<8x200xf32>
    %116 = vector.extract_strided_slice %54 {offsets = [96, 0], sizes = [8, 100], strides = [1, 1]} : vector<240x100xf32> to vector<8x100xf32>
    %c12 = arith.constant 12 : index
    %c0_97 = arith.constant 0 : index
    %c0_98 = arith.constant 0 : index
    %117 = vector.load %arg8[%c12, %c0_97, %c0_98] : memref<30x100x200xf32, #tpu.memory_space<vmem>>, vector<1x100x200xf32>
    %118 = vector.shape_cast %117 : vector<1x100x200xf32> to vector<100x200xf32>
    %cst_99 = arith.constant dense<0.000000e+00> : vector<8x200xf32>
    %119 = tpu.matmul %116, %118, %cst_99 {dimension_numbers = #tpu.dot_dimension_numbers<[1], [0], [0], [1], [0, 0, 1, 1], [], []>} : vector<8x100xf32>, vector<100x200xf32>, vector<8x200xf32> -> vector<8x200xf32>
    %120 = arith.addf %115, %119 : vector<8x200xf32>
    %121 = vector.extract_strided_slice %54 {offsets = [104, 0], sizes = [8, 100], strides = [1, 1]} : vector<240x100xf32> to vector<8x100xf32>
    %c13 = arith.constant 13 : index
    %c0_100 = arith.constant 0 : index
    %c0_101 = arith.constant 0 : index
    %122 = vector.load %arg8[%c13, %c0_100, %c0_101] : memref<30x100x200xf32, #tpu.memory_space<vmem>>, vector<1x100x200xf32>
    %123 = vector.shape_cast %122 : vector<1x100x200xf32> to vector<100x200xf32>
    %cst_102 = arith.constant dense<0.000000e+00> : vector<8x200xf32>
    %124 = tpu.matmul %121, %123, %cst_102 {dimension_numbers = #tpu.dot_dimension_numbers<[1], [0], [0], [1], [0, 0, 1, 1], [], []>} : vector<8x100xf32>, vector<100x200xf32>, vector<8x200xf32> -> vector<8x200xf32>
    %125 = arith.addf %120, %124 : vector<8x200xf32>
    %126 = vector.extract_strided_slice %54 {offsets = [112, 0], sizes = [8, 100], strides = [1, 1]} : vector<240x100xf32> to vector<8x100xf32>
    %c14 = arith.constant 14 : index
    %c0_103 = arith.constant 0 : index
    %c0_104 = arith.constant 0 : index
    %127 = vector.load %arg8[%c14, %c0_103, %c0_104] : memref<30x100x200xf32, #tpu.memory_space<vmem>>, vector<1x100x200xf32>
    %128 = vector.shape_cast %127 : vector<1x100x200xf32> to vector<100x200xf32>
    %cst_105 = arith.constant dense<0.000000e+00> : vector<8x200xf32>
    %129 = tpu.matmul %126, %128, %cst_105 {dimension_numbers = #tpu.dot_dimension_numbers<[1], [0], [0], [1], [0, 0, 1, 1], [], []>} : vector<8x100xf32>, vector<100x200xf32>, vector<8x200xf32> -> vector<8x200xf32>
    %130 = arith.addf %125, %129 : vector<8x200xf32>
    %131 = vector.extract_strided_slice %54 {offsets = [120, 0], sizes = [8, 100], strides = [1, 1]} : vector<240x100xf32> to vector<8x100xf32>
    %c15 = arith.constant 15 : index
    %c0_106 = arith.constant 0 : index
    %c0_107 = arith.constant 0 : index
    %132 = vector.load %arg8[%c15, %c0_106, %c0_107] : memref<30x100x200xf32, #tpu.memory_space<vmem>>, vector<1x100x200xf32>
    %133 = vector.shape_cast %132 : vector<1x100x200xf32> to vector<100x200xf32>
    %cst_108 = arith.constant dense<0.000000e+00> : vector<8x200xf32>
    %134 = tpu.matmul %131, %133, %cst_108 {dimension_numbers = #tpu.dot_dimension_numbers<[1], [0], [0], [1], [0, 0, 1, 1], [], []>} : vector<8x100xf32>, vector<100x200xf32>, vector<8x200xf32> -> vector<8x200xf32>
    %135 = arith.addf %130, %134 : vector<8x200xf32>
    %136 = vector.extract_strided_slice %54 {offsets = [128, 0], sizes = [8, 100], strides = [1, 1]} : vector<240x100xf32> to vector<8x100xf32>
    %c16_109 = arith.constant 16 : index
    %c0_110 = arith.constant 0 : index
    %c0_111 = arith.constant 0 : index
    %137 = vector.load %arg8[%c16_109, %c0_110, %c0_111] : memref<30x100x200xf32, #tpu.memory_space<vmem>>, vector<1x100x200xf32>
    %138 = vector.shape_cast %137 : vector<1x100x200xf32> to vector<100x200xf32>
    %cst_112 = arith.constant dense<0.000000e+00> : vector<8x200xf32>
    %139 = tpu.matmul %136, %138, %cst_112 {dimension_numbers = #tpu.dot_dimension_numbers<[1], [0], [0], [1], [0, 0, 1, 1], [], []>} : vector<8x100xf32>, vector<100x200xf32>, vector<8x200xf32> -> vector<8x200xf32>
    %140 = arith.addf %135, %139 : vector<8x200xf32>
    %141 = vector.extract_strided_slice %54 {offsets = [136, 0], sizes = [8, 100], strides = [1, 1]} : vector<240x100xf32> to vector<8x100xf32>
    %c17 = arith.constant 17 : index
    %c0_113 = arith.constant 0 : index
    %c0_114 = arith.constant 0 : index
    %142 = vector.load %arg8[%c17, %c0_113, %c0_114] : memref<30x100x200xf32, #tpu.memory_space<vmem>>, vector<1x100x200xf32>
    %143 = vector.shape_cast %142 : vector<1x100x200xf32> to vector<100x200xf32>
    %cst_115 = arith.constant dense<0.000000e+00> : vector<8x200xf32>
    %144 = tpu.matmul %141, %143, %cst_115 {dimension_numbers = #tpu.dot_dimension_numbers<[1], [0], [0], [1], [0, 0, 1, 1], [], []>} : vector<8x100xf32>, vector<100x200xf32>, vector<8x200xf32> -> vector<8x200xf32>
    %145 = arith.addf %140, %144 : vector<8x200xf32>
    %146 = vector.extract_strided_slice %54 {offsets = [144, 0], sizes = [8, 100], strides = [1, 1]} : vector<240x100xf32> to vector<8x100xf32>
    %c18 = arith.constant 18 : index
    %c0_116 = arith.constant 0 : index
    %c0_117 = arith.constant 0 : index
    %147 = vector.load %arg8[%c18, %c0_116, %c0_117] : memref<30x100x200xf32, #tpu.memory_space<vmem>>, vector<1x100x200xf32>
    %148 = vector.shape_cast %147 : vector<1x100x200xf32> to vector<100x200xf32>
    %cst_118 = arith.constant dense<0.000000e+00> : vector<8x200xf32>
    %149 = tpu.matmul %146, %148, %cst_118 {dimension_numbers = #tpu.dot_dimension_numbers<[1], [0], [0], [1], [0, 0, 1, 1], [], []>} : vector<8x100xf32>, vector<100x200xf32>, vector<8x200xf32> -> vector<8x200xf32>
    %150 = arith.addf %145, %149 : vector<8x200xf32>
    %151 = vector.extract_strided_slice %54 {offsets = [152, 0], sizes = [8, 100], strides = [1, 1]} : vector<240x100xf32> to vector<8x100xf32>
    %c19 = arith.constant 19 : index
    %c0_119 = arith.constant 0 : index
    %c0_120 = arith.constant 0 : index
    %152 = vector.load %arg8[%c19, %c0_119, %c0_120] : memref<30x100x200xf32, #tpu.memory_space<vmem>>, vector<1x100x200xf32>
    %153 = vector.shape_cast %152 : vector<1x100x200xf32> to vector<100x200xf32>
    %cst_121 = arith.constant dense<0.000000e+00> : vector<8x200xf32>
    %154 = tpu.matmul %151, %153, %cst_121 {dimension_numbers = #tpu.dot_dimension_numbers<[1], [0], [0], [1], [0, 0, 1, 1], [], []>} : vector<8x100xf32>, vector<100x200xf32>, vector<8x200xf32> -> vector<8x200xf32>
    %155 = arith.addf %150, %154 : vector<8x200xf32>
    %156 = vector.extract_strided_slice %54 {offsets = [160, 0], sizes = [8, 100], strides = [1, 1]} : vector<240x100xf32> to vector<8x100xf32>
    %c20 = arith.constant 20 : index
    %c0_122 = arith.constant 0 : index
    %c0_123 = arith.constant 0 : index
    %157 = vector.load %arg8[%c20, %c0_122, %c0_123] : memref<30x100x200xf32, #tpu.memory_space<vmem>>, vector<1x100x200xf32>
    %158 = vector.shape_cast %157 : vector<1x100x200xf32> to vector<100x200xf32>
    %cst_124 = arith.constant dense<0.000000e+00> : vector<8x200xf32>
    %159 = tpu.matmul %156, %158, %cst_124 {dimension_numbers = #tpu.dot_dimension_numbers<[1], [0], [0], [1], [0, 0, 1, 1], [], []>} : vector<8x100xf32>, vector<100x200xf32>, vector<8x200xf32> -> vector<8x200xf32>
    %160 = arith.addf %155, %159 : vector<8x200xf32>
    %161 = vector.extract_strided_slice %54 {offsets = [168, 0], sizes = [8, 100], strides = [1, 1]} : vector<240x100xf32> to vector<8x100xf32>
    %c21 = arith.constant 21 : index
    %c0_125 = arith.constant 0 : index
    %c0_126 = arith.constant 0 : index
    %162 = vector.load %arg8[%c21, %c0_125, %c0_126] : memref<30x100x200xf32, #tpu.memory_space<vmem>>, vector<1x100x200xf32>
    %163 = vector.shape_cast %162 : vector<1x100x200xf32> to vector<100x200xf32>
    %cst_127 = arith.constant dense<0.000000e+00> : vector<8x200xf32>
    %164 = tpu.matmul %161, %163, %cst_127 {dimension_numbers = #tpu.dot_dimension_numbers<[1], [0], [0], [1], [0, 0, 1, 1], [], []>} : vector<8x100xf32>, vector<100x200xf32>, vector<8x200xf32> -> vector<8x200xf32>
    %165 = arith.addf %160, %164 : vector<8x200xf32>
    %166 = vector.extract_strided_slice %54 {offsets = [176, 0], sizes = [8, 100], strides = [1, 1]} : vector<240x100xf32> to vector<8x100xf32>
    %c22 = arith.constant 22 : index
    %c0_128 = arith.constant 0 : index
    %c0_129 = arith.constant 0 : index
    %167 = vector.load %arg8[%c22, %c0_128, %c0_129] : memref<30x100x200xf32, #tpu.memory_space<vmem>>, vector<1x100x200xf32>
    %168 = vector.shape_cast %167 : vector<1x100x200xf32> to vector<100x200xf32>
    %cst_130 = arith.constant dense<0.000000e+00> : vector<8x200xf32>
    %169 = tpu.matmul %166, %168, %cst_130 {dimension_numbers = #tpu.dot_dimension_numbers<[1], [0], [0], [1], [0, 0, 1, 1], [], []>} : vector<8x100xf32>, vector<100x200xf32>, vector<8x200xf32> -> vector<8x200xf32>
    %170 = arith.addf %165, %169 : vector<8x200xf32>
    %171 = vector.extract_strided_slice %54 {offsets = [184, 0], sizes = [8, 100], strides = [1, 1]} : vector<240x100xf32> to vector<8x100xf32>
    %c23 = arith.constant 23 : index
    %c0_131 = arith.constant 0 : index
    %c0_132 = arith.constant 0 : index
    %172 = vector.load %arg8[%c23, %c0_131, %c0_132] : memref<30x100x200xf32, #tpu.memory_space<vmem>>, vector<1x100x200xf32>
    %173 = vector.shape_cast %172 : vector<1x100x200xf32> to vector<100x200xf32>
    %cst_133 = arith.constant dense<0.000000e+00> : vector<8x200xf32>
    %174 = tpu.matmul %171, %173, %cst_133 {dimension_numbers = #tpu.dot_dimension_numbers<[1], [0], [0], [1], [0, 0, 1, 1], [], []>} : vector<8x100xf32>, vector<100x200xf32>, vector<8x200xf32> -> vector<8x200xf32>
    %175 = arith.addf %170, %174 : vector<8x200xf32>
    %176 = vector.extract_strided_slice %54 {offsets = [192, 0], sizes = [8, 100], strides = [1, 1]} : vector<240x100xf32> to vector<8x100xf32>
    %c24 = arith.constant 24 : index
    %c0_134 = arith.constant 0 : index
    %c0_135 = arith.constant 0 : index
    %177 = vector.load %arg8[%c24, %c0_134, %c0_135] : memref<30x100x200xf32, #tpu.memory_space<vmem>>, vector<1x100x200xf32>
    %178 = vector.shape_cast %177 : vector<1x100x200xf32> to vector<100x200xf32>
    %cst_136 = arith.constant dense<0.000000e+00> : vector<8x200xf32>
    %179 = tpu.matmul %176, %178, %cst_136 {dimension_numbers = #tpu.dot_dimension_numbers<[1], [0], [0], [1], [0, 0, 1, 1], [], []>} : vector<8x100xf32>, vector<100x200xf32>, vector<8x200xf32> -> vector<8x200xf32>
    %180 = arith.addf %175, %179 : vector<8x200xf32>
    %181 = vector.extract_strided_slice %54 {offsets = [200, 0], sizes = [8, 100], strides = [1, 1]} : vector<240x100xf32> to vector<8x100xf32>
    %c25 = arith.constant 25 : index
    %c0_137 = arith.constant 0 : index
    %c0_138 = arith.constant 0 : index
    %182 = vector.load %arg8[%c25, %c0_137, %c0_138] : memref<30x100x200xf32, #tpu.memory_space<vmem>>, vector<1x100x200xf32>
    %183 = vector.shape_cast %182 : vector<1x100x200xf32> to vector<100x200xf32>
    %cst_139 = arith.constant dense<0.000000e+00> : vector<8x200xf32>
    %184 = tpu.matmul %181, %183, %cst_139 {dimension_numbers = #tpu.dot_dimension_numbers<[1], [0], [0], [1], [0, 0, 1, 1], [], []>} : vector<8x100xf32>, vector<100x200xf32>, vector<8x200xf32> -> vector<8x200xf32>
    %185 = arith.addf %180, %184 : vector<8x200xf32>
    %186 = vector.extract_strided_slice %54 {offsets = [208, 0], sizes = [8, 100], strides = [1, 1]} : vector<240x100xf32> to vector<8x100xf32>
    %c26 = arith.constant 26 : index
    %c0_140 = arith.constant 0 : index
    %c0_141 = arith.constant 0 : index
    %187 = vector.load %arg8[%c26, %c0_140, %c0_141] : memref<30x100x200xf32, #tpu.memory_space<vmem>>, vector<1x100x200xf32>
    %188 = vector.shape_cast %187 : vector<1x100x200xf32> to vector<100x200xf32>
    %cst_142 = arith.constant dense<0.000000e+00> : vector<8x200xf32>
    %189 = tpu.matmul %186, %188, %cst_142 {dimension_numbers = #tpu.dot_dimension_numbers<[1], [0], [0], [1], [0, 0, 1, 1], [], []>} : vector<8x100xf32>, vector<100x200xf32>, vector<8x200xf32> -> vector<8x200xf32>
    %190 = arith.addf %185, %189 : vector<8x200xf32>
    %191 = vector.extract_strided_slice %54 {offsets = [216, 0], sizes = [8, 100], strides = [1, 1]} : vector<240x100xf32> to vector<8x100xf32>
    %c27 = arith.constant 27 : index
    %c0_143 = arith.constant 0 : index
    %c0_144 = arith.constant 0 : index
    %192 = vector.load %arg8[%c27, %c0_143, %c0_144] : memref<30x100x200xf32, #tpu.memory_space<vmem>>, vector<1x100x200xf32>
    %193 = vector.shape_cast %192 : vector<1x100x200xf32> to vector<100x200xf32>
    %cst_145 = arith.constant dense<0.000000e+00> : vector<8x200xf32>
    %194 = tpu.matmul %191, %193, %cst_145 {dimension_numbers = #tpu.dot_dimension_numbers<[1], [0], [0], [1], [0, 0, 1, 1], [], []>} : vector<8x100xf32>, vector<100x200xf32>, vector<8x200xf32> -> vector<8x200xf32>
    %195 = arith.addf %190, %194 : vector<8x200xf32>
    %196 = vector.extract_strided_slice %54 {offsets = [224, 0], sizes = [8, 100], strides = [1, 1]} : vector<240x100xf32> to vector<8x100xf32>
    %c28 = arith.constant 28 : index
    %c0_146 = arith.constant 0 : index
    %c0_147 = arith.constant 0 : index
    %197 = vector.load %arg8[%c28, %c0_146, %c0_147] : memref<30x100x200xf32, #tpu.memory_space<vmem>>, vector<1x100x200xf32>
    %198 = vector.shape_cast %197 : vector<1x100x200xf32> to vector<100x200xf32>
    %cst_148 = arith.constant dense<0.000000e+00> : vector<8x200xf32>
    %199 = tpu.matmul %196, %198, %cst_148 {dimension_numbers = #tpu.dot_dimension_numbers<[1], [0], [0], [1], [0, 0, 1, 1], [], []>} : vector<8x100xf32>, vector<100x200xf32>, vector<8x200xf32> -> vector<8x200xf32>
    %200 = arith.addf %195, %199 : vector<8x200xf32>
    %201 = vector.extract_strided_slice %54 {offsets = [232, 0], sizes = [8, 100], strides = [1, 1]} : vector<240x100xf32> to vector<8x100xf32>
    %c29 = arith.constant 29 : index
    %c0_149 = arith.constant 0 : index
    %c0_150 = arith.constant 0 : index
    %202 = vector.load %arg8[%c29, %c0_149, %c0_150] : memref<30x100x200xf32, #tpu.memory_space<vmem>>, vector<1x100x200xf32>
    %203 = vector.shape_cast %202 : vector<1x100x200xf32> to vector<100x200xf32>
    %cst_151 = arith.constant dense<0.000000e+00> : vector<8x200xf32>
    %204 = tpu.matmul %201, %203, %cst_151 {dimension_numbers = #tpu.dot_dimension_numbers<[1], [0], [0], [1], [0, 0, 1, 1], [], []>} : vector<8x100xf32>, vector<100x200xf32>, vector<8x200xf32> -> vector<8x200xf32>
    %205 = arith.addf %200, %204 : vector<8x200xf32>
    %c0_152 = arith.constant 0 : index
    %c0_153 = arith.constant 0 : index
    %206 = vector.load %arg9[%c0_152, %c0_153] : memref<1x200xf32, #tpu.memory_space<vmem>>, vector<1x200xf32>
    %207 = vector.broadcast %206 : vector<1x200xf32> to vector<8x200xf32>
    %208 = arith.addf %205, %207 : vector<8x200xf32>
    %cst_154 = arith.constant 0.000000e+00 : f32
    %209 = vector.broadcast %cst_154 : f32 to vector<8x200xf32>
    %210 = arith.maximumf %208, %209 : vector<8x200xf32>
    %c0_155 = arith.constant 0 : index
    %c0_156 = arith.constant 0 : index
    %211 = vector.load %arg10[%c0_155, %c0_156] : memref<1x200xf32, #tpu.memory_space<vmem>>, vector<1x200xf32>
    %cst_157 = arith.constant dense<0.000000e+00> : vector<1x8xf32>
    %212 = tpu.matmul %211, %210, %cst_157 {dimension_numbers = #tpu.dot_dimension_numbers<[1], [1], [0], [0], [0, 0, 1, 0], [], []>} : vector<1x200xf32>, vector<8x200xf32>, vector<1x8xf32> -> vector<1x8xf32>
    %c0_158 = arith.constant 0 : index
    %c0_159 = arith.constant 0 : index
    %213 = vector.load %arg11[%c0_158, %c0_159] : memref<1x1xf32, #tpu.memory_space<vmem>>, vector<1x1xf32>
    %214 = vector.broadcast %213 : vector<1x1xf32> to vector<1x8xf32>
    %215 = arith.addf %212, %214 : vector<1x8xf32>
    %216 = vector.shape_cast %215 : vector<1x8xf32> to vector<1x1x8xf32>
    %c0_160 = arith.constant 0 : index
    %c0_161 = arith.constant 0 : index
    %c0_162 = arith.constant 0 : index
    %217 = vector.load %arg12[%c0_160, %c0_161, %c0_162] : memref<1x1x8xf32, #tpu.memory_space<vmem>>, vector<1x1x8xf32>
    tpu.vector_store %arg12[%c0_160, %c0_161, %c0_162], %216 {strides = array<i32>} : memref<1x1x8xf32, #tpu.memory_space<vmem>>, vector<1x1x8xf32>,
    return
  }
  func.func @transform_0(%arg0: i32) -> (i32, i32, i32) {
    %c0_i32 = arith.constant 0 : i32
    %c0_i32_0 = arith.constant 0 : i32
    %c0_i32_1 = arith.constant 0 : i32
    return %c0_i32, %arg0, %c0_i32_0 : i32, i32, i32
  }
  func.func @transform_1(%arg0: i32) -> (i32, i32) {
    %c0_i32 = arith.constant 0 : i32
    %c0_i32_0 = arith.constant 0 : i32
    %c0_i32_1 = arith.constant 0 : i32
    return %c0_i32, %c0_i32_0 : i32, i32
  }
  func.func @transform_2(%arg0: i32) -> (i32, i32) {
    %c0_i32 = arith.constant 0 : i32
    %c0_i32_0 = arith.constant 0 : i32
    %c0_i32_1 = arith.constant 0 : i32
    return %c0_i32, %c0_i32_0 : i32, i32
  }
  func.func @transform_3(%arg0: i32) -> (i32, i32, i32) {
    %c0_i32 = arith.constant 0 : i32
    %c0_i32_0 = arith.constant 0 : i32
    %c0_i32_1 = arith.constant 0 : i32
    %c0_i32_2 = arith.constant 0 : i32
    return %c0_i32, %c0_i32_0, %c0_i32_1 : i32, i32, i32
  }
  func.func @transform_4(%arg0: i32) -> (i32, i32) {
    %c0_i32 = arith.constant 0 : i32
    %c0_i32_0 = arith.constant 0 : i32
    %c0_i32_1 = arith.constant 0 : i32
    return %c0_i32, %c0_i32_0 : i32, i32
  }
  func.func @transform_5(%arg0: i32) -> (i32, i32, i32) {
    %c0_i32 = arith.constant 0 : i32
    %c0_i32_0 = arith.constant 0 : i32
    %c0_i32_1 = arith.constant 0 : i32
    %c0_i32_2 = arith.constant 0 : i32
    return %c0_i32, %c0_i32_0, %c0_i32_1 : i32, i32, i32
  }
  func.func @transform_6(%arg0: i32) -> (i32, i32) {
    %c0_i32 = arith.constant 0 : i32
    %c0_i32_0 = arith.constant 0 : i32
    %c0_i32_1 = arith.constant 0 : i32
    return %c0_i32, %c0_i32_0 : i32, i32
  }
  func.func @transform_7(%arg0: i32) -> (i32, i32, i32) {
    %c0_i32 = arith.constant 0 : i32
    %c0_i32_0 = arith.constant 0 : i32
    %c0_i32_1 = arith.constant 0 : i32
    %c0_i32_2 = arith.constant 0 : i32
    return %c0_i32, %c0_i32_0, %c0_i32_1 : i32, i32, i32
  }
  func.func @transform_8(%arg0: i32) -> (i32, i32) {
    %c0_i32 = arith.constant 0 : i32
    %c0_i32_0 = arith.constant 0 : i32
    %c0_i32_1 = arith.constant 0 : i32
    return %c0_i32, %c0_i32_0 : i32, i32
  }
  func.func @transform_9(%arg0: i32) -> (i32, i32) {
    %c0_i32 = arith.constant 0 : i32
    %c0_i32_0 = arith.constant 0 : i32
    %c0_i32_1 = arith.constant 0 : i32
    return %c0_i32, %c0_i32_0 : i32, i32
  }
  func.func @transform_10(%arg0: i32) -> (i32, i32) {
    %c0_i32 = arith.constant 0 : i32
    %c0_i32_0 = arith.constant 0 : i32
    %c0_i32_1 = arith.constant 0 : i32
    return %c0_i32, %c0_i32_0 : i32, i32
  }
  func.func @transform_11(%arg0: i32) -> (i32, i32, i32) {
    %c0_i32 = arith.constant 0 : i32
    %c0_i32_0 = arith.constant 0 : i32
    %c0_i32_1 = arith.constant 0 : i32
    return %arg0, %c0_i32, %c0_i32_0 : i32, i32, i32
  }
}

</mosaic_0001>

<bundles_post_ra>
// kernel: cnn_3conv_forward.1
= control target key start
LH: loop header
LB: loop body
LE: loop exit
PB: predicated region body
PF: predicated region fallthrough
CT: control target
= control target key end

     0   :  { %vm171_vm0 = vcmask 1043456   ;;  %vm80_vm1 = vcmask 97280   ;;  %vm453_vm2 = vcmask 588800   ;;  %vm1720_vm3 = vcmask 818176   ;;  %s10505_s1 = inlined_call_operand.vmem [shape: f32[12,200], index: 1, kind: input, shape index: {}]   ;;  %s10506_s0 = inlined_call_operand.vmem [shape: f32[30,8,12], index: 0, kind: input, shape index: {}]   ;;  %s10507_s3 = inlined_call_operand.vmem [shape: f32[3,200,100], index: 3, kind: input, shape index: {}]   ;;  %s10508_s2 = inlined_call_operand.vmem [shape: f32[1,200], index: 2, kind: input, shape index: {}]   ;;  %s10509_s4 = inlined_call_operand.vmem [shape: f32[1,100], index: 4, kind: input, shape index: {}]   ;;  %s10510_s5 = inlined_call_operand.vmem [shape: f32[3,100,100], index: 5, kind: input, shape index: {}]   ;;  %s10511_s6 = inlined_call_operand.vmem [shape: f32[1,100], index: 6, kind: input, shape index: {}]   ;;  %s10512_s7 = inlined_call_operand.vmem [shape: f32[30,100,200], index: 7, kind: input, shape index: {}]   ;;  %s10513_s8 = inlined_call_operand.vmem [shape: f32[1,200], index: 8, kind: input, shape index: {}]   ;;  %s10514_s9 = inlined_call_operand.vmem [shape: f32[1,200], index: 9, kind: input, shape index: {}]   ;;  %s10515_s10 = inlined_call_operand.<no memory space> [shape: f32[1,1], index: 10, kind: input, shape index: {}]   ;;  %s10516_s11 = inlined_call_operand.vmem [shape: f32[1,1,8], index: 11, kind: output, shape index: {}]  }
   0x1   :  { %v72_v0 = vld [vmem:[%s10505_s1 + $0x10] sm:$0xf]  ;;  %v73_v1 = vld [vmem:[%s10505_s1 + $0x18] sm:$0xf]  ;;  %v70_v2 = vld [vmem:[%s10505_s1] sm:$0xff]  ;;  %vm4950_vm4 = vcmask 57344  }
   0x2   :  { %4956 = vmatpush.msk.msra.mxu0 %vm171_vm0, %v72_v0  ;;  %4987 = vmatpush.msk.msra.mxu1 %vm171_vm0, %v73_v1  ;;  %v71_v3 = vld [vmem:[%s10505_s1 + $0x8] sm:$0xff]  ;;  %v40_v4 = vld [vmem:[%s10506_s0] sm:$0xff]  ;;  %v42_v6 = vld [vmem:[%s10506_s0 + $0x10] sm:$0xff] }
   0x3   :  { %v41_v5 = vld [vmem:[%s10506_s0 + $0x8] sm:$0xff]  ;;  %v43_v7 = vld [vmem:[%s10506_s0 + $0x18] sm:$0xff]  ;;  %v44_v8 = vld [vmem:[%s10506_s0 + $0x20] sm:$0xff] }
   0x4   :  { %193 = vmatpush.msra.mxu0 %v70_v2  ;;  %300 = vmatpush.msra.mxu1 %v71_v3  ;;  %v45_v9 = vld [vmem:[%s10506_s0 + $0x28] sm:$0xff]  ;;  %v46_v10 = vld [vmem:[%s10506_s0 + $0x30] sm:$0xff]  ;;  %v47_v11 = vld [vmem:[%s10506_s0 + $0x38] sm:$0xff] }
   0x5   :  { %4957 = vmatmul.msk.f32.vlgmr.msra.gmra.mxu0 %vm80_vm1, %v40_v4  ;;  %4988 = vmatmul.msk.f32.vlgmr.msra.gmra.mxu1 %vm80_vm1, %v40_v4  ;;  %v48_v12 = vld [vmem:[%s10506_s0 + $0x40] sm:$0xff]  ;;  %v5032_v14 = vld [vmem:[%s10507_s3 + $0x138] sm:$0xff]  ;;  %v5031_v15 = vld [vmem:[%s10507_s3 + $0x130] sm:$0xff] }
   0x6   :  { %v5033_v13 = vld [vmem:[%s10507_s3 + $0x140] sm:$0xff]  ;;  %v49_v16 = vld [vmem:[%s10506_s0 + $0x48] sm:$0xff]  ;;  %v5028_v19 = vld [vmem:[%s10507_s3 + $0x118] sm:$0xff] }
   0x7   :  { %718 = vmatpush.msra.mxu2 %v5033_v13  ;;  %v5030_v17 = vld [vmem:[%s10507_s3 + $0x128] sm:$0xff]  ;;  %v5029_v18 = vld [vmem:[%s10507_s3 + $0x120] sm:$0xff]  ;;  %v5027_v20 = vld [vmem:[%s10507_s3 + $0x110] sm:$0xff] }
   0x8   :  { %v50_v21 = vld [vmem:[%s10506_s0 + $0x50] sm:$0xff]  ;;  %v5026_v22 = vld [vmem:[%s10507_s3 + $0x108] sm:$0xff]  ;;  %v5025_v24 = vld [vmem:[%s10507_s3 + $0x100] sm:$0xff] }
   0x9   :  { %719 = vmatpush.msra.mxu2 %v5032_v14  ;;  %v5042_v23 = vld [vmem:[%s10507_s3 + $0x188] sm:$0xff]  ;;  %v5041_v25 = vld [vmem:[%s10507_s3 + $0x180] sm:$0xff]  ;;  %v5024_v26 = vld [vmem:[%s10507_s3 + $0xf8] sm:$0xff] }
   0xa   :  { %832 = vmatpush.msra.mxu3 %v5042_v23  ;;  %v5040_v27 = vld [vmem:[%s10507_s3 + $0x178] sm:$0xff]  ;;  %v5023_v28 = vld [vmem:[%s10507_s3 + $0xf0] sm:$0xff]  ;;  %v5022_v31 = vld [vmem:[%s10507_s3 + $0xe8] sm:$0xff] }
   0xb   :  { %720 = vmatpush.msra.mxu2 %v5031_v15  ;;  %v5039_v29 = vld [vmem:[%s10507_s3 + $0x170] sm:$0xff]  ;;  %v51_v30 = vld [vmem:[%s10506_s0 + $0x58] sm:$0xff]  ;;  %v5038_v32 = vld [vmem:[%s10507_s3 + $0x168] sm:$0xff] }
   0xc   :  { %833 = vmatpush.msra.mxu3 %v5041_v25  ;;  %v5021_v33 = vld [vmem:[%s10507_s3 + $0xe0] sm:$0xff]  ;;  %v5020_v35 = vld [vmem:[%s10507_s3 + $0xd8] sm:$0xff]  ;;  %v5019_v38 = vld [vmem:[%s10507_s3 + $0xd0] sm:$0xff] }
   0xd   :  { %4958 = vmatmul.msk.f32.gmra.mxu0 %vm80_vm1, %v41_v5  ;;  %4989 = vmatmul.msk.f32.gmra.mxu1 %vm80_vm1, %v41_v5  ;;  %v5037_v34 = vld [vmem:[%s10507_s3 + $0x160] sm:$0xff]  ;;  %v5036_v36 = vld [vmem:[%s10507_s3 + $0x158] sm:$0xff]  ;;  %v5035_v39 = vld [vmem:[%s10507_s3 + $0x150] sm:$0xff] }
   0xe   :  { %721 = vmatpush.msra.mxu2 %v5030_v17  ;;  %834 = vmatpush.msra.mxu3 %v5040_v27  ;;  %v52_v37 = vld [vmem:[%s10506_s0 + $0x60] sm:$0xff]  ;;  %v5018_v40 = vld [vmem:[%s10507_s3 + $0xc8] sm:$0xff]  ;;  %v54_v43 = vld [vmem:[%s10506_s0 + $0x70] sm:$0xff] }
   0xf   :  { %v5034_v41 = vld [vmem:[%s10507_s3 + $0x148] sm:$0xff]  ;;  %v55_v44 = vld [vmem:[%s10506_s0 + $0x78] sm:$0xff]  ;;  %v74_v45 = vld [vmem:[%s10508_s2] sm:$0x3] }
  0x10   :  { %722 = vmatpush.msra.mxu2 %v5029_v18  ;;  %835 = vmatpush.msra.mxu3 %v5039_v29  ;;  %v53_v42 = vld [vmem:[%s10506_s0 + $0x68] sm:$0xff]  ;;  %v6396_v46 = vperm.slane %v74_v45, 0  ;;  %v6398_v47 = vperm.slane %v74_v45, 1  ;;  %v56_v50 = vld [vmem:[%s10506_s0 + $0x80] sm:$0xff]  ;;  %v58_v0 = vld [vmem:[%s10506_s0 + $0x90] sm:$0xff] }
  0x11   :  { %v57_v57 = vld [vmem:[%s10506_s0 + $0x88] sm:$0xff]  ;;  %v60_v14 = vld [vmem:[%s10506_s0 + $0xa0] sm:$0xff]  ;;  %v587_v45 = vld [vmem:[%s10507_s3 + $0x50] sm:$0xff] }
  0x12   :  { %723 = vmatpush.msra.mxu2 %v5028_v19  ;;  %836 = vmatpush.msra.mxu3 %v5038_v32 }
  0x14   :  { %724 = vmatpush.msra.mxu2 %v5027_v20  ;;  %837 = vmatpush.msra.mxu3 %v5037_v34  ;;  %v591_v34 = vld [vmem:[%s10507_s3 + $0x70] sm:$0xff] }
  0x15   :  { %4959 = vmatmul.msk.f32.gmra.mxu0 %vm80_vm1, %v42_v6  ;;  %4990 = vmatmul.msk.f32.gmra.mxu1 %vm80_vm1, %v42_v6 }
  0x16   :  { %725 = vmatpush.msra.mxu2 %v5026_v22  ;;  %838 = vmatpush.msra.mxu3 %v5036_v36 }
  0x18   :  { %726 = vmatpush.msra.mxu2 %v5025_v24  ;;  %839 = vmatpush.msra.mxu3 %v5035_v39 }
  0x1a   :  { %727 = vmatpush.msra.mxu2 %v5024_v26  ;;  %840 = vmatpush.msra.mxu3 %v5034_v41  ;;  %v589_v41 = vld [vmem:[%s10507_s3 + $0x60] sm:$0xff] }
  0x1c   :  { %728 = vmatpush.msra.mxu2 %v5023_v28  ;;  %v62_v28 = vld [vmem:[%s10506_s0 + $0xb0] sm:$0xff] }
  0x1d   :  { %4960 = vmatmul.msk.f32.gmra.mxu0 %vm80_vm1, %v43_v7  ;;  %4991 = vmatmul.msk.f32.gmra.mxu1 %vm80_vm1, %v43_v7  ;;  %v59_v7 = vld [vmem:[%s10506_s0 + $0x98] sm:$0xff] }
  0x1e   :  { %729 = vmatpush.msra.mxu2 %v5022_v31 }
  0x20   :  { %730 = vmatpush.msra.mxu2 %v5021_v33  ;;  %v592_v33 = vld [vmem:[%s10507_s3 + $0x78] sm:$0xff] }
  0x21   :  { %1022 = vmatpush.msrb.mxu0 %v592_v33 }
  0x22   :  { %731 = vmatpush.msra.mxu2 %v5020_v35  ;;  %v590_v35 = vld [vmem:[%s10507_s3 + $0x68] sm:$0xff] }
  0x23   :  { %1023 = vmatpush.msrb.mxu0 %v591_v34 }
  0x24   :  { %732 = vmatpush.msra.mxu2 %v5019_v38  ;;  %v63_v38 = vld [vmem:[%s10506_s0 + $0xb8] sm:$0xff] }
  0x25   :  { %4961 = vmatmul.msk.f32.gmra.mxu0 %vm80_vm1, %v44_v8  ;;  %4992 = vmatmul.msk.f32.gmra.mxu1 %vm80_vm1, %v44_v8 }
  0x26   :  { %733 = vmatpush.msra.mxu2 %v5018_v40  ;;  %1024 = vmatpush.msrb.mxu0 %v590_v35  ;;  %v67_v35 = vld [vmem:[%s10506_s0 + $0xd8] sm:$0xff] }
  0x28   :  { %1025 = vmatpush.msrb.mxu0 %v589_v41 }
  0x2d   :  { %4962 = vmatmul.msk.f32.gmra.mxu0 %vm80_vm1, %v45_v9  ;;  %4993 = vmatmul.msk.f32.gmra.mxu1 %vm80_vm1, %v45_v9 }
  0x35   :  { %4963 = vmatmul.msk.f32.gmra.mxu0 %vm80_vm1, %v46_v10  ;;  %4994 = vmatmul.msk.f32.gmra.mxu1 %vm80_vm1, %v46_v10 }
  0x3d   :  { %4964 = vmatmul.msk.f32.gmra.mxu0 %vm80_vm1, %v47_v11  ;;  %4995 = vmatmul.msk.f32.gmra.mxu1 %vm80_vm1, %v47_v11 }
  0x45   :  { %4965 = vmatmul.msk.f32.gmra.mxu0 %vm80_vm1, %v48_v12  ;;  %4996 = vmatmul.msk.f32.gmra.mxu1 %vm80_vm1, %v48_v12 }
  0x4d   :  { %4966 = vmatmul.msk.f32.gmra.mxu0 %vm80_vm1, %v49_v16  ;;  %4997 = vmatmul.msk.f32.gmra.mxu1 %vm80_vm1, %v49_v16 }
  0x55   :  { %4967 = vmatmul.msk.f32.gmra.mxu0 %vm80_vm1, %v50_v21  ;;  %4998 = vmatmul.msk.f32.gmra.mxu1 %vm80_vm1, %v50_v21  ;;  %v61_v21 = vld [vmem:[%s10506_s0 + $0xa8] sm:$0xff] }
  0x5d   :  { %4968 = vmatmul.msk.f32.gmra.mxu0 %vm80_vm1, %v51_v30  ;;  %4999 = vmatmul.msk.f32.gmra.mxu1 %vm80_vm1, %v51_v30 }
  0x65   :  { %4969 = vmatmul.msk.f32.gmra.mxu0 %vm80_vm1, %v52_v37  ;;  %5000 = vmatmul.msk.f32.gmra.mxu1 %vm80_vm1, %v52_v37 }
  0x6d   :  { %4970 = vmatmul.msk.f32.gmra.mxu0 %vm80_vm1, %v53_v42  ;;  %5001 = vmatmul.msk.f32.gmra.mxu1 %vm80_vm1, %v53_v42 }
  0x75   :  { %4971 = vmatmul.msk.f32.gmra.mxu0 %vm80_vm1, %v54_v43  ;;  %5002 = vmatmul.msk.f32.gmra.mxu1 %vm80_vm1, %v54_v43 }
  0x7d   :  { %4972 = vmatmul.msk.f32.gmra.mxu0 %vm80_vm1, %v55_v44  ;;  %5003 = vmatmul.msk.f32.gmra.mxu1 %vm80_vm1, %v55_v44  ;;  %v588_v44 = vld [vmem:[%s10507_s3 + $0x58] sm:$0xff] }
  0x7e   :  { %1026 = vmatpush.msrb.mxu0 %v588_v44 }
  0x80   :  { %1027 = vmatpush.msrb.mxu0 %v587_v45 }
  0x82   :  { %v195_v48 = vpop.f32.mrf.mxu0  ;;  %v302_v49 = vpop.f32.mrf.mxu1 }
  0x83   :  { %v6404_v51 = vadd.f32 %v195_v48, %v6396_v46  ;;  %v303_v52 = vadd.f32 %v302_v49, %v6398_v47  ;;  %v586_v48 = vld [vmem:[%s10507_s3 + $0x48] sm:$0xff] }
  0x84   :  { %1028 = vmatpush.msrb.mxu0 %v586_v48 }
  0x85   :  { %v393_v53 = vmax.f32 %v303_v52, 0.0  ;;  %4973 = vmatmul.msk.f32.gmra.mxu0 %vm80_vm1, %v56_v50  ;;  %5004 = vmatmul.msk.f32.gmra.mxu1 %vm80_vm1, %v56_v50  ;;  %v392_v54 = vmax.f32 %v6404_v51, 0.0  ;;  %v64_v52 = vld [vmem:[%s10506_s0 + $0xc0] sm:$0xff] }
  0x87   :  { %458 = vst.msk [vmem:[#allocation2 + $0x18] sm:$0xff] %vm453_vm2, %v393_v53  ;;  %734 = vmatmul.f32.vlgmr.msra.gmra.mxu2 %v392_v54  ;;  %5043 = vmatmul.msk.f32.vlgmr.msra.gmra.mxu3 %vm453_vm2, %v393_v53 }
  0x8a   :  { %v198_v55 = vpop.f32.mrf.mxu0  ;;  %v305_v56 = vpop.f32.mrf.mxu1 }
  0x8b   :  { %v199_v58 = vadd.f32 %v198_v55, %v6396_v46  ;;  %v306_v59 = vadd.f32 %v305_v56, %v6398_v47  ;;  %v585_v56 = vld [vmem:[%s10507_s3 + $0x40] sm:$0xff] }
  0x8c   :  { %1029 = vmatpush.msrb.mxu0 %v585_v56 }
  0x8d   :  { %v395_v60 = vmax.f32 %v306_v59, 0.0  ;;  %4974 = vmatmul.msk.f32.gmra.mxu0 %vm80_vm1, %v57_v57  ;;  %5005 = vmatmul.msk.f32.gmra.mxu1 %vm80_vm1, %v57_v57  ;;  %v6421_v61 = vmax.f32 %v199_v58, 0.0  ;;  %v601_v57 = vld [vmem:[%s10507_s3 + $0xc0] sm:$0xff] }
  0x8e   :  { %1136 = vmatpush.msrb.mxu1 %v601_v57 }
  0x8f   :  { %460 = vst.msk [vmem:[#allocation2 + $0x28] sm:$0xff] %vm453_vm2, %v395_v60  ;;  %737 = vmatmul.f32.gmra.mxu2 %v6421_v61  ;;  %5044 = vmatmul.msk.f32.gmra.mxu3 %vm453_vm2, %v395_v60  ;;  %v584_v60 = vld [vmem:[%s10507_s3 + $0x38] sm:$0xff] }
  0x90   :  { %459 = vst [vmem:[#allocation2 + $0x20] sm:$0xff] %v6421_v61  ;;  %1030 = vmatpush.msrb.mxu0 %v584_v60 }
  0x92   :  { %v201_v62 = vpop.f32.mrf.mxu0  ;;  %v308_v63 = vpop.f32.mrf.mxu1 }
  0x93   :  { %v202_v1 = vadd.f32 %v201_v62, %v6396_v46  ;;  %v309_v2 = vadd.f32 %v308_v63, %v6398_v47  ;;  %v600_v62 = vld [vmem:[%s10507_s3 + $0xb8] sm:$0xff]  ;;  %v583_v63 = vld [vmem:[%s10507_s3 + $0x30] sm:$0xff] }
  0x94   :  { %1137 = vmatpush.msrb.mxu1 %v600_v62  ;;  %1031 = vmatpush.msrb.mxu0 %v583_v63 }
  0x95   :  { %v397_v3 = vmax.f32 %v309_v2, 0.0  ;;  %4975 = vmatmul.msk.f32.gmra.mxu0 %vm80_vm1, %v58_v0  ;;  %5006 = vmatmul.msk.f32.gmra.mxu1 %vm80_vm1, %v58_v0  ;;  %v6434_v4 = vmax.f32 %v202_v1, 0.0  ;;  %v599_v0 = vld [vmem:[%s10507_s3 + $0xb0] sm:$0xff]  ;;  %v582_v1 = vld [vmem:[%s10507_s3 + $0x28] sm:$0xff] }
  0x96   :  { %1138 = vmatpush.msrb.mxu1 %v599_v0  ;;  %v598_v2 = vld [vmem:[%s10507_s3 + $0xa8] sm:$0xff]  ;;  %1032 = vmatpush.msrb.mxu0 %v582_v1 }
  0x97   :  { %462 = vst.msk [vmem:[#allocation2 + $0x38] sm:$0xff] %vm453_vm2, %v397_v3  ;;  %740 = vmatmul.f32.gmra.mxu2 %v6434_v4  ;;  %5045 = vmatmul.msk.f32.gmra.mxu3 %vm453_vm2, %v397_v3 }
  0x98   :  { %461 = vst [vmem:[#allocation2 + $0x30] sm:$0xff] %v6434_v4  ;;  %1139 = vmatpush.msrb.mxu1 %v598_v2 }
  0x9a   :  { %v204_v5 = vpop.f32.mrf.mxu0  ;;  %v311_v6 = vpop.f32.mrf.mxu1 }
  0x9b   :  { %v205_v8 = vadd.f32 %v204_v5, %v6396_v46  ;;  %v312_v9 = vadd.f32 %v311_v6, %v6398_v47  ;;  %v65_v6 = vld [vmem:[%s10506_s0 + $0xc8] sm:$0xff] }
  0x9d   :  { %v399_v10 = vmax.f32 %v312_v9, 0.0  ;;  %4976 = vmatmul.msk.f32.gmra.mxu0 %vm80_vm1, %v59_v7  ;;  %5007 = vmatmul.msk.f32.gmra.mxu1 %vm80_vm1, %v59_v7  ;;  %v6447_v11 = vmax.f32 %v205_v8, 0.0  ;;  %v581_v9 = vld [vmem:[%s10507_s3 + $0x20] sm:$0xff] }
  0x9e   :  { %1033 = vmatpush.msrb.mxu0 %v581_v9  ;;  %v520_v9 = vld [vmem:[#allocation2 + $0x18] sm:$0xff] }
  0x9f   :  { %464 = vst.msk [vmem:[#allocation2 + $0x48] sm:$0xff] %vm453_vm2, %v399_v10  ;;  %743 = vmatmul.f32.gmra.mxu2 %v6447_v11  ;;  %5046 = vmatmul.msk.f32.gmra.mxu3 %vm453_vm2, %v399_v10  ;;  %v597_v10 = vld [vmem:[%s10507_s3 + $0xa0] sm:$0xff] }
  0xa0   :  { %463 = vst [vmem:[#allocation2 + $0x40] sm:$0xff] %v6447_v11  ;;  %1140 = vmatpush.msrb.mxu1 %v597_v10 }
  0xa2   :  { %v207_v12 = vpop.f32.mrf.mxu0  ;;  %v314_v13 = vpop.f32.mrf.mxu1 }
  0xa3   :  { %v208_v15 = vadd.f32 %v207_v12, %v6396_v46  ;;  %v315_v16 = vadd.f32 %v314_v13, %v6398_v47 }
  0xa5   :  { %v401_v17 = vmax.f32 %v315_v16, 0.0  ;;  %4977 = vmatmul.msk.f32.gmra.mxu0 %vm80_vm1, %v60_v14  ;;  %5008 = vmatmul.msk.f32.gmra.mxu1 %vm80_vm1, %v60_v14  ;;  %v6460_v18 = vmax.f32 %v208_v15, 0.0  ;;  %v580_v14 = vld [vmem:[%s10507_s3 + $0x18] sm:$0xff]  ;;  %v6162_v16 = vmov 0.0  }
  0xa6   :  { %v596_v15 = vld [vmem:[%s10507_s3 + $0x98] sm:$0xff]  ;;  %452 = vst [vmem:[#allocation2] sm:$0xff] %v6162_v16  ;;  %1034 = vmatpush.msrb.mxu0 %v580_v14 }
  0xa7   :  { %466 = vst.msk [vmem:[#allocation2 + $0x58] sm:$0xff] %vm453_vm2, %v401_v17  ;;  %746 = vmatmul.f32.gmra.mxu2 %v6460_v18  ;;  %5047 = vmatmul.msk.f32.gmra.mxu3 %vm453_vm2, %v401_v17  ;;  %v579_v17 = vld [vmem:[%s10507_s3 + $0x10] sm:$0xff] }
  0xa8   :  { %465 = vst [vmem:[#allocation2 + $0x50] sm:$0xff] %v6460_v18  ;;  %1141 = vmatpush.msrb.mxu1 %v596_v15  ;;  %1035 = vmatpush.msrb.mxu0 %v579_v17 }
  0xa9   :  { %454 = vst.msk [vmem:[#allocation2 + $0x8] sm:$0xff] %vm453_vm2, %v6162_v16 }
  0xaa   :  { %v210_v19 = vpop.f32.mrf.mxu0  ;;  %v317_v20 = vpop.f32.mrf.mxu1  ;;  %456 = vst.msk [vmem:[#allocation2 + $0x1f8] sm:$0xff] %vm453_vm2, %v6162_v16 }
  0xab   :  { %v211_v22 = vadd.f32 %v210_v19, %v6396_v46  ;;  %v318_v23 = vadd.f32 %v317_v20, %v6398_v47  ;;  %v595_v19 = vld [vmem:[%s10507_s3 + $0x90] sm:$0xff]  ;;  %v578_v20 = vld [vmem:[%s10507_s3 + $0x8] sm:$0xff] }
  0xac   :  { %1142 = vmatpush.msrb.mxu1 %v595_v19  ;;  %1036 = vmatpush.msrb.mxu0 %v578_v20  ;;  %v6684_v19 = vld [vmem:[#allocation2 + $0x28] sm:$0xff] }
  0xad   :  { %v403_v24 = vmax.f32 %v318_v23, 0.0  ;;  %4978 = vmatmul.msk.f32.gmra.mxu0 %vm80_vm1, %v61_v21  ;;  %5009 = vmatmul.msk.f32.gmra.mxu1 %vm80_vm1, %v61_v21  ;;  %v6473_v25 = vmax.f32 %v211_v22, 0.0  ;;  %v594_v21 = vld [vmem:[%s10507_s3 + $0x88] sm:$0xff] }
  0xae   :  { %1143 = vmatpush.msrb.mxu1 %v594_v21 }
  0xaf   :  { %468 = vst.msk [vmem:[#allocation2 + $0x68] sm:$0xff] %vm453_vm2, %v403_v24  ;;  %749 = vmatmul.f32.gmra.mxu2 %v6473_v25  ;;  %5048 = vmatmul.msk.f32.gmra.mxu3 %vm453_vm2, %v403_v24  ;;  %v66_v24 = vld [vmem:[%s10506_s0 + $0xd0] sm:$0xff] }
  0xb0   :  { %467 = vst [vmem:[#allocation2 + $0x60] sm:$0xff] %v6473_v25  ;;  %v518_v63 = vld [vmem:[#allocation2 + $0x8] sm:$0xff] }
  0xb2   :  { %v213_v26 = vpop.f32.mrf.mxu0  ;;  %v320_v27 = vpop.f32.mrf.mxu1 }
  0xb3   :  { %v214_v29 = vadd.f32 %v213_v26, %v6396_v46  ;;  %v321_v30 = vadd.f32 %v320_v27, %v6398_v47 }
  0xb5   :  { %v405_v31 = vmax.f32 %v321_v30, 0.0  ;;  %4979 = vmatmul.msk.f32.gmra.mxu0 %vm80_vm1, %v62_v28  ;;  %5010 = vmatmul.msk.f32.gmra.mxu1 %vm80_vm1, %v62_v28  ;;  %v6486_v32 = vmax.f32 %v214_v29, 0.0  ;;  %v577_v28 = vld [vmem:[%s10507_s3] sm:$0xff] }
  0xb6   :  { %v593_v29 = vld [vmem:[%s10507_s3 + $0x80] sm:$0xff]  ;;  %1037 = vmatpush.msrb.mxu0 %v577_v28 }
  0xb7   :  { %470 = vst.msk [vmem:[#allocation2 + $0x78] sm:$0xff] %vm453_vm2, %v405_v31  ;;  %752 = vmatmul.f32.gmra.mxu2 %v6486_v32  ;;  %5049 = vmatmul.msk.f32.gmra.mxu3 %vm453_vm2, %v405_v31 }
  0xb8   :  { %469 = vst [vmem:[#allocation2 + $0x70] sm:$0xff] %v6486_v32  ;;  %1144 = vmatpush.msrb.mxu1 %v593_v29 }
  0xba   :  { %v216_v36 = vpop.f32.mrf.mxu0  ;;  %v323_v37 = vpop.f32.mrf.mxu1 }
  0xbb   :  { %v217_v39 = vadd.f32 %v216_v36, %v6396_v46  ;;  %v324_v40 = vadd.f32 %v323_v37, %v6398_v47 }
  0xbd   :  { %v407_v42 = vmax.f32 %v324_v40, 0.0  ;;  %4980 = vmatmul.msk.f32.gmra.mxu0 %vm80_vm1, %v63_v38  ;;  %5011 = vmatmul.msk.f32.gmra.mxu1 %vm80_vm1, %v63_v38  ;;  %v6511_v43 = vmax.f32 %v217_v39, 0.0 }
  0xbf   :  { %472 = vst.msk [vmem:[#allocation2 + $0x88] sm:$0xff] %vm453_vm2, %v407_v42  ;;  %755 = vmatmul.f32.gmra.mxu2 %v6511_v43  ;;  %5050 = vmatmul.msk.f32.gmra.mxu3 %vm453_vm2, %v407_v42  ;;  %v68_v42 = vld [vmem:[%s10506_s0 + $0xe0] sm:$0xff] }
  0xc0   :  { %471 = vst [vmem:[#allocation2 + $0x80] sm:$0xff] %v6511_v43 }
  0xc2   :  { %v219_v49 = vpop.f32.mrf.mxu0  ;;  %v326_v50 = vpop.f32.mrf.mxu1 }
  0xc3   :  { %v220_v53 = vadd.f32 %v219_v49, %v6396_v46  ;;  %v327_v55 = vadd.f32 %v326_v50, %v6398_v47 }
  0xc5   :  { %v409_v58 = vmax.f32 %v327_v55, 0.0  ;;  %4981 = vmatmul.msk.f32.gmra.mxu0 %vm80_vm1, %v64_v52  ;;  %5012 = vmatmul.msk.f32.gmra.mxu1 %vm80_vm1, %v64_v52  ;;  %v6539_v59 = vmax.f32 %v220_v53, 0.0  ;;  %v69_v53 = vld [vmem:[%s10506_s0 + $0xe8] sm:$0xff] }
  0xc7   :  { %474 = vst.msk [vmem:[#allocation2 + $0x98] sm:$0xff] %vm453_vm2, %v409_v58  ;;  %758 = vmatmul.f32.gmra.mxu2 %v6539_v59  ;;  %5051 = vmatmul.msk.f32.gmra.mxu3 %vm453_vm2, %v409_v58 }
  0xc8   :  { %473 = vst [vmem:[#allocation2 + $0x90] sm:$0xff] %v6539_v59 }
  0xca   :  { %v222_v3 = vpop.f32.mrf.mxu0  ;;  %v329_v5 = vpop.f32.mrf.mxu1 }
  0xcb   :  { %v223_v7 = vadd.f32 %v222_v3, %v6396_v46  ;;  %v330_v8 = vadd.f32 %v329_v5, %v6398_v47 }
  0xcd   :  { %v411_v12 = vmax.f32 %v330_v8, 0.0  ;;  %4982 = vmatmul.msk.f32.gmra.mxu0 %vm80_vm1, %v65_v6  ;;  %5013 = vmatmul.msk.f32.gmra.mxu1 %vm80_vm1, %v65_v6  ;;  %v6576_v13 = vmax.f32 %v223_v7, 0.0 }
  0xcf   :  { %476 = vst.msk [vmem:[#allocation2 + $0xa8] sm:$0xff] %vm453_vm2, %v411_v12  ;;  %761 = vmatmul.f32.gmra.mxu2 %v6576_v13  ;;  %5052 = vmatmul.msk.f32.gmra.mxu3 %vm453_vm2, %v411_v12 }
  0xd0   :  { %475 = vst [vmem:[#allocation2 + $0xa0] sm:$0xff] %v6576_v13 }
  0xd2   :  { %v225_v22 = vpop.f32.mrf.mxu0  ;;  %v332_v23 = vpop.f32.mrf.mxu1 }
  0xd3   :  { %v226_v26 = vadd.f32 %v225_v22, %v6396_v46  ;;  %v333_v27 = vadd.f32 %v332_v23, %v6398_v47 }
  0xd5   :  { %v413_v30 = vmax.f32 %v333_v27, 0.0  ;;  %4983 = vmatmul.msk.f32.gmra.mxu0 %vm80_vm1, %v66_v24  ;;  %5014 = vmatmul.msk.f32.gmra.mxu1 %vm80_vm1, %v66_v24  ;;  %v6618_v31 = vmax.f32 %v226_v26, 0.0  ;;  %v6699_v27 = vld [vmem:[#allocation2 + $0x38] sm:$0xff] }
  0xd7   :  { %478 = vst.msk [vmem:[#allocation2 + $0xb8] sm:$0xff] %vm453_vm2, %v413_v30  ;;  %764 = vmatmul.f32.gmra.mxu2 %v6618_v31  ;;  %5053 = vmatmul.msk.f32.gmra.mxu3 %vm453_vm2, %v413_v30 }
  0xd8   :  { %477 = vst [vmem:[#allocation2 + $0xb0] sm:$0xff] %v6618_v31 }
  0xda   :  { %v228_v33 = vpop.f32.mrf.mxu0  ;;  %v335_v34 = vpop.f32.mrf.mxu1 }
  0xdb   :  { %v229_v36 = vadd.f32 %v228_v33, %v6396_v46  ;;  %v336_v37 = vadd.f32 %v335_v34, %v6398_v47 }
  0xdd   :  { %v415_v38 = vmax.f32 %v336_v37, 0.0  ;;  %4984 = vmatmul.msk.f32.gmra.mxu0 %vm80_vm1, %v67_v35  ;;  %5015 = vmatmul.msk.f32.gmra.mxu1 %vm80_vm1, %v67_v35  ;;  %v6631_v39 = vmax.f32 %v229_v36, 0.0 }
  0xdf   :  { %480 = vst.msk [vmem:[#allocation2 + $0xc8] sm:$0xff] %vm453_vm2, %v415_v38  ;;  %767 = vmatmul.f32.gmra.mxu2 %v6631_v39  ;;  %5054 = vmatmul.msk.f32.gmra.mxu3 %vm453_vm2, %v415_v38  ;;  %v6714_v38 = vld [vmem:[#allocation2 + $0x48] sm:$0xff] }
  0xe0   :  { %479 = vst [vmem:[#allocation2 + $0xc0] sm:$0xff] %v6631_v39 }
  0xe2   :  { %v231_v40 = vpop.f32.mrf.mxu0  ;;  %v338_v41 = vpop.f32.mrf.mxu1 }
  0xe3   :  { %v232_v44 = vadd.f32 %v231_v40, %v6396_v46  ;;  %v339_v45 = vadd.f32 %v338_v41, %v6398_v47 }
  0xe5   :  { %v417_v48 = vmax.f32 %v339_v45, 0.0  ;;  %4985 = vmatmul.msk.f32.gmra.mxu0 %vm80_vm1, %v68_v42  ;;  %5016 = vmatmul.msk.f32.gmra.mxu1 %vm80_vm1, %v68_v42  ;;  %v6644_v49 = vmax.f32 %v232_v44, 0.0 }
  0xe7   :  { %482 = vst.msk [vmem:[#allocation2 + $0xd8] sm:$0xff] %vm453_vm2, %v417_v48  ;;  %770 = vmatmul.f32.gmra.mxu2 %v6644_v49  ;;  %5055 = vmatmul.msk.f32.gmra.mxu3 %vm453_vm2, %v417_v48 }
  0xe8   :  { %481 = vst [vmem:[#allocation2 + $0xd0] sm:$0xff] %v6644_v49 }
  0xea   :  { %v234_v50 = vpop.f32.mrf.mxu0  ;;  %v341_v52 = vpop.f32.mrf.mxu1 }
  0xeb   :  { %v235_v55 = vadd.f32 %v234_v50, %v6396_v46  ;;  %v342_v56 = vadd.f32 %v341_v52, %v6398_v47 }
  0xed   :  { %v419_v57 = vmax.f32 %v342_v56, 0.0  ;;  %4986 = vmatmul.msk.f32.gmra.mxu0 %vm80_vm1, %v69_v53  ;;  %5017 = vmatmul.msk.f32.gmra.mxu1 %vm80_vm1, %v69_v53  ;;  %v6657_v58 = vmax.f32 %v235_v55, 0.0  ;;  %v6729_v53 = vld [vmem:[#allocation2 + $0x58] sm:$0xff] }
  0xef   :  { %484 = vst.msk [vmem:[#allocation2 + $0xe8] sm:$0xff] %vm453_vm2, %v419_v57  ;;  %773 = vmatmul.f32.gmra.mxu2 %v6657_v58  ;;  %5056 = vmatmul.msk.f32.gmra.mxu3 %vm453_vm2, %v419_v57 }
  0xf0   :  { %483 = vst [vmem:[#allocation2 + $0xe0] sm:$0xff] %v6657_v58 }
  0xf2   :  { %v237_v60 = vpop.f32.mrf.mxu0  ;;  %v344_v62 = vpop.f32.mrf.mxu1 }
  0xf3   :  { %v238_v0 = vadd.f32 %v237_v60, %v6396_v46  ;;  %v345_v1 = vadd.f32 %v344_v62, %v6398_v47 }
  0xf5   :  { %v421_v2 = vmax.f32 %v345_v1, 0.0  ;;  %1038 = vmatmul.f32.vlgmr.msrb.gmra.mxu0 %v6162_v16  ;;  %5073 = vmatmul.msk.f32.vlgmr.msrb.gmra.mxu1 %vm453_vm2, %v518_v63  ;;  %v6667_v3 = vmax.f32 %v238_v0, 0.0 }
  0xf7   :  { %486 = vst.msk [vmem:[#allocation2 + $0xf8] sm:$0xff] %vm453_vm2, %v421_v2  ;;  %776 = vmatmul.f32.gmra.mxu2 %v6667_v3  ;;  %5057 = vmatmul.msk.f32.gmra.mxu3 %vm453_vm2, %v421_v2  ;;  %v6744_v2 = vld [vmem:[#allocation2 + $0x68] sm:$0xff] }
  0xfa   :  { %v240_v5 = vpop.f32.mrf.mxu0  ;;  %v347_v6 = vpop.f32.mrf.mxu1 }
  0xfb   :  { %v241_v7 = vadd.f32 %v240_v5, %v6396_v46  ;;  %v348_v8 = vadd.f32 %v347_v6, %v6398_v47 }
  0xfd   :  { %v423_v10 = vmax.f32 %v348_v8, 0.0  ;;  %1041 = vmatmul.f32.gmra.mxu0 %v392_v54  ;;  %5074 = vmatmul.msk.f32.gmra.mxu1 %vm453_vm2, %v520_v9  ;;  %v6677_v12 = vmax.f32 %v241_v7, 0.0 }
  0xff   :  { %488 = vst.msk [vmem:[#allocation2 + $0x108] sm:$0xff] %vm453_vm2, %v423_v10  ;;  %779 = vmatmul.f32.gmra.mxu2 %v6677_v12  ;;  %5058 = vmatmul.msk.f32.gmra.mxu3 %vm453_vm2, %v423_v10 }
 0x102   :  { %v243_v14 = vpop.f32.mrf.mxu0  ;;  %v350_v15 = vpop.f32.mrf.mxu1 }
 0x103   :  { %v244_v16 = vadd.f32 %v243_v14, %v6396_v46  ;;  %v351_v17 = vadd.f32 %v350_v15, %v6398_v47 }
 0x105   :  { %v425_v51 = vmax.f32 %v351_v17, 0.0  ;;  %1044 = vmatmul.f32.gmra.mxu0 %v6421_v61  ;;  %5075 = vmatmul.msk.f32.gmra.mxu1 %vm453_vm2, %v6684_v19  ;;  %v6689_v54 = vmax.f32 %v244_v16, 0.0  ;;  %v6759_v16 = vld [vmem:[#allocation2 + $0x78] sm:$0xff] }
 0x107   :  { %490 = vst.msk [vmem:[#allocation2 + $0x118] sm:$0xff] %vm453_vm2, %v425_v51  ;;  %782 = vmatmul.f32.gmra.mxu2 %v6689_v54  ;;  %5059 = vmatmul.msk.f32.gmra.mxu3 %vm453_vm2, %v425_v51 }
 0x108   :  { %489 = vst [vmem:[#allocation2 + $0x110] sm:$0xff] %v6689_v54 }
 0x10a   :  { %v246_v20 = vpop.f32.mrf.mxu0  ;;  %v353_v21 = vpop.f32.mrf.mxu1 }
 0x10b   :  { %v247_v22 = vadd.f32 %v246_v20, %v6396_v46  ;;  %v354_v23 = vadd.f32 %v353_v21, %v6398_v47  ;;  %v735_v61 = vpop.f32.mrf.mxu2  ;;  %v842_v24 = vpop.f32.mrf.mxu3 }
 0x10c   :  { %v6697_v26 = vadd.f32 %v842_v24, %v735_v61 }
 0x10d   :  { %v427_v28 = vmax.f32 %v354_v23, 0.0  ;;  %1047 = vmatmul.f32.gmra.mxu0 %v6434_v4  ;;  %5076 = vmatmul.msk.f32.gmra.mxu1 %vm453_vm2, %v6699_v27  ;;  %v6704_v29 = vmax.f32 %v247_v22, 0.0 }
 0x10f   :  { %492 = vst.msk [vmem:[#allocation2 + $0x128] sm:$0xff] %vm453_vm2, %v427_v28  ;;  %785 = vmatmul.f32.gmra.mxu2 %v6704_v29  ;;  %5060 = vmatmul.msk.f32.gmra.mxu3 %vm453_vm2, %v427_v28  ;;  %v6774_v28 = vld [vmem:[#allocation2 + $0x88] sm:$0xff] }
 0x110   :  { %491 = vst [vmem:[#allocation2 + $0x120] sm:$0xff] %v6704_v29 }
 0x112   :  { %v249_v30 = vpop.f32.mrf.mxu0  ;;  %v356_v33 = vpop.f32.mrf.mxu1 }
 0x113   :  { %v250_v34 = vadd.f32 %v249_v30, %v6396_v46  ;;  %v357_v35 = vadd.f32 %v356_v33, %v6398_v47  ;;  %v738_v4 = vpop.f32.mrf.mxu2  ;;  %v845_v36 = vpop.f32.mrf.mxu3 }
 0x114   :  { %v6712_v37 = vadd.f32 %v845_v36, %v738_v4  ;;  %v5117_v4 = vld [vmem:[%s10507_s3 + $0x200] sm:$0xff] }
 0x115   :  { %v429_v40 = vmax.f32 %v357_v35, 0.0  ;;  %1050 = vmatmul.f32.gmra.mxu0 %v6447_v11  ;;  %5077 = vmatmul.msk.f32.gmra.mxu1 %vm453_vm2, %v6714_v38  ;;  %v6719_v41 = vmax.f32 %v250_v34, 0.0  ;;  %v5118_v34 = vld [vmem:[%s10507_s3 + $0x208] sm:$0xff] }
 0x116   :  { %1412 = vmatpush.msrb.mxu3 %v5118_v34 }
 0x117   :  { %494 = vst.msk [vmem:[#allocation2 + $0x138] sm:$0xff] %vm453_vm2, %v429_v40  ;;  %788 = vmatmul.f32.gmra.mxu2 %v6719_v41  ;;  %5061 = vmatmul.msk.f32.gmra.mxu3 %vm453_vm2, %v429_v40 }
 0x118   :  { %493 = vst [vmem:[#allocation2 + $0x130] sm:$0xff] %v6719_v41  ;;  %1413 = vmatpush.msrb.mxu3 %v5117_v4 }
 0x11a   :  { %v252_v42 = vpop.f32.mrf.mxu0  ;;  %v359_v44 = vpop.f32.mrf.mxu1 }
 0x11b   :  { %v253_v45 = vadd.f32 %v252_v42, %v6396_v46  ;;  %v360_v48 = vadd.f32 %v359_v44, %v6398_v47  ;;  %v741_v11 = vpop.f32.mrf.mxu2  ;;  %v848_v50 = vpop.f32.mrf.mxu3 }
 0x11c   :  { %v6727_v52 = vadd.f32 %v848_v50, %v741_v11  ;;  %v5116_v11 = vld [vmem:[%s10507_s3 + $0x1f8] sm:$0xff] }
 0x11d   :  { %v431_v55 = vmax.f32 %v360_v48, 0.0  ;;  %1053 = vmatmul.f32.gmra.mxu0 %v6460_v18  ;;  %5078 = vmatmul.msk.f32.gmra.mxu1 %vm453_vm2, %v6729_v53  ;;  %v6734_v56 = vmax.f32 %v253_v45, 0.0  ;;  %v6795_v48 = vld [vmem:[#allocation2 + $0x98] sm:$0xff] }
 0x11e   :  { %1414 = vmatpush.msrb.mxu3 %v5116_v11 }
 0x11f   :  { %496 = vst.msk [vmem:[#allocation2 + $0x148] sm:$0xff] %vm453_vm2, %v431_v55  ;;  %791 = vmatmul.f32.gmra.mxu2 %v6734_v56  ;;  %5062 = vmatmul.msk.f32.gmra.mxu3 %vm453_vm2, %v431_v55 }
 0x120   :  { %495 = vst [vmem:[#allocation2 + $0x140] sm:$0xff] %v6734_v56 }
 0x122   :  { %v255_v57 = vpop.f32.mrf.mxu0  ;;  %v362_v60 = vpop.f32.mrf.mxu1 }
 0x123   :  { %v256_v62 = vadd.f32 %v255_v57, %v6396_v46  ;;  %v363_v63 = vadd.f32 %v362_v60, %v6398_v47  ;;  %v744_v18 = vpop.f32.mrf.mxu2  ;;  %v851_v0 = vpop.f32.mrf.mxu3  ;;  %v5115_v57 = vld [vmem:[%s10507_s3 + $0x1f0] sm:$0xff] }
 0x124   :  { %v6742_v1 = vadd.f32 %v851_v0, %v744_v18  ;;  %1415 = vmatpush.msrb.mxu3 %v5115_v57  ;;  %v5123_v57 = vld [vmem:[%s10507_s3 + $0x230] sm:$0xff] }
 0x125   :  { %v433_v5 = vmax.f32 %v363_v63, 0.0  ;;  %1056 = vmatmul.f32.gmra.mxu0 %v6473_v25  ;;  %5079 = vmatmul.msk.f32.gmra.mxu1 %vm453_vm2, %v6744_v2  ;;  %v6749_v6 = vmax.f32 %v256_v62, 0.0  ;;  %v5113_v63 = vld [vmem:[%s10507_s3 + $0x1e0] sm:$0xff] }
 0x127   :  { %498 = vst.msk [vmem:[#allocation2 + $0x158] sm:$0xff] %vm453_vm2, %v433_v5  ;;  %794 = vmatmul.f32.gmra.mxu2 %v6749_v6  ;;  %5063 = vmatmul.msk.f32.gmra.mxu3 %vm453_vm2, %v433_v5 }
 0x128   :  { %497 = vst [vmem:[#allocation2 + $0x150] sm:$0xff] %v6749_v6 }
 0x12a   :  { %v258_v7 = vpop.f32.mrf.mxu0  ;;  %v365_v8 = vpop.f32.mrf.mxu1 }
 0x12b   :  { %v259_v9 = vadd.f32 %v258_v7, %v6396_v46  ;;  %v366_v10 = vadd.f32 %v365_v8, %v6398_v47  ;;  %v747_v25 = vpop.f32.mrf.mxu2  ;;  %v854_v14 = vpop.f32.mrf.mxu3 }
 0x12c   :  { %v6757_v15 = vadd.f32 %v854_v14, %v747_v25 }
 0x12d   :  { %v435_v17 = vmax.f32 %v366_v10, 0.0  ;;  %1059 = vmatmul.f32.gmra.mxu0 %v6486_v32  ;;  %5080 = vmatmul.msk.f32.gmra.mxu1 %vm453_vm2, %v6759_v16  ;;  %v6764_v51 = vmax.f32 %v259_v9, 0.0  ;;  %v6822_v9 = vld [vmem:[#allocation2 + $0xa8] sm:$0xff]  ;;  %v5112_v10 = vld [vmem:[%s10507_s3 + $0x1d8] sm:$0xff] }
 0x12f   :  { %500 = vst.msk [vmem:[#allocation2 + $0x168] sm:$0xff] %vm453_vm2, %v435_v17  ;;  %797 = vmatmul.f32.gmra.mxu2 %v6764_v51  ;;  %5064 = vmatmul.msk.f32.gmra.mxu3 %vm453_vm2, %v435_v17  ;;  %v5111_v17 = vld [vmem:[%s10507_s3 + $0x1d0] sm:$0xff] }
 0x130   :  { %499 = vst [vmem:[#allocation2 + $0x160] sm:$0xff] %v6764_v51 }
 0x132   :  { %v261_v20 = vpop.f32.mrf.mxu0  ;;  %v368_v21 = vpop.f32.mrf.mxu1 }
 0x133   :  { %v262_v22 = vadd.f32 %v261_v20, %v6396_v46  ;;  %v369_v23 = vadd.f32 %v368_v21, %v6398_v47  ;;  %v750_v32 = vpop.f32.mrf.mxu2  ;;  %v857_v61 = vpop.f32.mrf.mxu3  ;;  %v5127_v20 = vld [vmem:[%s10507_s3 + $0x250] sm:$0xff]  ;;  %v5126_v21 = vld [vmem:[%s10507_s3 + $0x248] sm:$0xff] }
 0x134   :  { %v6772_v24 = vadd.f32 %v857_v61, %v750_v32  ;;  %1526 = vmatpush.msrb.mxu2 %v5127_v20  ;;  %v5109_v32 = vld [vmem:[%s10507_s3 + $0x1c0] sm:$0xff]  ;;  %v5104_v20 = vld [vmem:[%s10507_s3 + $0x198] sm:$0xff] }
 0x135   :  { %v437_v30 = vmax.f32 %v369_v23, 0.0  ;;  %1062 = vmatmul.f32.gmra.mxu0 %v6511_v43  ;;  %5081 = vmatmul.msk.f32.gmra.mxu1 %vm453_vm2, %v6774_v28  ;;  %v6779_v33 = vmax.f32 %v262_v22, 0.0  ;;  %v5125_v61 = vld [vmem:[%s10507_s3 + $0x240] sm:$0xff] }
 0x136   :  { %1527 = vmatpush.msrb.mxu2 %v5126_v21 }
 0x137   :  { %502 = vst.msk [vmem:[#allocation2 + $0x178] sm:$0xff] %vm453_vm2, %v437_v30  ;;  %800 = vmatmul.f32.gmra.mxu2 %v6779_v33  ;;  %5065 = vmatmul.msk.f32.gmra.mxu3 %vm453_vm2, %v437_v30 }
 0x138   :  { %501 = vst [vmem:[#allocation2 + $0x170] sm:$0xff] %v6779_v33  ;;  %1528 = vmatpush.msrb.mxu2 %v5125_v61 }
 0x13a   :  { %v264_v35 = vpop.f32.mrf.mxu0  ;;  %v371_v43 = vpop.f32.mrf.mxu1 }
 0x13b   :  { %v265_v36 = vadd.f32 %v264_v35, %v6396_v46  ;;  %v372_v40 = vadd.f32 %v371_v43, %v6398_v47  ;;  %v753_v42 = vpop.f32.mrf.mxu2  ;;  %v860_v44 = vpop.f32.mrf.mxu3 }
 0x13c   :  { %v6793_v45 = vadd.f32 %v860_v44, %v753_v42  ;;  %v5124_v42 = vld [vmem:[%s10507_s3 + $0x238] sm:$0xff] }
 0x13d   :  { %v439_v50 = vmax.f32 %v372_v40, 0.0  ;;  %1065 = vmatmul.f32.gmra.mxu0 %v6539_v59  ;;  %5082 = vmatmul.msk.f32.gmra.mxu1 %vm453_vm2, %v6795_v48  ;;  %v6803_v55 = vmax.f32 %v265_v36, 0.0  ;;  %v5114_v59 = vld [vmem:[%s10507_s3 + $0x1e8] sm:$0xff]  ;;  %v6858_v36 = vld [vmem:[#allocation2 + $0xb8] sm:$0xff] }
 0x13e   :  { %1416 = vmatpush.msrb.mxu3 %v5114_v59  ;;  %v5108_v40 = vld [vmem:[%s10507_s3 + $0x1b8] sm:$0xff]  ;;  %1529 = vmatpush.msrb.mxu2 %v5124_v42  ;;  %v5122_v59 = vld [vmem:[%s10507_s3 + $0x228] sm:$0xff] }
 0x13f   :  { %504 = vst.msk [vmem:[#allocation2 + $0x188] sm:$0xff] %vm453_vm2, %v439_v50  ;;  %803 = vmatmul.f32.gmra.mxu2 %v6803_v55  ;;  %5066 = vmatmul.msk.f32.gmra.mxu3 %vm453_vm2, %v439_v50  ;;  %v5107_v50 = vld [vmem:[%s10507_s3 + $0x1b0] sm:$0xff]  ;;  %v6924_v42 = vld [vmem:[#allocation2 + $0xd8] sm:$0xff] }
 0x140   :  { %503 = vst [vmem:[#allocation2 + $0x180] sm:$0xff] %v6803_v55  ;;  %1417 = vmatpush.msrb.mxu3 %v5113_v63  ;;  %1530 = vmatpush.msrb.mxu2 %v5123_v57  ;;  %v5105_v63 = vld [vmem:[%s10507_s3 + $0x1a0] sm:$0xff] }
 0x142   :  { %v267_v60 = vpop.f32.mrf.mxu0  ;;  %v374_v62 = vpop.f32.mrf.mxu1  ;;  %1418 = vmatpush.msrb.mxu3 %v5112_v10  ;;  %1531 = vmatpush.msrb.mxu2 %v5122_v59 }
 0x143   :  { %v268_v18 = vadd.f32 %v267_v60, %v6396_v46  ;;  %v375_v0 = vadd.f32 %v374_v62, %v6398_v47  ;;  %v756_v5 = vpop.f32.mrf.mxu2  ;;  %v863_v7 = vpop.f32.mrf.mxu3 }
 0x144   :  { %v6820_v8 = vadd.f32 %v863_v7, %v756_v5  ;;  %1419 = vmatpush.msrb.mxu3 %v5111_v17  ;;  %v6897_v17 = vld [vmem:[#allocation2 + $0xc8] sm:$0xff] }
 0x145   :  { %v6827_v25 = vmax.f32 %v268_v18, 0.0  ;;  %v441_v14 = vmax.f32 %v375_v0, 0.0  ;;  %1068 = vmatmul.f32.gmra.mxu0 %v6576_v13  ;;  %5083 = vmatmul.msk.f32.gmra.mxu1 %vm453_vm2, %v6822_v9  ;;  %v5110_v13 = vld [vmem:[%s10507_s3 + $0x1c8] sm:$0xff]  ;;  %v5121_v18 = vld [vmem:[%s10507_s3 + $0x220] sm:$0xff] }
 0x146   :  { %1420 = vmatpush.msrb.mxu3 %v5110_v13  ;;  %1532 = vmatpush.msrb.mxu2 %v5121_v18  ;;  %v5120_v13 = vld [vmem:[%s10507_s3 + $0x218] sm:$0xff]  ;;  %v6939_v18 = vld [vmem:[#allocation2 + $0xe8] sm:$0xff] }
 0x147   :  { %505 = vst [vmem:[#allocation2 + $0x190] sm:$0xff] %v6827_v25  ;;  %806 = vmatmul.f32.gmra.mxu2 %v6827_v25  ;;  %5067 = vmatmul.msk.f32.gmra.mxu3 %vm453_vm2, %v441_v14 }
 0x148   :  { %506 = vst.msk [vmem:[#allocation2 + $0x198] sm:$0xff] %vm453_vm2, %v441_v14  ;;  %1421 = vmatpush.msrb.mxu3 %v5109_v32  ;;  %v5119_v32 = vld [vmem:[%s10507_s3 + $0x210] sm:$0xff]  ;;  %1533 = vmatpush.msrb.mxu2 %v5120_v13 }
 0x14a   :  { %v270_v22 = vpop.f32.mrf.mxu0  ;;  %v377_v23 = vpop.f32.mrf.mxu1  ;;  %1422 = vmatpush.msrb.mxu3 %v5108_v40  ;;  %1534 = vmatpush.msrb.mxu2 %v5119_v32  ;;  %v6954_v32 = vld [vmem:[#allocation2 + $0xf8] sm:$0xff] }
 0x14b   :  { %v271_v30 = vadd.f32 %v270_v22, %v6396_v46  ;;  %v378_v34 = vadd.f32 %v377_v23, %v6398_v47  ;;  %v759_v35 = vpop.f32.mrf.mxu2  ;;  %v866_v43 = vpop.f32.mrf.mxu3  ;;  %v5103_v23 = vld [vmem:[%s10507_s3 + $0x190] sm:$0xff] }
 0x14c   :  { %v6856_v4 = vadd.f32 %v866_v43, %v759_v35  ;;  %1423 = vmatpush.msrb.mxu3 %v5107_v50 }
 0x14d   :  { %v6866_v44 = vmax.f32 %v271_v30, 0.0  ;;  %v443_v11 = vmax.f32 %v378_v34, 0.0  ;;  %1071 = vmatmul.f32.gmra.mxu0 %v6618_v31  ;;  %5084 = vmatmul.msk.f32.gmra.mxu1 %vm453_vm2, %v6858_v36  ;;  %v5106_v31 = vld [vmem:[%s10507_s3 + $0x1a8] sm:$0xff] }
 0x14e   :  { %1424 = vmatpush.msrb.mxu3 %v5106_v31 }
 0x14f   :  { %507 = vst [vmem:[#allocation2 + $0x1a0] sm:$0xff] %v6866_v44  ;;  %809 = vmatmul.f32.gmra.mxu2 %v6866_v44  ;;  %5068 = vmatmul.msk.f32.gmra.mxu3 %vm453_vm2, %v443_v11 }
 0x150   :  { %508 = vst.msk [vmem:[#allocation2 + $0x1a8] sm:$0xff] %vm453_vm2, %v443_v11  ;;  %1425 = vmatpush.msrb.mxu3 %v5105_v63 }
 0x152   :  { %v273_v60 = vpop.f32.mrf.mxu0  ;;  %v380_v62 = vpop.f32.mrf.mxu1  ;;  %1426 = vmatpush.msrb.mxu3 %v5104_v20 }
 0x153   :  { %v274_v0 = vadd.f32 %v273_v60, %v6396_v46  ;;  %v381_v5 = vadd.f32 %v380_v62, %v6398_v47  ;;  %v762_v7 = vpop.f32.mrf.mxu2  ;;  %v869_v10 = vpop.f32.mrf.mxu3 }
 0x154   :  { %v6895_v14 = vadd.f32 %v869_v10, %v762_v7  ;;  %1427 = vmatpush.msrb.mxu3 %v5103_v23 }
 0x155   :  { %v6905_v21 = vmax.f32 %v274_v0, 0.0  ;;  %v445_v22 = vmax.f32 %v381_v5, 0.0  ;;  %1074 = vmatmul.f32.gmra.mxu0 %v6631_v39  ;;  %5085 = vmatmul.msk.f32.gmra.mxu1 %vm453_vm2, %v6897_v17 }
 0x157   :  { %509 = vst [vmem:[#allocation2 + $0x1b0] sm:$0xff] %v6905_v21  ;;  %812 = vmatmul.f32.gmra.mxu2 %v6905_v21  ;;  %5069 = vmatmul.msk.f32.gmra.mxu3 %vm453_vm2, %v445_v22 }
 0x158   :  { %510 = vst.msk [vmem:[#allocation2 + $0x1b8] sm:$0xff] %vm453_vm2, %v445_v22 }
 0x15a   :  { %v276_v39 = vpop.f32.mrf.mxu0  ;;  %v383_v61 = vpop.f32.mrf.mxu1 }
 0x15b   :  { %v277_v30 = vadd.f32 %v276_v39, %v6396_v46  ;;  %v384_v34 = vadd.f32 %v383_v61, %v6398_v47  ;;  %v765_v35 = vpop.f32.mrf.mxu2  ;;  %v872_v43 = vpop.f32.mrf.mxu3 }
 0x15c   :  { %v6922_v40 = vadd.f32 %v872_v43, %v765_v35 }
 0x15d   :  { %v6926_v11 = vmax.f32 %v277_v30, 0.0  ;;  %v447_v50 = vmax.f32 %v384_v34, 0.0  ;;  %1077 = vmatmul.f32.gmra.mxu0 %v6644_v49  ;;  %5086 = vmatmul.msk.f32.gmra.mxu1 %vm453_vm2, %v6924_v42 }
 0x15f   :  { %511 = vst [vmem:[#allocation2 + $0x1c0] sm:$0xff] %v6926_v11  ;;  %815 = vmatmul.f32.gmra.mxu2 %v6926_v11  ;;  %5070 = vmatmul.msk.f32.gmra.mxu3 %vm453_vm2, %v447_v50 }
 0x160   :  { %512 = vst.msk [vmem:[#allocation2 + $0x1c8] sm:$0xff] %vm453_vm2, %v447_v50  ;;  %v6964_v50 = vld [vmem:[#allocation2 + $0x108] sm:$0xff] }
 0x162   :  { %v279_v57 = vpop.f32.mrf.mxu0  ;;  %v386_v31 = vpop.f32.mrf.mxu1 }
 0x163   :  { %v280_v59 = vadd.f32 %v279_v57, %v6396_v46  ;;  %v387_v60 = vadd.f32 %v386_v31, %v6398_v47  ;;  %v768_v62 = vpop.f32.mrf.mxu2  ;;  %v875_v63 = vpop.f32.mrf.mxu3  ;;  %v1236_v31 = vld [vmem:[#allocation2 + $0x20] sm:$0xff] }
 0x164   :  { %v6937_v49 = vadd.f32 %v875_v63, %v768_v62 }
 0x165   :  { %v6941_v0 = vmax.f32 %v280_v59, 0.0  ;;  %v449_v5 = vmax.f32 %v387_v60, 0.0  ;;  %1080 = vmatmul.f32.gmra.mxu0 %v6657_v58  ;;  %5087 = vmatmul.msk.f32.gmra.mxu1 %vm453_vm2, %v6939_v18 }
 0x167   :  { %513 = vst [vmem:[#allocation2 + $0x1d0] sm:$0xff] %v6941_v0  ;;  %818 = vmatmul.f32.gmra.mxu2 %v6941_v0  ;;  %5071 = vmatmul.msk.f32.gmra.mxu3 %vm453_vm2, %v449_v5 }
 0x168   :  { %514 = vst.msk [vmem:[#allocation2 + $0x1d8] sm:$0xff] %vm453_vm2, %v449_v5 }
 0x16a   :  { %v282_v7 = vpop.f32.mrf.mxu0  ;;  %v389_v10 = vpop.f32.mrf.mxu1 }
 0x16b   :  { %v283_v20 = vadd.f32 %v282_v7, %v6396_v46  ;;  %v390_v13 = vadd.f32 %v389_v10, %v6398_v47  ;;  %v771_v22 = vpop.f32.mrf.mxu2  ;;  %v878_v23 = vpop.f32.mrf.mxu3  ;;  %v6976_v7 = vld [vmem:[#allocation2 + $0x118] sm:$0xff] }
 0x16c   :  { %v6952_v58 = vadd.f32 %v878_v23, %v771_v22 }
 0x16d   :  { %v450_v39 = vmax.f32 %v283_v20, 0.0  ;;  %v451_v61 = vmax.f32 %v390_v13, 0.0  ;;  %1083 = vmatmul.f32.gmra.mxu0 %v6667_v3  ;;  %5088 = vmatmul.msk.f32.gmra.mxu1 %vm453_vm2, %v6954_v32  ;;  %v1238_v20 = vld [vmem:[#allocation2 + $0x30] sm:$0xff] }
 0x16f   :  { %515 = vst [vmem:[#allocation2 + $0x1e0] sm:$0xff] %v450_v39  ;;  %821 = vmatmul.f32.gmra.mxu2 %v450_v39  ;;  %5072 = vmatmul.msk.f32.gmra.mxu3 %vm453_vm2, %v451_v61 }
 0x170   :  { %516 = vst.msk [vmem:[#allocation2 + $0x1e8] sm:$0xff] %vm453_vm2, %v451_v61  ;;  %v6988_v61 = vld [vmem:[#allocation2 + $0x128] sm:$0xff] }
 0x172   :  { %v1039_v46 = vpop.f32.mrf.mxu0  ;;  %v1146_v47 = vpop.f32.mrf.mxu1 }
 0x173   :  { %v774_v30 = vpop.f32.mrf.mxu2  ;;  %v881_v34 = vpop.f32.mrf.mxu3  ;;  %v1040_v35 = vadd.f32 %v1039_v46, %v6697_v26 }
 0x174   :  { %v6962_v43 = vadd.f32 %v881_v34, %v774_v30 }
 0x175   :  { %v6966_v57 = vadd.f32 %v1146_v47, %v1040_v35  ;;  %1086 = vmatmul.f32.gmra.mxu0 %v6677_v12  ;;  %5089 = vmatmul.msk.f32.gmra.mxu1 %vm453_vm2, %v6964_v50 }
 0x177   :  { %1428 = vmatmul.f32.vlgmr.msrb.gmra.mxu3 %v1236_v31  ;;  %5128 = vmatmul.msk.f32.vlgmr.msrb.gmra.mxu2 %vm453_vm2, %v6684_v19  ;;  %v7000_v31 = vld [vmem:[#allocation2 + $0x138] sm:$0xff] }
 0x17a   :  { %v1042_v59 = vpop.f32.mrf.mxu0  ;;  %v1149_v60 = vpop.f32.mrf.mxu1 }
 0x17b   :  { %v777_v62 = vpop.f32.mrf.mxu2  ;;  %v884_v26 = vpop.f32.mrf.mxu3  ;;  %v1043_v63 = vadd.f32 %v1042_v59, %v6712_v37 }
 0x17c   :  { %v6974_v5 = vadd.f32 %v884_v26, %v777_v62 }
 0x17d   :  { %v6978_v10 = vadd.f32 %v1149_v60, %v1043_v63  ;;  %1089 = vmatmul.f32.gmra.mxu0 %v6689_v54  ;;  %5090 = vmatmul.msk.f32.gmra.mxu1 %vm453_vm2, %v6976_v7  ;;  %v1240_v54 = vld [vmem:[#allocation2 + $0x40] sm:$0xff] }
 0x17f   :  { %1431 = vmatmul.f32.gmra.mxu3 %v1238_v20  ;;  %5129 = vmatmul.msk.f32.gmra.mxu2 %vm453_vm2, %v6699_v27  ;;  %v7012_v20 = vld [vmem:[#allocation2 + $0x148] sm:$0xff] }
 0x182   :  { %v1045_v19 = vpop.f32.mrf.mxu0  ;;  %v1152_v13 = vpop.f32.mrf.mxu1 }
 0x183   :  { %v780_v22 = vpop.f32.mrf.mxu2  ;;  %v887_v37 = vpop.f32.mrf.mxu3  ;;  %v1046_v23 = vadd.f32 %v1045_v19, %v6727_v52 }
 0x184   :  { %v6986_v39 = vadd.f32 %v887_v37, %v780_v22 }
 0x185   :  { %v6990_v46 = vadd.f32 %v1152_v13, %v1046_v23  ;;  %1092 = vmatmul.f32.gmra.mxu0 %v6704_v29  ;;  %5091 = vmatmul.msk.f32.gmra.mxu1 %vm453_vm2, %v6988_v61  ;;  %v1242_v29 = vld [vmem:[#allocation2 + $0x50] sm:$0xff] }
 0x187   :  { %1434 = vmatmul.f32.gmra.mxu3 %v1240_v54  ;;  %5130 = vmatmul.msk.f32.gmra.mxu2 %vm453_vm2, %v6714_v38  ;;  %v7024_v54 = vld [vmem:[#allocation2 + $0x158] sm:$0xff] }
 0x18a   :  { %v1048_v27 = vpop.f32.mrf.mxu0  ;;  %v1155_v47 = vpop.f32.mrf.mxu1 }
 0x18b   :  { %v783_v30 = vpop.f32.mrf.mxu2  ;;  %v890_v52 = vpop.f32.mrf.mxu3  ;;  %v1049_v34 = vadd.f32 %v1048_v27, %v6742_v1 }
 0x18c   :  { %v6998_v35 = vadd.f32 %v890_v52, %v783_v30 }
 0x18d   :  { %v7002_v59 = vadd.f32 %v1155_v47, %v1049_v34  ;;  %1095 = vmatmul.f32.gmra.mxu0 %v6719_v41  ;;  %5092 = vmatmul.msk.f32.gmra.mxu1 %vm453_vm2, %v7000_v31  ;;  %v1244_v41 = vld [vmem:[#allocation2 + $0x60] sm:$0xff] }
 0x18f   :  { %1437 = vmatmul.f32.gmra.mxu3 %v1242_v29  ;;  %5131 = vmatmul.msk.f32.gmra.mxu2 %vm453_vm2, %v6729_v53  ;;  %v7036_v29 = vld [vmem:[#allocation2 + $0x168] sm:$0xff] }
 0x192   :  { %v1051_v38 = vpop.f32.mrf.mxu0  ;;  %v1158_v60 = vpop.f32.mrf.mxu1 }
 0x193   :  { %v786_v62 = vpop.f32.mrf.mxu2  ;;  %v893_v1 = vpop.f32.mrf.mxu3  ;;  %v1052_v26 = vadd.f32 %v1051_v38, %v6757_v15 }
 0x194   :  { %v7010_v63 = vadd.f32 %v893_v1, %v786_v62  ;;  %v7047_v62 = vld [vmem:[#allocation2 + $0x178] sm:$0xff] }
 0x195   :  { %v7014_v19 = vadd.f32 %v1158_v60, %v1052_v26  ;;  %1098 = vmatmul.f32.gmra.mxu0 %v6734_v56  ;;  %5093 = vmatmul.msk.f32.gmra.mxu1 %vm453_vm2, %v7012_v20  ;;  %v1246_v56 = vld [vmem:[#allocation2 + $0x70] sm:$0xff] }
 0x197   :  { %1440 = vmatmul.f32.gmra.mxu3 %v1244_v41  ;;  %5132 = vmatmul.msk.f32.gmra.mxu2 %vm453_vm2, %v6744_v2 }
 0x19a   :  { %v1054_v53 = vpop.f32.mrf.mxu0  ;;  %v1161_v13 = vpop.f32.mrf.mxu1 }
 0x19b   :  { %v789_v22 = vpop.f32.mrf.mxu2  ;;  %v896_v15 = vpop.f32.mrf.mxu3  ;;  %v1055_v37 = vadd.f32 %v1054_v53, %v6772_v24 }
 0x19c   :  { %v7022_v23 = vadd.f32 %v896_v15, %v789_v22 }
 0x19d   :  { %v7026_v27 = vadd.f32 %v1161_v13, %v1055_v37  ;;  %1101 = vmatmul.f32.gmra.mxu0 %v6749_v6  ;;  %5094 = vmatmul.msk.f32.gmra.mxu1 %vm453_vm2, %v7024_v54  ;;  %v1248_v6 = vld [vmem:[#allocation2 + $0x80] sm:$0xff] }
 0x19f   :  { %1443 = vmatmul.f32.gmra.mxu3 %v1246_v56  ;;  %5133 = vmatmul.msk.f32.gmra.mxu2 %vm453_vm2, %v6759_v16 }
 0x1a2   :  { %v1057_v2 = vpop.f32.mrf.mxu0  ;;  %v1164_v34 = vpop.f32.mrf.mxu1 }
 0x1a3   :  { %v792_v47 = vpop.f32.mrf.mxu2  ;;  %v899_v30 = vpop.f32.mrf.mxu3  ;;  %v1058_v24 = vadd.f32 %v1057_v2, %v6793_v45  ;;  %v1795_v2 = vld [vmem:[%s10510_s5 + $0x60] sm:$0xf] }
 0x1a4   :  { %v7034_v52 = vadd.f32 %v899_v30, %v792_v47  ;;  %5202 = vmatpush.msk.msra.mxu1 %vm171_vm0, %v1795_v2 }
 0x1a5   :  { %v7038_v38 = vadd.f32 %v1164_v34, %v1058_v24  ;;  %1104 = vmatmul.f32.gmra.mxu0 %v6764_v51  ;;  %5095 = vmatmul.msk.f32.gmra.mxu1 %vm453_vm2, %v7036_v29  ;;  %v1250_v51 = vld [vmem:[#allocation2 + $0x90] sm:$0xff]  ;;  %v7091_v24 = vld [vmem:[#allocation2 + $0x1b8] sm:$0xff] }
 0x1a6   :  { %v1794_v34 = vld [vmem:[%s10510_s5 + $0x58] sm:$0xff] }
 0x1a7   :  { %1446 = vmatmul.f32.gmra.mxu3 %v1248_v6  ;;  %5134 = vmatmul.msk.f32.gmra.mxu2 %vm453_vm2, %v6774_v28  ;;  %v7056_v28 = vld [vmem:[#allocation2 + $0x188] sm:$0xff]  ;;  %v5168_v6 = vld [vmem:[%s10510_s5 + $0xb8] sm:$0xff] }
 0x1a8   :  { %2107 = vmatpush.msra.mxu1 %v1794_v34 }
 0x1aa   :  { %v7143_v2 = vpop.f32.mrf.mxu1 }
 0x1ab   :  { %v795_v16 = vpop.f32.mrf.mxu2  ;;  %v902_v60 = vpop.f32.mrf.mxu3 }
 0x1ac   :  { %v7045_v45 = vadd.f32 %v902_v60, %v795_v16  ;;  %v1793_v16 = vld [vmem:[%s10510_s5 + $0x50] sm:$0xff] }
 0x1ad   :  { %1107 = vmatmul.f32.gmra.mxu0 %v6779_v33  ;;  %5096 = vmatmul.msk.f32.gmra.mxu1 %vm453_vm2, %v7047_v62  ;;  %v1252_v33 = vld [vmem:[#allocation2 + $0xa0] sm:$0xff]  ;;  %v1258_v60 = vld [vmem:[#allocation2 + $0xd0] sm:$0xff] }
 0x1ae   :  { %2108 = vmatpush.msra.mxu1 %v1793_v16 }
 0x1af   :  { %1449 = vmatmul.f32.gmra.mxu3 %v1250_v51  ;;  %5135 = vmatmul.msk.f32.gmra.mxu2 %vm453_vm2, %v6795_v48  ;;  %v7065_v48 = vld [vmem:[#allocation2 + $0x198] sm:$0xff]  ;;  %v1792_v51 = vld [vmem:[%s10510_s5 + $0x48] sm:$0xff] }
 0x1b0   :  { %2109 = vmatpush.msra.mxu1 %v1792_v51  ;;  %v5161_v51 = vld [vmem:[%s10510_s5 + $0x80] sm:$0xff] }
 0x1b3   :  { %v798_v1 = vpop.f32.mrf.mxu2  ;;  %v905_v26 = vpop.f32.mrf.mxu3 }
 0x1b4   :  { %v7054_v41 = vadd.f32 %v905_v26, %v798_v1  ;;  %v5166_v1 = vld [vmem:[%s10510_s5 + $0xa8] sm:$0xff] }
 0x1b5   :  { %1110 = vmatmul.f32.gmra.mxu0 %v6803_v55  ;;  %5097 = vmatmul.msk.f32.gmra.mxu1 %vm453_vm2, %v7056_v28  ;;  %v1254_v55 = vld [vmem:[#allocation2 + $0xb0] sm:$0xff] }
 0x1b7   :  { %1452 = vmatmul.f32.gmra.mxu3 %v1252_v33  ;;  %5136 = vmatmul.msk.f32.gmra.mxu2 %vm453_vm2, %v6822_v9  ;;  %v7074_v9 = vld [vmem:[#allocation2 + $0x1a8] sm:$0xff] }
 0x1bb   :  { %v801_v53 = vpop.f32.mrf.mxu2  ;;  %v908_v13 = vpop.f32.mrf.mxu3 }
 0x1bc   :  { %v7063_v22 = vadd.f32 %v908_v13, %v801_v53  ;;  %v7124_v13 = vld [vmem:[#allocation2 + $0x1c8] sm:$0xff] }
 0x1bd   :  { %1113 = vmatmul.f32.gmra.mxu0 %v6827_v25  ;;  %5098 = vmatmul.msk.f32.gmra.mxu1 %vm453_vm2, %v7065_v48  ;;  %v1256_v25 = vld [vmem:[#allocation2 + $0xc0] sm:$0xff] }
 0x1bf   :  { %1455 = vmatmul.f32.gmra.mxu3 %v1254_v55  ;;  %5137 = vmatmul.msk.f32.gmra.mxu2 %vm453_vm2, %v6858_v36  ;;  %v5170_v36 = vld [vmem:[%s10510_s5 + $0xc8] sm:$0xf]  ;;  %v5165_v55 = vld [vmem:[%s10510_s5 + $0xa0] sm:$0xff] }
 0x1c0   :  { %5171 = vmatpush.msk.msra.mxu0 %vm171_vm0, %v5170_v36  ;;  %v7141_v36 = vpop.f32.mrf.mxu0 }
 0x1c3   :  { %v804_v15 = vpop.f32.mrf.mxu2  ;;  %v911_v37 = vpop.f32.mrf.mxu3 }
 0x1c4   :  { %v7072_v56 = vadd.f32 %v911_v37, %v804_v15  ;;  %v1790_v15 = vld [vmem:[%s10510_s5 + $0x38] sm:$0xff] }
 0x1c5   :  { %1116 = vmatmul.f32.gmra.mxu0 %v6866_v44  ;;  %5099 = vmatmul.msk.f32.gmra.mxu1 %vm453_vm2, %v7074_v9  ;;  %v5164_v37 = vld [vmem:[%s10510_s5 + $0x98] sm:$0xff] }
 0x1c7   :  { %1458 = vmatmul.f32.gmra.mxu3 %v1256_v25  ;;  %5138 = vmatmul.msk.f32.gmra.mxu2 %vm453_vm2, %v6897_v17  ;;  %v5169_v17 = vld [vmem:[%s10510_s5 + $0xc0] sm:$0xff]  ;;  %v1789_v25 = vld [vmem:[%s10510_s5 + $0x30] sm:$0xff] }
 0x1c8   :  { %1907 = vmatpush.msra.mxu0 %v5169_v17  ;;  %v5162_v17 = vld [vmem:[%s10510_s5 + $0x88] sm:$0xff] }
 0x1ca   :  { %1908 = vmatpush.msra.mxu0 %v5168_v6 }
 0x1cb   :  { %v807_v47 = vpop.f32.mrf.mxu2  ;;  %v914_v30 = vpop.f32.mrf.mxu3 }
 0x1cc   :  { %v7089_v44 = vadd.f32 %v914_v30, %v807_v47  ;;  %v1260_v47 = vld [vmem:[#allocation2 + $0xe0] sm:$0xff]  ;;  %v1788_v30 = vld [vmem:[%s10510_s5 + $0x28] sm:$0xff] }
 0x1cd   :  { %1119 = vmatmul.f32.gmra.mxu0 %v6905_v21  ;;  %5100 = vmatmul.msk.f32.gmra.mxu1 %vm453_vm2, %v7091_v24  ;;  %v5167_v21 = vld [vmem:[%s10510_s5 + $0xb0] sm:$0xff] }
 0x1ce   :  { %1909 = vmatpush.msra.mxu0 %v5167_v21  ;;  %v7163_v21 = vld [vmem:[#allocation2] sm:$0xff] }
 0x1cf   :  { %1461 = vmatmul.f32.gmra.mxu3 %v1258_v60  ;;  %5139 = vmatmul.msk.f32.gmra.mxu2 %vm453_vm2, %v6924_v42  ;;  %v1791_v42 = vld [vmem:[%s10510_s5 + $0x40] sm:$0xff]  ;;  %v7161_v60 = vld [vmem:[#allocation2 + $0x1d8] sm:$0xff]  ;;  %1721 = vst.msk [vmem:[#allocation3] sm:$0xff] %vm1720_vm3, %v7163_v21 }
 0x1d0   :  { %1910 = vmatpush.msra.mxu0 %v5166_v1  ;;  %2110 = vmatpush.msra.mxu1 %v1791_v42  ;;  %v1786_v1 = vld [vmem:[%s10510_s5 + $0x18] sm:$0xff]  ;;  %1722 = vst.msk [vmem:[#allocation3 + $0xf8] sm:$0xff] %vm1720_vm3, %v7163_v21 }
 0x1d1   :  { %v5160_v42 = vld [vmem:[%s10510_s5 + $0x78] sm:$0xff] }
 0x1d2   :  { %1911 = vmatpush.msra.mxu0 %v5165_v55  ;;  %2111 = vmatpush.msra.mxu1 %v1790_v15  ;;  %v5159_v55 = vld [vmem:[%s10510_s5 + $0x70] sm:$0xff]  ;;  %v1784_v15 = vld [vmem:[%s10510_s5 + $0x8] sm:$0xff] }
 0x1d3   :  { %v810_v26 = vpop.f32.mrf.mxu2  ;;  %v917_v33 = vpop.f32.mrf.mxu3 }
 0x1d4   :  { %v7122_v53 = vadd.f32 %v917_v33, %v810_v26  ;;  %1912 = vmatpush.msra.mxu0 %v5164_v37  ;;  %2112 = vmatpush.msra.mxu1 %v1789_v25  ;;  %v1785_v26 = vld [vmem:[%s10510_s5 + $0x10] sm:$0xff]  ;;  %v7189_v33 = vpop.f32.mrf.mxu1 }
 0x1d5   :  { %1122 = vmatmul.f32.gmra.mxu0 %v6926_v11  ;;  %5101 = vmatmul.msk.f32.gmra.mxu1 %vm453_vm2, %v7124_v13  ;;  %v5163_v11 = vld [vmem:[%s10510_s5 + $0x90] sm:$0xff] }
 0x1d6   :  { %1913 = vmatpush.msra.mxu0 %v5163_v11  ;;  %2113 = vmatpush.msra.mxu1 %v1788_v30 }
 0x1d7   :  { %1464 = vmatmul.f32.gmra.mxu3 %v1260_v47  ;;  %5140 = vmatmul.msk.f32.gmra.mxu2 %vm453_vm2, %v6939_v18  ;;  %v1787_v18 = vld [vmem:[%s10510_s5 + $0x20] sm:$0xff] }
 0x1d8   :  { %1914 = vmatpush.msra.mxu0 %v5162_v17  ;;  %2114 = vmatpush.msra.mxu1 %v1787_v18  ;;  %v1753_v47 = vld [vmem:[#allocation3] sm:$0xff] }
 0x1da   :  { %1915 = vmatpush.msra.mxu0 %v5161_v51  ;;  %2115 = vmatpush.msra.mxu1 %v1786_v1  ;;  %v1266_v51 = vld [vmem:[#allocation2 + $0x110] sm:$0xff] }
 0x1db   :  { %v813_v34 = vpop.f32.mrf.mxu2  ;;  %v920_v6 = vpop.f32.mrf.mxu3 }
 0x1dc   :  { %v7159_v16 = vadd.f32 %v920_v6, %v813_v34  ;;  %1916 = vmatpush.msra.mxu0 %v5160_v42  ;;  %2116 = vmatpush.msra.mxu1 %v1785_v26  ;;  %v7211_v17 = vpop.f32.mrf.mxu1 }
 0x1dd   :  { %1125 = vmatmul.f32.gmra.mxu0 %v6941_v0  ;;  %5102 = vmatmul.msk.f32.gmra.mxu1 %vm453_vm2, %v7161_v60  ;;  %v7187_v0 = vpop.f32.mrf.mxu0 }
 0x1de   :  { %1917 = vmatpush.msra.mxu0 %v5159_v55  ;;  %2117 = vmatpush.msra.mxu1 %v1784_v15  ;;  %v1268_v55 = vld [vmem:[#allocation2 + $0x120] sm:$0xff] }
 0x1df   :  { %1467 = vmatmul.f32.gmra.mxu3 %v6667_v3  ;;  %5141 = vmatmul.msk.f32.gmra.mxu2 %vm453_vm2, %v6954_v32  ;;  %v5158_v3 = vld [vmem:[%s10510_s5 + $0x68] sm:$0xff]  ;;  %v1783_v32 = vld [vmem:[%s10510_s5] sm:$0xff] }
 0x1e0   :  { %1918 = vmatpush.msra.mxu0 %v5158_v3  ;;  %2118 = vmatpush.msra.mxu1 %v1783_v32 }
 0x1e3   :  { %v816_v37 = vpop.f32.mrf.mxu2  ;;  %v923_v25 = vpop.f32.mrf.mxu3 }
 0x1e4   :  { %v7203_v11 = vadd.f32 %v923_v25, %v816_v37 }
 0x1e5   :  { %5203 = vmatmul.msk.f32.vlgmr.msra.gmra.mxu1 %vm1720_vm3, %v1753_v47  ;;  %v7209_v30 = vpop.f32.mrf.mxu0 }
 0x1e7   :  { %1470 = vmatmul.f32.gmra.mxu3 %v6677_v12  ;;  %5142 = vmatmul.msk.f32.gmra.mxu2 %vm453_vm2, %v6964_v50  ;;  %v7219_v12 = vpop.f32.mrf.mxu1 }
 0x1eb   :  { %v819_v18 = vpop.f32.mrf.mxu2  ;;  %v926_v34 = vpop.f32.mrf.mxu3 }
 0x1ec   :  { %v7213_v6 = vadd.f32 %v926_v34, %v819_v18  ;;  %v1270_v18 = vld [vmem:[#allocation2 + $0x130] sm:$0xff] }
 0x1ed   :  { %v7217_v26 = vpop.f32.mrf.mxu0 }
 0x1ef   :  { %1473 = vmatmul.f32.gmra.mxu3 %v1266_v51  ;;  %5143 = vmatmul.msk.f32.gmra.mxu2 %vm453_vm2, %v6976_v7  ;;  %v7228_v7 = vld [vmem:[%s10509_s4] ss:$0 sm:$0xff]  ;;  %v7232_v25 = vpop.f32.mrf.mxu1 }
 0x1f3   :  { %v822_v1 = vpop.f32.mrf.mxu2  ;;  %v929_v42 = vpop.f32.mrf.mxu3 }
 0x1f4   :  { %v7221_v50 = vadd.f32 %v929_v42, %v822_v1 }
 0x1f5   :  { %v7230_v37 = vpop.f32.mrf.mxu0 }
 0x1f7   :  { %1476 = vmatmul.f32.gmra.mxu3 %v1268_v55  ;;  %5144 = vmatmul.msk.f32.gmra.mxu2 %vm453_vm2, %v6988_v61 }
 0x1fb   :  { %v1429_v15 = vpop.f32.mrf.mxu3  ;;  %v1536_v3 = vpop.f32.mrf.mxu2 }
 0x1fc   :  { %v1537_v32 = vadd.f32 %v1536_v3, %v1429_v15  ;;  %v1272_v15 = vld [vmem:[#allocation2 + $0x140] sm:$0xff] }
 0x1fe   :  { %v1626_v47 = vadd.f32 %v1537_v32, %v6966_v57  ;;  %v7243_v57 = vpop.f32.mrf.mxu0 }
 0x1ff   :  { %1479 = vmatmul.f32.gmra.mxu3 %v1270_v18  ;;  %5145 = vmatmul.msk.f32.gmra.mxu2 %vm453_vm2, %v7000_v31  ;;  %v7245_v31 = vpop.f32.mrf.mxu1 }
 0x200   :  { %v1660_v61 = vadd.f32 %v7228_v7, %v1626_v47 }
 0x202   :  { %v1690_v34 = vmax.f32 %v1660_v61, 0.0 }
 0x203   :  { %v1432_v51 = vpop.f32.mrf.mxu3  ;;  %v1539_v1 = vpop.f32.mrf.mxu2 }
 0x204   :  { %1723 = vst.msk [vmem:[#allocation3 + $0x8] sm:$0xff] %vm1720_vm3, %v1690_v34  ;;  %v1540_v42 = vadd.f32 %v1539_v1, %v1432_v51  ;;  %5172 = vmatmul.msk.f32.vlgmr.msra.gmra.mxu0 %vm1720_vm3, %v1690_v34 }
 0x206   :  { %v1627_v55 = vadd.f32 %v1540_v42, %v6978_v10  ;;  %v7255_v1 = vpop.f32.mrf.mxu0 }
 0x207   :  { %1482 = vmatmul.f32.gmra.mxu3 %v1272_v15  ;;  %5146 = vmatmul.msk.f32.gmra.mxu2 %vm453_vm2, %v7012_v20  ;;  %v1274_v20 = vld [vmem:[#allocation2 + $0x150] sm:$0xff]  ;;  %v7257_v42 = vpop.f32.mrf.mxu1 }
 0x208   :  { %v1661_v3 = vadd.f32 %v7228_v7, %v1627_v55 }
 0x20a   :  { %v1691_v32 = vmax.f32 %v1661_v3, 0.0 }
 0x20b   :  { %v1435_v47 = vpop.f32.mrf.mxu3  ;;  %v1542_v18 = vpop.f32.mrf.mxu2  ;;  %v1754_v61 = vld [vmem:[#allocation3 + $0x8] sm:$0xff] }
 0x20c   :  { %1724 = vst.msk [vmem:[#allocation3 + $0x10] sm:$0xff] %vm1720_vm3, %v1691_v32  ;;  %v1543_v34 = vadd.f32 %v1542_v18, %v1435_v47  ;;  %5173 = vmatmul.msk.f32.gmra.mxu0 %vm1720_vm3, %v1691_v32  ;;  %5204 = vmatmul.msk.f32.gmra.mxu1 %vm1720_vm3, %v1754_v61 }
 0x20e   :  { %v1628_v10 = vadd.f32 %v1543_v34, %v6990_v46 }
 0x20f   :  { %1485 = vmatmul.f32.gmra.mxu3 %v1274_v20  ;;  %5147 = vmatmul.msk.f32.gmra.mxu2 %vm453_vm2, %v7024_v54  ;;  %v1276_v54 = vld [vmem:[#allocation2 + $0x160] sm:$0xff] }
 0x210   :  { %v1662_v51 = vadd.f32 %v7228_v7, %v1628_v10 }
 0x212   :  { %v1692_v55 = vmax.f32 %v1662_v51, 0.0  ;;  %v7271_v51 = vpop.f32.mrf.mxu0 }
 0x213   :  { %v1438_v15 = vpop.f32.mrf.mxu3  ;;  %v1545_v3 = vpop.f32.mrf.mxu2  ;;  %v7259_v47 = vld [vmem:[#allocation3 + $0x10] sm:$0xff] }
 0x214   :  { %1725 = vst.msk [vmem:[#allocation3 + $0x18] sm:$0xff] %vm1720_vm3, %v1692_v55  ;;  %v1546_v32 = vadd.f32 %v1545_v3, %v1438_v15  ;;  %5174 = vmatmul.msk.f32.gmra.mxu0 %vm1720_vm3, %v1692_v55  ;;  %5205 = vmatmul.msk.f32.gmra.mxu1 %vm1720_vm3, %v7259_v47  ;;  %v7273_v55 = vpop.f32.mrf.mxu1 }
 0x216   :  { %v1629_v46 = vadd.f32 %v1546_v32, %v7002_v59 }
 0x217   :  { %1488 = vmatmul.f32.gmra.mxu3 %v1276_v54  ;;  %5148 = vmatmul.msk.f32.gmra.mxu2 %vm453_vm2, %v7036_v29  ;;  %v1278_v29 = vld [vmem:[#allocation2 + $0x170] sm:$0xff] }
 0x218   :  { %v1663_v18 = vadd.f32 %v7228_v7, %v1629_v46 }
 0x21a   :  { %v1693_v61 = vmax.f32 %v1663_v18, 0.0 }
 0x21b   :  { %v1441_v34 = vpop.f32.mrf.mxu3  ;;  %v1548_v10 = vpop.f32.mrf.mxu2  ;;  %v7269_v20 = vld [vmem:[#allocation3 + $0x18] sm:$0xff] }
 0x21c   :  { %1726 = vst.msk [vmem:[#allocation3 + $0x20] sm:$0xff] %vm1720_vm3, %v1693_v61  ;;  %v1549_v15 = vadd.f32 %v1548_v10, %v1441_v34  ;;  %5175 = vmatmul.msk.f32.gmra.mxu0 %vm1720_vm3, %v1693_v61  ;;  %5206 = vmatmul.msk.f32.gmra.mxu1 %vm1720_vm3, %v7269_v20  ;;  %v7291_v34 = vpop.f32.mrf.mxu1  ;;  %v1280_v10 = vld [vmem:[#allocation2 + $0x180] sm:$0xff] }
 0x21e   :  { %v1630_v59 = vadd.f32 %v1549_v15, %v7014_v19  ;;  %v7289_v19 = vpop.f32.mrf.mxu0 }
 0x21f   :  { %1491 = vmatmul.f32.gmra.mxu3 %v1278_v29  ;;  %5149 = vmatmul.msk.f32.gmra.mxu2 %vm453_vm2, %v7047_v62 }
 0x220   :  { %v1664_v3 = vadd.f32 %v7228_v7, %v1630_v59 }
 0x222   :  { %v1694_v32 = vmax.f32 %v1664_v3, 0.0 }
 0x223   :  { %v1444_v46 = vpop.f32.mrf.mxu3  ;;  %v1551_v54 = vpop.f32.mrf.mxu2  ;;  %v7283_v18 = vld [vmem:[#allocation3 + $0x20] sm:$0xff] }
 0x224   :  { %1727 = vst.msk [vmem:[#allocation3 + $0x28] sm:$0xff] %vm1720_vm3, %v1694_v32  ;;  %v1552_v61 = vadd.f32 %v1551_v54, %v1444_v46  ;;  %5176 = vmatmul.msk.f32.gmra.mxu0 %vm1720_vm3, %v1694_v32  ;;  %5207 = vmatmul.msk.f32.gmra.mxu1 %vm1720_vm3, %v7283_v18  ;;  %v1282_v54 = vld [vmem:[#allocation2 + $0x190] sm:$0xff] }
 0x226   :  { %v1631_v62 = vadd.f32 %v1552_v61, %v7026_v27  ;;  %v1061_v61 = vadd.f32 %v7141_v36, %v6820_v8 }
 0x227   :  { %1494 = vmatmul.f32.gmra.mxu3 %v1280_v10  ;;  %5150 = vmatmul.msk.f32.gmra.mxu2 %vm453_vm2, %v7056_v28  ;;  %v5245_v28 = vld [vmem:[%s10510_s5 + $0x130] sm:$0xf]  ;;  %v7313_v10 = vpop.f32.mrf.mxu1 }
 0x228   :  { %v1665_v15 = vadd.f32 %v7228_v7, %v1631_v62  ;;  %v7311_v62 = vpop.f32.mrf.mxu0  ;;  %5246 = vmatpush.msk.msra.mxu3 %vm171_vm0, %v5245_v28  ;;  %v1284_v28 = vld [vmem:[#allocation2 + $0x1a0] sm:$0xff] }
 0x22a   :  { %v1695_v59 = vmax.f32 %v1665_v15, 0.0 }
 0x22b   :  { %v1447_v29 = vpop.f32.mrf.mxu3  ;;  %v1554_v3 = vpop.f32.mrf.mxu2  ;;  %v7297_v32 = vld [vmem:[#allocation3 + $0x28] sm:$0xff] }
 0x22c   :  { %1728 = vst.msk [vmem:[#allocation3 + $0x30] sm:$0xff] %vm1720_vm3, %v1695_v59  ;;  %v1555_v46 = vadd.f32 %v1554_v3, %v1447_v29  ;;  %5177 = vmatmul.msk.f32.gmra.mxu0 %vm1720_vm3, %v1695_v59  ;;  %5208 = vmatmul.msk.f32.gmra.mxu1 %vm1720_vm3, %v7297_v32  ;;  %v1168_v3 = vadd.f32 %v7143_v2, %v1061_v61  ;;  %v5241_v2 = vld [vmem:[%s10510_s5 + $0x110] sm:$0xff] }
 0x22d   :  { %v1064_v61 = vadd.f32 %v7187_v0, %v6856_v4  ;;  %v5239_v0 = vld [vmem:[%s10510_s5 + $0x100] sm:$0xff] }
 0x22e   :  { %v1632_v27 = vadd.f32 %v1555_v46, %v7038_v38  ;;  %v5244_v38 = vld [vmem:[%s10510_s5 + $0x128] sm:$0xff] }
 0x22f   :  { %1497 = vmatmul.f32.gmra.mxu3 %v1282_v54  ;;  %5151 = vmatmul.msk.f32.gmra.mxu2 %vm453_vm2, %v7065_v48  ;;  %v5243_v48 = vld [vmem:[%s10510_s5 + $0x120] sm:$0xff] }
 0x230   :  { %v1666_v15 = vadd.f32 %v7228_v7, %v1632_v27  ;;  %2351 = vmatpush.msra.mxu3 %v5244_v38  ;;  %v5242_v27 = vld [vmem:[%s10510_s5 + $0x118] sm:$0xff]  ;;  %v7341_v38 = vpop.f32.mrf.mxu0 }
 0x232   :  { %v1696_v59 = vmax.f32 %v1666_v15, 0.0  ;;  %2352 = vmatpush.msra.mxu3 %v5243_v48 }
 0x233   :  { %v1450_v29 = vpop.f32.mrf.mxu3  ;;  %v1557_v8 = vpop.f32.mrf.mxu2  ;;  %v7323_v36 = vld [vmem:[#allocation3 + $0x30] sm:$0xff] }
 0x234   :  { %1729 = vst.msk [vmem:[#allocation3 + $0x38] sm:$0xff] %vm1720_vm3, %v1696_v59  ;;  %v1558_v46 = vadd.f32 %v1557_v8, %v1450_v29  ;;  %5178 = vmatmul.msk.f32.gmra.mxu0 %vm1720_vm3, %v1696_v59  ;;  %5209 = vmatmul.msk.f32.gmra.mxu1 %vm1720_vm3, %v7323_v36  ;;  %v7343_v59 = vpop.f32.mrf.mxu1 }
 0x235   :  { %2353 = vmatpush.msra.mxu3 %v5242_v27 }
 0x236   :  { %v1633_v54 = vadd.f32 %v1558_v46, %v1168_v3  ;;  %v1171_v46 = vadd.f32 %v7189_v33, %v1064_v61  ;;  %v5238_v33 = vld [vmem:[%s10510_s5 + $0xf8] sm:$0xff] }
 0x237   :  { %1500 = vmatmul.f32.gmra.mxu3 %v1284_v28  ;;  %5152 = vmatmul.msk.f32.gmra.mxu2 %vm453_vm2, %v7074_v9  ;;  %v5240_v9 = vld [vmem:[%s10510_s5 + $0x108] sm:$0xff]  ;;  %v1067_v28 = vadd.f32 %v7209_v30, %v6895_v14 }
 0x238   :  { %v1667_v15 = vadd.f32 %v7228_v7, %v1633_v54  ;;  %2354 = vmatpush.msra.mxu3 %v5241_v2  ;;  %v1286_v54 = vld [vmem:[#allocation2 + $0x1b0] sm:$0xff]  ;;  %v5236_v30 = vld [vmem:[%s10510_s5 + $0xe8] sm:$0xff] }
 0x23a   :  { %v1697_v48 = vmax.f32 %v1667_v15, 0.0  ;;  %2355 = vmatpush.msra.mxu3 %v5240_v9  ;;  %v5237_v15 = vld [vmem:[%s10510_s5 + $0xf0] sm:$0xff] }
 0x23b   :  { %v1453_v29 = vpop.f32.mrf.mxu3  ;;  %v1560_v8 = vpop.f32.mrf.mxu2  ;;  %v7348_v3 = vld [vmem:[#allocation3 + $0x38] sm:$0xff] }
 0x23c   :  { %1730 = vst.msk [vmem:[#allocation3 + $0x40] sm:$0xff] %vm1720_vm3, %v1697_v48  ;;  %v1561_v4 = vadd.f32 %v1560_v8, %v1453_v29  ;;  %5179 = vmatmul.msk.f32.gmra.mxu0 %vm1720_vm3, %v1697_v48  ;;  %5210 = vmatmul.msk.f32.gmra.mxu1 %vm1720_vm3, %v7348_v3  ;;  %v7372_v8 = vpop.f32.mrf.mxu0 }
 0x23d   :  { %2356 = vmatpush.msra.mxu3 %v5239_v0  ;;  %v1288_v0 = vld [vmem:[#allocation2 + $0x1c0] sm:$0xff] }
 0x23e   :  { %v1634_v27 = vadd.f32 %v1561_v4, %v1171_v46  ;;  %v7374_v46 = vpop.f32.mrf.mxu1 }
 0x23f   :  { %1503 = vmatmul.f32.gmra.mxu3 %v1286_v54  ;;  %5153 = vmatmul.msk.f32.gmra.mxu2 %vm453_vm2, %v7091_v24  ;;  %v1174_v24 = vadd.f32 %v7211_v17, %v1067_v28  ;;  %v5235_v17 = vld [vmem:[%s10510_s5 + $0xe0] sm:$0xff]  ;;  %v5234_v28 = vld [vmem:[%s10510_s5 + $0xd8] sm:$0xff] }
 0x240   :  { %v1668_v2 = vadd.f32 %v7228_v7, %v1634_v27  ;;  %2357 = vmatpush.msra.mxu3 %v5238_v33  ;;  %v1070_v27 = vadd.f32 %v7217_v26, %v6922_v40  ;;  %v5233_v40 = vld [vmem:[%s10510_s5 + $0xd0] sm:$0xff] }
 0x242   :  { %v1698_v61 = vmax.f32 %v1668_v2, 0.0  ;;  %2358 = vmatpush.msra.mxu3 %v5237_v15 }
 0x243   :  { %v1456_v48 = vpop.f32.mrf.mxu3  ;;  %v1563_v9 = vpop.f32.mrf.mxu2  ;;  %v7369_v29 = vld [vmem:[#allocation3 + $0x40] sm:$0xff] }
 0x244   :  { %1731 = vst.msk [vmem:[#allocation3 + $0x48] sm:$0xff] %vm1720_vm3, %v1698_v61  ;;  %v1564_v14 = vadd.f32 %v1563_v9, %v1456_v48  ;;  %5180 = vmatmul.msk.f32.gmra.mxu0 %vm1720_vm3, %v1698_v61  ;;  %5211 = vmatmul.msk.f32.gmra.mxu1 %vm1720_vm3, %v7369_v29  ;;  %v7404_v26 = vpop.f32.mrf.mxu0 }
 0x245   :  { %2359 = vmatpush.msra.mxu3 %v5236_v30 }
 0x246   :  { %v1635_v4 = vadd.f32 %v1564_v14, %v1174_v24  ;;  %v7406_v9 = vpop.f32.mrf.mxu1  ;;  %v1290_v14 = vld [vmem:[#allocation2 + $0x1d0] sm:$0xff] }
 0x247   :  { %1506 = vmatmul.f32.gmra.mxu3 %v1288_v0  ;;  %5154 = vmatmul.msk.f32.gmra.mxu2 %vm453_vm2, %v7124_v13  ;;  %v1177_v13 = vadd.f32 %v7219_v12, %v1070_v27  ;;  %v1073_v12 = vadd.f32 %v7230_v37, %v6937_v49  ;;  %v1292_v49 = vld [vmem:[#allocation2 + $0x1e0] sm:$0xff]  ;;  %v1293_v37 = vld [vmem:[#allocation2 + $0x1e8] sm:$0xff] }
 0x248   :  { %v1669_v54 = vadd.f32 %v7228_v7, %v1635_v4  ;;  %2360 = vmatpush.msra.mxu3 %v5235_v17 }
 0x24a   :  { %v1699_v33 = vmax.f32 %v1669_v54, 0.0  ;;  %2361 = vmatpush.msra.mxu3 %v5234_v28  ;;  %v1180_v54 = vadd.f32 %v7232_v25, %v1073_v12  ;;  %v1076_v28 = vadd.f32 %v7243_v57, %v6952_v58  ;;  %v1295_v58 = vld [vmem:[#allocation2 + $0x1f8] sm:$0xff] }
 0x24b   :  { %v1459_v2 = vpop.f32.mrf.mxu3  ;;  %v1566_v61 = vpop.f32.mrf.mxu2  ;;  %v7394_v15 = vld [vmem:[#allocation3 + $0x48] sm:$0xff] }
 0x24c   :  { %1732 = vst.msk [vmem:[#allocation3 + $0x50] sm:$0xff] %vm1720_vm3, %v1699_v33  ;;  %v1567_v48 = vadd.f32 %v1566_v61, %v1459_v2  ;;  %5181 = vmatmul.msk.f32.gmra.mxu0 %vm1720_vm3, %v1699_v33  ;;  %5212 = vmatmul.msk.f32.gmra.mxu1 %vm1720_vm3, %v7394_v15  ;;  %v7423_v2 = vpop.f32.mrf.mxu0 }
 0x24d   :  { %2362 = vmatpush.msra.mxu3 %v5233_v40 }
 0x24e   :  { %v1636_v24 = vadd.f32 %v1567_v48, %v1177_v13  ;;  %v7425_v25 = vpop.f32.mrf.mxu1 }
 0x24f   :  { %1509 = vmatmul.f32.gmra.mxu3 %v1290_v14  ;;  %5155 = vmatmul.msk.f32.gmra.mxu2 %vm453_vm2, %v7161_v60  ;;  %v1183_v14 = vadd.f32 %v7245_v31, %v1076_v28 }
 0x250   :  { %v1670_v30 = vadd.f32 %v7228_v7, %v1636_v24 }
 0x252   :  { %v1700_v4 = vmax.f32 %v1670_v30, 0.0  ;;  %v1079_v30 = vadd.f32 %v7255_v1, %v6962_v43  ;;  %v1082_v1 = vadd.f32 %v7271_v51, %v6974_v5 }
 0x253   :  { %v1462_v0 = vpop.f32.mrf.mxu3  ;;  %v1569_v17 = vpop.f32.mrf.mxu2  ;;  %v7413_v27 = vld [vmem:[#allocation3 + $0x50] sm:$0xff] }
 0x254   :  { %1733 = vst.msk [vmem:[#allocation3 + $0x58] sm:$0xff] %vm1720_vm3, %v1700_v4  ;;  %v1570_v33 = vadd.f32 %v1569_v17, %v1462_v0  ;;  %5182 = vmatmul.msk.f32.gmra.mxu0 %vm1720_vm3, %v1700_v4  ;;  %5213 = vmatmul.msk.f32.gmra.mxu1 %vm1720_vm3, %v7413_v27  ;;  %v7440_v31 = vpop.f32.mrf.mxu0 }
 0x256   :  { %v1637_v60 = vadd.f32 %v1570_v33, %v1180_v54  ;;  %v7442_v0 = vpop.f32.mrf.mxu1 }
 0x257   :  { %1512 = vmatmul.f32.gmra.mxu3 %v1292_v49  ;;  %5156 = vmatmul.msk.f32.gmra.mxu2 %vm453_vm2, %v1293_v37  ;;  %v1186_v49 = vadd.f32 %v7257_v42, %v1079_v30 }
 0x258   :  { %v1671_v61 = vadd.f32 %v7228_v7, %v1637_v60 }
 0x25a   :  { %v1701_v13 = vmax.f32 %v1671_v61, 0.0 }
 0x25b   :  { %v1465_v48 = vpop.f32.mrf.mxu3  ;;  %v1572_v40 = vpop.f32.mrf.mxu2  ;;  %v7428_v24 = vld [vmem:[#allocation3 + $0x58] sm:$0xff] }
 0x25c   :  { %1734 = vst.msk [vmem:[#allocation3 + $0x60] sm:$0xff] %vm1720_vm3, %v1701_v13  ;;  %v1573_v12 = vadd.f32 %v1572_v40, %v1465_v48  ;;  %5183 = vmatmul.msk.f32.gmra.mxu0 %vm1720_vm3, %v1701_v13  ;;  %5214 = vmatmul.msk.f32.gmra.mxu1 %vm1720_vm3, %v7428_v24  ;;  %v1189_v48 = vadd.f32 %v7273_v55, %v1082_v1  ;;  %v7459_v40 = vpop.f32.mrf.mxu0 }
 0x25e   :  { %v1638_v57 = vadd.f32 %v1573_v12, %v1183_v14  ;;  %v7461_v14 = vpop.f32.mrf.mxu1 }
 0x25f   :  { %1515 = vmatmul.f32.gmra.mxu3 %v7163_v21  ;;  %5157 = vmatmul.msk.f32.gmra.mxu2 %vm453_vm2, %v1295_v58 }
 0x260   :  { %v1672_v4 = vadd.f32 %v7228_v7, %v1638_v57 }
 0x262   :  { %v1702_v17 = vmax.f32 %v1672_v4, 0.0 }
 0x263   :  { %v1468_v54 = vpop.f32.mrf.mxu3  ;;  %v1575_v33 = vpop.f32.mrf.mxu2  ;;  %v7444_v60 = vld [vmem:[#allocation3 + $0x60] sm:$0xff] }
 0x264   :  { %1735 = vst.msk [vmem:[#allocation3 + $0x68] sm:$0xff] %vm1720_vm3, %v1702_v17  ;;  %v1576_v21 = vadd.f32 %v1575_v33, %v1468_v54  ;;  %5184 = vmatmul.msk.f32.gmra.mxu0 %vm1720_vm3, %v1702_v17  ;;  %5215 = vmatmul.msk.f32.gmra.mxu1 %vm1720_vm3, %v7444_v60  ;;  %v1088_v54 = vadd.f32 %v7311_v62, %v6998_v35 }
 0x265   :  { %v1091_v35 = vadd.f32 %v7341_v38, %v7010_v63 }
 0x266   :  { %v1639_v43 = vadd.f32 %v1576_v21, %v1186_v49  ;;  %v1195_v1 = vadd.f32 %v7313_v10, %v1088_v54 }
 0x267   :  { %5247 = vmatmul.msk.f32.vlgmr.msra.gmra.mxu3 %vm1720_vm3, %v7259_v47  ;;  %v1085_v47 = vadd.f32 %v7289_v19, %v6986_v39  ;;  %v7481_v39 = vpop.f32.mrf.mxu1 }
 0x268   :  { %v1673_v37 = vadd.f32 %v7228_v7, %v1639_v43 }
 0x269   :  { %v1192_v4 = vadd.f32 %v7291_v34, %v1085_v47 }
 0x26a   :  { %v1703_v28 = vmax.f32 %v1673_v37, 0.0 }
 0x26b   :  { %v1471_v61 = vpop.f32.mrf.mxu3  ;;  %v1578_v42 = vpop.f32.mrf.mxu2  ;;  %v7456_v13 = vld [vmem:[#allocation3 + $0x68] sm:$0xff] }
 0x26c   :  { %1736 = vst.msk [vmem:[#allocation3 + $0x70] sm:$0xff] %vm1720_vm3, %v1703_v28  ;;  %v1579_v12 = vadd.f32 %v1578_v42, %v1471_v61  ;;  %5185 = vmatmul.msk.f32.gmra.mxu0 %vm1720_vm3, %v1703_v28  ;;  %5216 = vmatmul.msk.f32.gmra.mxu1 %vm1720_vm3, %v7456_v13 }
 0x26e   :  { %v1640_v5 = vadd.f32 %v1579_v12, %v1189_v48 }
 0x26f   :  { %5248 = vmatmul.msk.f32.gmra.mxu3 %vm1720_vm3, %v7269_v20  ;;  %v7479_v20 = vpop.f32.mrf.mxu0  ;;  %v7501_v28 = vpop.f32.mrf.mxu1 }
 0x270   :  { %v1674_v51 = vadd.f32 %v7228_v7, %v1640_v5  ;;  %v1198_v5 = vadd.f32 %v7343_v59, %v1091_v35 }
 0x272   :  { %v1704_v55 = vmax.f32 %v1674_v51, 0.0 }
 0x273   :  { %v1474_v58 = vpop.f32.mrf.mxu3  ;;  %v1581_v57 = vpop.f32.mrf.mxu2  ;;  %v7472_v30 = vld [vmem:[#allocation3 + $0x70] sm:$0xff] }
 0x274   :  { %1737 = vst.msk [vmem:[#allocation3 + $0x78] sm:$0xff] %vm1720_vm3, %v1704_v55  ;;  %v1582_v17 = vadd.f32 %v1581_v57, %v1474_v58  ;;  %5186 = vmatmul.msk.f32.gmra.mxu0 %vm1720_vm3, %v1704_v55  ;;  %5217 = vmatmul.msk.f32.gmra.mxu1 %vm1720_vm3, %v7472_v30 }
 0x276   :  { %v1641_v19 = vadd.f32 %v1582_v17, %v1192_v4 }
 0x277   :  { %5249 = vmatmul.msk.f32.gmra.mxu3 %vm1720_vm3, %v7283_v18  ;;  %v7499_v62 = vpop.f32.mrf.mxu0  ;;  %v7518_v59 = vpop.f32.mrf.mxu1 }
 0x278   :  { %v1675_v34 = vadd.f32 %v7228_v7, %v1641_v19 }
 0x27a   :  { %v1705_v33 = vmax.f32 %v1675_v34, 0.0 }
 0x27b   :  { %v1477_v49 = vpop.f32.mrf.mxu3  ;;  %v1584_v21 = vpop.f32.mrf.mxu2  ;;  %v7488_v43 = vld [vmem:[#allocation3 + $0x78] sm:$0xff] }
 0x27c   :  { %1738 = vst.msk [vmem:[#allocation3 + $0x80] sm:$0xff] %vm1720_vm3, %v1705_v33  ;;  %v1585_v37 = vadd.f32 %v1584_v21, %v1477_v49  ;;  %5187 = vmatmul.msk.f32.gmra.mxu0 %vm1720_vm3, %v1705_v33  ;;  %5218 = vmatmul.msk.f32.gmra.mxu1 %vm1720_vm3, %v7488_v43 }
 0x27e   :  { %v1642_v18 = vadd.f32 %v1585_v37, %v1195_v1 }
 0x27f   :  { %5250 = vmatmul.msk.f32.gmra.mxu3 %vm1720_vm3, %v7297_v32  ;;  %v1094_v32 = vadd.f32 %v7372_v8, %v7022_v23  ;;  %v7516_v51 = vpop.f32.mrf.mxu0  ;;  %v7537_v1 = vpop.f32.mrf.mxu1 }
 0x280   :  { %v1676_v10 = vadd.f32 %v7228_v7, %v1642_v18 }
 0x281   :  { %v1201_v17 = vadd.f32 %v7374_v46, %v1094_v32 }
 0x282   :  { %v1706_v61 = vmax.f32 %v1676_v10, 0.0 }
 0x283   :  { %v1480_v42 = vpop.f32.mrf.mxu3  ;;  %v1587_v48 = vpop.f32.mrf.mxu2  ;;  %v7504_v12 = vld [vmem:[#allocation3 + $0x80] sm:$0xff] }
 0x284   :  { %1739 = vst.msk [vmem:[#allocation3 + $0x88] sm:$0xff] %vm1720_vm3, %v1706_v61  ;;  %v1588_v47 = vadd.f32 %v1587_v48, %v1480_v42  ;;  %5188 = vmatmul.msk.f32.gmra.mxu0 %vm1720_vm3, %v1706_v61  ;;  %5219 = vmatmul.msk.f32.gmra.mxu1 %vm1720_vm3, %v7504_v12  ;;  %v1103_v48 = vadd.f32 %v7440_v31, %v7054_v41  ;;  %v5301_v41 = vld [vmem:[%s10512_s7 + $0x190] sm:$0xf] }
 0x285   :  { %v1106_v31 = vadd.f32 %v7459_v40, %v7063_v22  ;;  %5303 = vmatpush.msk.msra.mxu2 %vm171_vm0, %v5301_v41  ;;  %v5297_v22 = vld [vmem:[%s10512_s7 + $0x170] sm:$0xff]  ;;  %v5279_v41 = vld [vmem:[%s10512_s7 + $0xe0] sm:$0xff] }
 0x286   :  { %v1643_v63 = vadd.f32 %v1588_v47, %v1198_v5 }
 0x287   :  { %5251 = vmatmul.msk.f32.gmra.mxu3 %vm1720_vm3, %v7323_v36  ;;  %v1097_v36 = vadd.f32 %v7404_v26, %v7034_v52  ;;  %v7535_v21 = vpop.f32.mrf.mxu0  ;;  %v1213_v40 = vadd.f32 %v7461_v14, %v1106_v31  ;;  %v5293_v14 = vld [vmem:[%s10512_s7 + $0x150] sm:$0xff] }
 0x288   :  { %v1677_v38 = vadd.f32 %v7228_v7, %v1643_v63 }
 0x289   :  { %v1204_v49 = vadd.f32 %v7406_v9, %v1097_v36 }
 0x28a   :  { %v1707_v55 = vmax.f32 %v1677_v38, 0.0  ;;  %v1210_v38 = vadd.f32 %v7442_v0, %v1103_v48 }
 0x28b   :  { %v1483_v58 = vpop.f32.mrf.mxu3  ;;  %v1590_v57 = vpop.f32.mrf.mxu2  ;;  %v7520_v4 = vld [vmem:[#allocation3 + $0x88] sm:$0xff] }
 0x28c   :  { %1740 = vst.msk [vmem:[#allocation3 + $0x90] sm:$0xff] %vm1720_vm3, %v1707_v55  ;;  %v1591_v19 = vadd.f32 %v1590_v57, %v1483_v58  ;;  %5189 = vmatmul.msk.f32.gmra.mxu0 %vm1720_vm3, %v1707_v55  ;;  %5220 = vmatmul.msk.f32.gmra.mxu1 %vm1720_vm3, %v7520_v4 }
 0x28e   :  { %v1644_v23 = vadd.f32 %v1591_v19, %v1201_v17  ;;  %v5299_v17 = vld [vmem:[%s10512_s7 + $0x180] sm:$0xff] }
 0x28f   :  { %5252 = vmatmul.msk.f32.gmra.mxu3 %vm1720_vm3, %v7348_v3  ;;  %v1100_v3 = vadd.f32 %v7423_v2, %v7045_v45  ;;  %v7557_v45 = vpop.f32.mrf.mxu1  ;;  %2614 = vmatpush.msra.mxu2 %v5299_v17  ;;  %v1115_v17 = vadd.f32 %v7516_v51, %v7122_v53  ;;  %v5300_v53 = vld [vmem:[%s10512_s7 + $0x188] sm:$0xff] }
 0x290   :  { %v1678_v8 = vadd.f32 %v7228_v7, %v1644_v23 }
 0x291   :  { %v1207_v61 = vadd.f32 %v7425_v25, %v1100_v3  ;;  %2615 = vmatpush.msra.mxu2 %v5297_v22 }
 0x292   :  { %v1708_v54 = vmax.f32 %v1678_v8, 0.0 }
 0x293   :  { %v1486_v34 = vpop.f32.mrf.mxu3  ;;  %v1593_v46 = vpop.f32.mrf.mxu2  ;;  %v7532_v33 = vld [vmem:[#allocation3 + $0x90] sm:$0xff] }
 0x294   :  { %1741 = vst.msk [vmem:[#allocation3 + $0x98] sm:$0xff] %vm1720_vm3, %v1708_v54  ;;  %v1594_v37 = vadd.f32 %v1593_v46, %v1486_v34  ;;  %5190 = vmatmul.msk.f32.gmra.mxu0 %vm1720_vm3, %v1708_v54  ;;  %5221 = vmatmul.msk.f32.gmra.mxu1 %vm1720_vm3, %v7532_v33  ;;  %v5295_v54 = vld [vmem:[%s10512_s7 + $0x160] sm:$0xff]  ;;  %v1109_v46 = vadd.f32 %v7479_v20, %v7072_v56  ;;  %v5289_v56 = vld [vmem:[%s10512_s7 + $0x130] sm:$0xff] }
 0x295   :  { %2616 = vmatpush.msra.mxu2 %v5295_v54  ;;  %v1222_v54 = vadd.f32 %v7518_v59, %v1115_v17  ;;  %v5390_v59 = vld [vmem:[%s10512_s7 + $0x3d8] sm:$0xff] }
 0x296   :  { %v1645_v52 = vadd.f32 %v1594_v37, %v1204_v49  ;;  %v5291_v37 = vld [vmem:[%s10512_s7 + $0x140] sm:$0xff]  ;;  %v1216_v20 = vadd.f32 %v7481_v39, %v1109_v46  ;;  %v5285_v39 = vld [vmem:[%s10512_s7 + $0x110] sm:$0xff] }
 0x297   :  { %5253 = vmatmul.msk.f32.gmra.mxu3 %vm1720_vm3, %v7369_v29  ;;  %v7555_v29 = vpop.f32.mrf.mxu0  ;;  %v7580_v58 = vpop.f32.mrf.mxu1  ;;  %2617 = vmatpush.msra.mxu2 %v5293_v14 }
 0x298   :  { %v1679_v26 = vadd.f32 %v7228_v7, %v1645_v52 }
 0x299   :  { %2618 = vmatpush.msra.mxu2 %v5291_v37 }
 0x29a   :  { %v1709_v9 = vmax.f32 %v1679_v26, 0.0 }
 0x29b   :  { %v1489_v18 = vpop.f32.mrf.mxu3  ;;  %v1596_v35 = vpop.f32.mrf.mxu2  ;;  %v7548_v10 = vld [vmem:[#allocation3 + $0x98] sm:$0xff]  ;;  %2619 = vmatpush.msra.mxu2 %v5289_v56  ;;  %v1118_v56 = vadd.f32 %v7535_v21, %v7159_v16  ;;  %v5292_v21 = vld [vmem:[%s10512_s7 + $0x148] sm:$0xff] }
 0x29c   :  { %1742 = vst.msk [vmem:[#allocation3 + $0xa0] sm:$0xff] %vm1720_vm3, %v1709_v9  ;;  %v1597_v42 = vadd.f32 %v1596_v35, %v1489_v18  ;;  %5191 = vmatmul.msk.f32.gmra.mxu0 %vm1720_vm3, %v1709_v9  ;;  %5222 = vmatmul.msk.f32.gmra.mxu1 %vm1720_vm3, %v7548_v10  ;;  %v5386_v16 = vld [vmem:[%s10512_s7 + $0x3b8] sm:$0xff] }
 0x29e   :  { %v1646_v2 = vadd.f32 %v1597_v42, %v1207_v61  ;;  %v5287_v61 = vld [vmem:[%s10512_s7 + $0x120] sm:$0xff] }
 0x29f   :  { %5254 = vmatmul.msk.f32.gmra.mxu3 %vm1720_vm3, %v7394_v15  ;;  %v7578_v0 = vpop.f32.mrf.mxu0  ;;  %v7613_v3 = vpop.f32.mrf.mxu1  ;;  %2620 = vmatpush.msra.mxu2 %v5287_v61 }
 0x2a0   :  { %v1680_v25 = vadd.f32 %v7228_v7, %v1646_v2  ;;  %v1112_v2 = vadd.f32 %v7499_v62, %v7089_v44  ;;  %v5281_v44 = vld [vmem:[%s10512_s7 + $0xf0] sm:$0xff] }
 0x2a1   :  { %2621 = vmatpush.msra.mxu2 %v5285_v39 }
 0x2a2   :  { %v1710_v5 = vmax.f32 %v1680_v25, 0.0  ;;  %v5283_v25 = vld [vmem:[%s10512_s7 + $0x100] sm:$0xff]  ;;  %v1219_v62 = vadd.f32 %v7501_v28, %v1112_v2  ;;  %v5277_v28 = vld [vmem:[%s10512_s7 + $0xd0] sm:$0xff] }
 0x2a3   :  { %v1492_v47 = vpop.f32.mrf.mxu3  ;;  %v1599_v63 = vpop.f32.mrf.mxu2  ;;  %v7564_v32 = vld [vmem:[#allocation3 + $0xa0] sm:$0xff]  ;;  %2622 = vmatpush.msra.mxu2 %v5283_v25  ;;  %v1225_v25 = vadd.f32 %v7537_v1, %v1118_v56  ;;  %v5280_v56 = vld [vmem:[%s10512_s7 + $0xe8] sm:$0xff] }
 0x2a4   :  { %1743 = vst.msk [vmem:[#allocation3 + $0xa8] sm:$0xff] %vm1720_vm3, %v1710_v5  ;;  %v1600_v55 = vadd.f32 %v1599_v63, %v1492_v47  ;;  %5192 = vmatmul.msk.f32.gmra.mxu0 %vm1720_vm3, %v1710_v5  ;;  %5223 = vmatmul.msk.f32.gmra.mxu1 %vm1720_vm3, %v7564_v32  ;;  %v5419_v1 = vld [vmem:[%s10512_s7 + $0x4a0] sm:$0xff] }
 0x2a5   :  { %2623 = vmatpush.msra.mxu2 %v5281_v44 }
 0x2a6   :  { %v1647_v15 = vadd.f32 %v1600_v55, %v1210_v38 }
 0x2a7   :  { %5255 = vmatmul.msk.f32.gmra.mxu3 %vm1720_vm3, %v7413_v27  ;;  %v7611_v52 = vpop.f32.mrf.mxu0  ;;  %v7641_v47 = vpop.f32.mrf.mxu1  ;;  %2624 = vmatpush.msra.mxu2 %v5279_v41  ;;  %v5382_v41 = vld [vmem:[%s10512_s7 + $0x398] sm:$0xff] }
 0x2a8   :  { %v1681_v57 = vadd.f32 %v7228_v7, %v1647_v15 }
 0x2a9   :  { %2625 = vmatpush.msra.mxu2 %v5277_v28  ;;  %v5417_v28 = vld [vmem:[%s10512_s7 + $0x490] sm:$0xff] }
 0x2aa   :  { %v1711_v27 = vmax.f32 %v1681_v57, 0.0  ;;  %v5396_v57 = vld [vmem:[%s10512_s7 + $0x408] sm:$0xf] }
 0x2ab   :  { %v1495_v19 = vpop.f32.mrf.mxu3  ;;  %v1602_v23 = vpop.f32.mrf.mxu2  ;;  %v7587_v36 = vld [vmem:[#allocation3 + $0xa8] sm:$0xff]  ;;  %5399 = vmatpush.msk.msrb.mxu0 %vm171_vm0, %v5396_v57  ;;  %v1121_v57 = vadd.f32 %v7555_v29, %v7203_v11  ;;  %v5378_v11 = vld [vmem:[%s10512_s7 + $0x378] sm:$0xff] }
 0x2ac   :  { %1744 = vst.msk [vmem:[#allocation3 + $0xb0] sm:$0xff] %vm1720_vm3, %v1711_v27  ;;  %v1603_v8 = vadd.f32 %v1602_v23, %v1495_v19  ;;  %5193 = vmatmul.msk.f32.gmra.mxu0 %vm1720_vm3, %v1711_v27  ;;  %5224 = vmatmul.msk.f32.gmra.mxu1 %vm1720_vm3, %v7587_v36  ;;  %v5394_v19 = vld [vmem:[%s10512_s7 + $0x3f8] sm:$0xff] }
 0x2ad   :  { %2915 = vmatpush.msrb.mxu0 %v5394_v19 }
 0x2ae   :  { %v1648_v34 = vadd.f32 %v1603_v8, %v1213_v40  ;;  %v5392_v8 = vld [vmem:[%s10512_s7 + $0x3e8] sm:$0xff] }
 0x2af   :  { %5256 = vmatmul.msk.f32.gmra.mxu3 %vm1720_vm3, %v7428_v24  ;;  %v7639_v5 = vpop.f32.mrf.mxu0  ;;  %v7686_v14 = vpop.f32.mrf.mxu1  ;;  %2916 = vmatpush.msrb.mxu0 %v5392_v8  ;;  %v5376_v8 = vld [vmem:[%s10512_s7 + $0x368] sm:$0xff] }
 0x2b0   :  { %v1682_v49 = vadd.f32 %v7228_v7, %v1648_v34 }
 0x2b1   :  { %2917 = vmatpush.msrb.mxu0 %v5390_v59  ;;  %v5411_v59 = vld [vmem:[%s10512_s7 + $0x460] sm:$0xff] }
 0x2b2   :  { %v1712_v24 = vmax.f32 %v1682_v49, 0.0  ;;  %v5298_v49 = vld [vmem:[%s10512_s7 + $0x178] sm:$0xff] }
 0x2b3   :  { %v1498_v26 = vpop.f32.mrf.mxu3  ;;  %v1605_v9 = vpop.f32.mrf.mxu2  ;;  %v7615_v18 = vld [vmem:[#allocation3 + $0xb0] sm:$0xff] }
 0x2b4   :  { %1745 = vst.msk [vmem:[#allocation3 + $0xb8] sm:$0xff] %vm1720_vm3, %v1712_v24  ;;  %v1606_v35 = vadd.f32 %v1605_v9, %v1498_v26  ;;  %5194 = vmatmul.msk.f32.gmra.mxu0 %vm1720_vm3, %v1712_v24  ;;  %5225 = vmatmul.msk.f32.gmra.mxu1 %vm1720_vm3, %v7615_v18  ;;  %v5296_v24 = vld [vmem:[%s10512_s7 + $0x168] sm:$0xff]  ;;  %v5425_v9 = vld [vmem:[%s10512_s7 + $0x4d0] sm:$0xf] }
 0x2b5   :  { %v5388_v26 = vld [vmem:[%s10512_s7 + $0x3c8] sm:$0xff]  ;;  %5427 = vmatpush.msk.msrb.mxu1 %vm171_vm0, %v5425_v9 }
 0x2b6   :  { %v1649_v42 = vadd.f32 %v1606_v35, %v1216_v20  ;;  %v5423_v35 = vld [vmem:[%s10512_s7 + $0x4c0] sm:$0xff]  ;;  %2918 = vmatpush.msrb.mxu0 %v5388_v26 }
 0x2b7   :  { %5257 = vmatmul.msk.f32.gmra.mxu3 %vm1720_vm3, %v7444_v60  ;;  %v7684_v34 = vpop.f32.mrf.mxu0  ;;  %2973 = vmatpush.msrb.mxu1 %v5423_v35 }
 0x2b8   :  { %v1683_v48 = vadd.f32 %v7228_v7, %v1649_v42  ;;  %2919 = vmatpush.msrb.mxu0 %v5386_v16  ;;  %v5278_v16 = vld [vmem:[%s10512_s7 + $0xd8] sm:$0xff] }
 0x2ba   :  { %v1713_v60 = vmax.f32 %v1683_v48, 0.0  ;;  %v5421_v48 = vld [vmem:[%s10512_s7 + $0x4b0] sm:$0xff] }
 0x2bb   :  { %v1501_v63 = vpop.f32.mrf.mxu3  ;;  %v1608_v38 = vpop.f32.mrf.mxu2  ;;  %v7643_v55 = vld [vmem:[#allocation3 + $0xb8] sm:$0xff]  ;;  %2974 = vmatpush.msrb.mxu1 %v5421_v48  ;;  %v5407_v48 = vld [vmem:[%s10512_s7 + $0x440] sm:$0xff] }
 0x2bc   :  { %1746 = vst.msk [vmem:[#allocation3 + $0xc0] sm:$0xff] %vm1720_vm3, %v1713_v60  ;;  %v1609_v15 = vadd.f32 %v1608_v38, %v1501_v63  ;;  %5195 = vmatmul.msk.f32.gmra.mxu0 %vm1720_vm3, %v1713_v60  ;;  %5226 = vmatmul.msk.f32.gmra.mxu1 %vm1720_vm3, %v7643_v55  ;;  %v5384_v63 = vld [vmem:[%s10512_s7 + $0x3a8] sm:$0xff]  ;;  %v5290_v38 = vld [vmem:[%s10512_s7 + $0x138] sm:$0xff] }
 0x2bd   :  { %2920 = vmatpush.msrb.mxu0 %v5384_v63  ;;  %2975 = vmatpush.msrb.mxu1 %v5419_v1  ;;  %v5452_v63 = vld [vmem:[%s10512_s7 + $0x588] sm:$0xff] }
 0x2be   :  { %v1650_v31 = vadd.f32 %v1609_v15, %v1219_v62  ;;  %v7746_v62 = vpop.f32.mrf.mxu1 }
 0x2bf   :  { %5258 = vmatmul.msk.f32.gmra.mxu3 %vm1720_vm3, %v7456_v13  ;;  %v5302_v13 = vld [vmem:[%s10512_s7 + $0x198] sm:$0xf]  ;;  %v7744_v44 = vpop.f32.mrf.mxu0  ;;  %2921 = vmatpush.msrb.mxu0 %v5382_v41 }
 0x2c0   :  { %v1684_v27 = vadd.f32 %v7228_v7, %v1650_v31  ;;  %5305 = vmatpush.msk.msrb.mxu2 %vm171_vm0, %v5302_v13  ;;  %v5288_v31 = vld [vmem:[%s10512_s7 + $0x128] sm:$0xff]  ;;  %2976 = vmatpush.msrb.mxu1 %v5417_v28  ;;  %v5286_v13 = vld [vmem:[%s10512_s7 + $0x118] sm:$0xff] }
 0x2c1   :  { %v5450_v28 = vld [vmem:[%s10512_s7 + $0x578] sm:$0xff] }
 0x2c2   :  { %v1714_v23 = vmax.f32 %v1684_v27, 0.0  ;;  %2634 = vmatpush.msrb.mxu2 %v5300_v53  ;;  %v1228_v53 = vadd.f32 %v7557_v45, %v1121_v57  ;;  %v5413_v45 = vld [vmem:[%s10512_s7 + $0x470] sm:$0xff] }
 0x2c3   :  { %v1504_v51 = vpop.f32.mrf.mxu3  ;;  %v1611_v22 = vpop.f32.mrf.mxu2  ;;  %v7678_v40 = vld [vmem:[#allocation3 + $0xc0] sm:$0xff] }
 0x2c4   :  { %1747 = vst.msk [vmem:[#allocation3 + $0xc8] sm:$0xff] %vm1720_vm3, %v1714_v23  ;;  %v1612_v46 = vadd.f32 %v1611_v22, %v1504_v51  ;;  %5196 = vmatmul.msk.f32.gmra.mxu0 %vm1720_vm3, %v1714_v23  ;;  %5227 = vmatmul.msk.f32.gmra.mxu1 %vm1720_vm3, %v7678_v40  ;;  %v5415_v23 = vld [vmem:[%s10512_s7 + $0x480] sm:$0xff]  ;;  %v5284_v22 = vld [vmem:[%s10512_s7 + $0x108] sm:$0xff] }
 0x2c5   :  { %2635 = vmatpush.msrb.mxu2 %v5298_v49  ;;  %2977 = vmatpush.msrb.mxu1 %v5415_v23  ;;  %v5374_v49 = vld [vmem:[%s10512_s7 + $0x358] sm:$0xff]  ;;  %v5481_v23 = vld [vmem:[%s10512_s7 + $0x650] sm:$0xff] }
 0x2c6   :  { %v1651_v37 = vadd.f32 %v1612_v46, %v1222_v54  ;;  %v5282_v46 = vld [vmem:[%s10512_s7 + $0xf8] sm:$0xff]  ;;  %v7805_v26 = vpop.f32.mrf.mxu1 }
 0x2c7   :  { %5259 = vmatmul.msk.f32.gmra.mxu3 %vm1720_vm3, %v7472_v30  ;;  %v5294_v30 = vld [vmem:[%s10512_s7 + $0x158] sm:$0xff]  ;;  %2636 = vmatpush.msrb.mxu2 %v5296_v24  ;;  %v7803_v24 = vpop.f32.mrf.mxu0 }
 0x2c8   :  { %v1685_v20 = vadd.f32 %v7228_v7, %v1651_v37  ;;  %v1124_v37 = vadd.f32 %v7578_v0, %v7213_v6  ;;  %2978 = vmatpush.msrb.mxu1 %v5413_v45  ;;  %v5372_v6 = vld [vmem:[%s10512_s7 + $0x348] sm:$0xff]  ;;  %v5409_v0 = vld [vmem:[%s10512_s7 + $0x450] sm:$0xff] }
 0x2c9   :  { %2637 = vmatpush.msrb.mxu2 %v5294_v30 }
 0x2ca   :  { %v1715_v61 = vmax.f32 %v1685_v20, 0.0  ;;  %2979 = vmatpush.msrb.mxu1 %v5411_v59  ;;  %v5440_v59 = vld [vmem:[%s10512_s7 + $0x528] sm:$0xff] }
 0x2cb   :  { %v1507_v42 = vpop.f32.mrf.mxu3  ;;  %v1614_v39 = vpop.f32.mrf.mxu2  ;;  %v7725_v2 = vld [vmem:[#allocation3 + $0xc8] sm:$0xff]  ;;  %2638 = vmatpush.msrb.mxu2 %v5292_v21 }
 0x2cc   :  { %1748 = vst.msk [vmem:[#allocation3 + $0xd0] sm:$0xff] %vm1720_vm3, %v1715_v61  ;;  %v1615_v60 = vadd.f32 %v1614_v39, %v1507_v42  ;;  %5197 = vmatmul.msk.f32.gmra.mxu0 %vm1720_vm3, %v1715_v61  ;;  %5228 = vmatmul.msk.f32.gmra.mxu1 %vm1720_vm3, %v7725_v2  ;;  %v5456_v21 = vld [vmem:[%s10512_s7 + $0x5a8] sm:$0xf]  ;;  %v1231_v42 = vadd.f32 %v7580_v58, %v1124_v37  ;;  %v5405_v58 = vld [vmem:[%s10512_s7 + $0x430] sm:$0xff] }
 0x2cd   :  { %2639 = vmatpush.msrb.mxu2 %v5290_v38  ;;  %2980 = vmatpush.msrb.mxu1 %v5409_v0  ;;  %v1127_v38 = vadd.f32 %v7611_v52, %v7221_v50  ;;  %v5401_v50 = vld [vmem:[%s10512_s7 + $0x410] sm:$0xff] }
 0x2ce   :  { %v1652_v15 = vadd.f32 %v1615_v60, %v1225_v25  ;;  %v5454_v25 = vld [vmem:[%s10512_s7 + $0x598] sm:$0xff]  ;;  %v5477_v37 = vld [vmem:[%s10512_s7 + $0x630] sm:$0xff] }
 0x2cf   :  { %5260 = vmatmul.msk.f32.gmra.mxu3 %vm1720_vm3, %v7488_v43  ;;  %v5380_v43 = vld [vmem:[%s10512_s7 + $0x388] sm:$0xff]  ;;  %2640 = vmatpush.msrb.mxu2 %v5288_v31  ;;  %v7856_v41 = vpop.f32.mrf.mxu0  ;;  %v7858_v31 = vpop.f32.mrf.mxu1 }
 0x2d0   :  { %v1686_v17 = vadd.f32 %v7228_v7, %v1652_v15  ;;  %2922 = vmatpush.msrb.mxu0 %v5380_v43  ;;  %2981 = vmatpush.msrb.mxu1 %v5407_v48  ;;  %v5403_v15 = vld [vmem:[%s10512_s7 + $0x420] sm:$0xff]  ;;  %v5485_v43 = vld [vmem:[%s10512_s7 + $0x670] sm:$0xf] }
 0x2d1   :  { %2641 = vmatpush.msrb.mxu2 %v5286_v13  ;;  %v2572_v48 = vld [vmem:[%s10512_s7 + $0xc0] sm:$0xf] }
 0x2d2   :  { %v1716_v27 = vmax.f32 %v1686_v17, 0.0  ;;  %2923 = vmatpush.msrb.mxu0 %v5378_v11  ;;  %2982 = vmatpush.msrb.mxu1 %v5405_v58  ;;  %v5448_v11 = vld [vmem:[%s10512_s7 + $0x568] sm:$0xff]  ;;  %v5463_v58 = vld [vmem:[%s10512_s7 + $0x5c0] sm:$0xff] }
 0x2d3   :  { %v1510_v29 = vpop.f32.mrf.mxu3  ;;  %v1617_v7 = vpop.f32.mrf.mxu2  ;;  %v7771_v19 = vld [vmem:[#allocation3 + $0xd0] sm:$0xff]  ;;  %2642 = vmatpush.msrb.mxu2 %v5284_v22 }
 0x2d4   :  { %1749 = vst.msk [vmem:[#allocation3 + $0xd8] sm:$0xff] %vm1720_vm3, %v1716_v27  ;;  %v1618_v51 = vadd.f32 %v1617_v7, %v1510_v29  ;;  %5198 = vmatmul.msk.f32.gmra.mxu0 %vm1720_vm3, %v1716_v27  ;;  %5229 = vmatmul.msk.f32.gmra.mxu1 %vm1720_vm3, %v7771_v19  ;;  %v1234_v27 = vadd.f32 %v7613_v3, %v1127_v38  ;;  %v5483_v29 = vld [vmem:[%s10512_s7 + $0x660] sm:$0xff]  ;;  %v5446_v3 = vld [vmem:[%s10512_s7 + $0x558] sm:$0xff]  ;;  %v5461_v38 = vld [vmem:[%s10512_s7 + $0x5b0] sm:$0xff] }
 0x2d5   :  { %2924 = vmatpush.msrb.mxu0 %v5376_v8  ;;  %2643 = vmatpush.msrb.mxu2 %v5282_v46  ;;  %v5442_v8 = vld [vmem:[%s10512_s7 + $0x538] sm:$0xff] }
 0x2d6   :  { %v1653_v54 = vadd.f32 %v1618_v51, %v1228_v53  ;;  %2983 = vmatpush.msrb.mxu1 %v5403_v15  ;;  %v5444_v51 = vld [vmem:[%s10512_s7 + $0x548] sm:$0xff]  ;;  %v2564_v15 = vld [vmem:[%s10512_s7 + $0x80] sm:$0xff] }
 0x2d7   :  { %5261 = vmatmul.msk.f32.gmra.mxu3 %vm1720_vm3, %v7504_v12  ;;  %v7810_v12 = vld [vmem:[%s10509_s4] ss:$0 sm:$0xff]  ;;  %2925 = vmatpush.msrb.mxu0 %v5374_v49  ;;  %v7905_v46 = vpop.f32.mrf.mxu0  ;;  %v7907_v49 = vpop.f32.mrf.mxu1 }
 0x2d8   :  { %v1687_v9 = vadd.f32 %v7810_v12, %v1653_v54  ;;  %2644 = vmatpush.msrb.mxu2 %v5280_v56  ;;  %2984 = vmatpush.msrb.mxu1 %v5401_v50  ;;  %v5436_v56 = vld [vmem:[%s10512_s7 + $0x508] sm:$0xff]  ;;  %v2560_v50 = vld [vmem:[%s10512_s7 + $0x60] sm:$0xff] }
 0x2d9   :  { %2926 = vmatpush.msrb.mxu0 %v5372_v6  ;;  %v2124_v6 = vadd.f32 %v7686_v14, %v7684_v34  ;;  %v5432_v34 = vld [vmem:[%s10512_s7 + $0x4e8] sm:$0xff]  ;;  %v5469_v14 = vld [vmem:[%s10512_s7 + $0x5f0] sm:$0xff] }
 0x2da   :  { %v1717_v20 = vmax.f32 %v1687_v9, 0.0  ;;  %2645 = vmatpush.msrb.mxu2 %v5278_v16  ;;  %5487 = vmatpush.msk.msra.mxu1 %vm171_vm0, %v5485_v43  ;;  %v5475_v9 = vld [vmem:[%s10512_s7 + $0x620] sm:$0xff] }
 0x2db   :  { %v1513_v30 = vpop.f32.mrf.mxu3  ;;  %v1620_v35 = vpop.f32.mrf.mxu2  ;;  %v7822_v61 = vld [vmem:[#allocation3 + $0xd8] sm:$0xff]  ;;  %5459 = vmatpush.msk.msra.mxu0 %vm171_vm0, %v5456_v21  ;;  %v2556_v43 = vld [vmem:[%s10512_s7 + $0x40] sm:$0xff] }
 0x2dc   :  { %1750 = vst.msk [vmem:[#allocation3 + $0xe0] sm:$0xff] %vm1720_vm3, %v1717_v20  ;;  %v1621_v39 = vadd.f32 %v1620_v35, %v1513_v30  ;;  %5199 = vmatmul.msk.f32.gmra.mxu0 %vm1720_vm3, %v1717_v20  ;;  %5230 = vmatmul.msk.f32.gmra.mxu1 %vm1720_vm3, %v7822_v61  ;;  %v5473_v20 = vld [vmem:[%s10512_s7 + $0x610] sm:$0xff]  ;;  %v5471_v30 = vld [vmem:[%s10512_s7 + $0x600] sm:$0xff] }
 0x2dd   :  { %3071 = vmatpush.msra.mxu0 %v5454_v25  ;;  %3129 = vmatpush.msra.mxu1 %v5483_v29  ;;  %v7944_v35 = vld [vmem:[%s10511_s6] ss:$0 sm:$0xff]  ;;  %v5465_v25 = vld [vmem:[%s10512_s7 + $0x5d0] sm:$0xff] }
 0x2de   :  { %v1654_v60 = vadd.f32 %v1621_v39, %v1231_v42  ;;  %v5467_v42 = vld [vmem:[%s10512_s7 + $0x5e0] sm:$0xff] }
 0x2df   :  { %5262 = vmatmul.msk.f32.gmra.mxu3 %vm1720_vm3, %v7520_v4  ;;  %3072 = vmatpush.msra.mxu0 %v5452_v63  ;;  %v2568_v63 = vld [vmem:[%s10512_s7 + $0xa0] sm:$0xff] }
 0x2e0   :  { %v1688_v1 = vadd.f32 %v7810_v12, %v1654_v60  ;;  %3130 = vmatpush.msra.mxu1 %v5481_v23  ;;  %v2550_v23 = vld [vmem:[%s10512_s7 + $0x10] sm:$0xff] }
 0x2e1   :  { %3073 = vmatpush.msra.mxu0 %v5450_v28 }
 0x2e2   :  { %v1718_v4 = vmax.f32 %v1688_v1, 0.0  ;;  %v2566_v1 = vld [vmem:[%s10512_s7 + $0x90] sm:$0xff] }
 0x2e3   :  { %v1516_v52 = vpop.f32.mrf.mxu3  ;;  %v1623_v57 = vpop.f32.mrf.mxu2  ;;  %v7866_v17 = vld [vmem:[#allocation3 + $0xe0] sm:$0xff]  ;;  %3074 = vmatpush.msra.mxu0 %v5448_v11  ;;  %v5422_v11 = vld [vmem:[%s10512_s7 + $0x4b8] sm:$0xff] }
 0x2e4   :  { %1751 = vst.msk [vmem:[#allocation3 + $0xe8] sm:$0xff] %vm1720_vm3, %v1718_v4  ;;  %v1624_v13 = vadd.f32 %v1623_v57, %v1516_v52  ;;  %5200 = vmatmul.msk.f32.gmra.mxu0 %vm1720_vm3, %v1718_v4  ;;  %5231 = vmatmul.msk.f32.gmra.mxu1 %vm1720_vm3, %v7866_v17  ;;  %v2562_v4 = vld [vmem:[%s10512_s7 + $0x70] sm:$0xff]  ;;  %v5426_v52 = vld [vmem:[%s10512_s7 + $0x4d8] sm:$0xf]  ;;  %v2121_v57 = vadd.f32 %v7641_v47, %v7639_v5 }
 0x2e5   :  { %3075 = vmatpush.msra.mxu0 %v5446_v3  ;;  %5429 = vmatpush.msk.msrb.mxu3 %vm171_vm0, %v5426_v52  ;;  %v2554_v5 = vld [vmem:[%s10512_s7 + $0x30] sm:$0xff] }
 0x2e6   :  { %v1655_v7 = vadd.f32 %v1624_v13, %v1234_v27  ;;  %v5424_v27 = vld [vmem:[%s10512_s7 + $0x4c8] sm:$0xff] }
 0x2e7   :  { %5263 = vmatmul.msk.f32.gmra.mxu3 %vm1720_vm3, %v7532_v33  ;;  %v5479_v33 = vld [vmem:[%s10512_s7 + $0x640] sm:$0xff]  ;;  %3076 = vmatpush.msra.mxu0 %v5444_v51  ;;  %v2138_v51 = vpop.f32.mrf.mxu1 }
 0x2e8   :  { %v1689_v53 = vadd.f32 %v7810_v12, %v1655_v7  ;;  %3131 = vmatpush.msra.mxu1 %v5479_v33  ;;  %v5438_v12 = vld [vmem:[%s10512_s7 + $0x518] sm:$0xff]  ;;  %2993 = vmatpush.msrb.mxu3 %v5424_v27  ;;  %v2552_v7 = vld [vmem:[%s10512_s7 + $0x20] sm:$0xff]  ;;  %v5516_v33 = vld [vmem:[%s10512_s7 + $0x748] sm:$0xf] }
 0x2e9   :  { %3077 = vmatpush.msra.mxu0 %v5442_v8  ;;  %v2548_v8 = vld [vmem:[%s10512_s7] sm:$0xff] }
 0x2ea   :  { %v1719_v22 = vmax.f32 %v1689_v53, 0.0  ;;  %3132 = vmatpush.msra.mxu1 %v5477_v37  ;;  %2994 = vmatpush.msrb.mxu3 %v5422_v11  ;;  %v5420_v53 = vld [vmem:[%s10512_s7 + $0x4a8] sm:$0xff]  ;;  %v5539_v27 = vld [vmem:[%s10512_s7 + $0x7e0] sm:$0xff]  ;;  %v5406_v11 = vld [vmem:[%s10512_s7 + $0x438] sm:$0xff] }
 0x2eb   :  { %v7901_v45 = vpop.f32.mrf.mxu3  ;;  %v7903_v54 = vld [vmem:[#allocation3 + $0xe8] sm:$0xff]  ;;  %3078 = vmatpush.msra.mxu0 %v5440_v59  ;;  %v2136_v59 = vadd.f32 %v7907_v49, %v7905_v46 }
 0x2ec   :  { %1752 = vst.msk [vmem:[#allocation3 + $0xf0] sm:$0xff] %vm1720_vm3, %v1719_v22  ;;  %5201 = vmatmul.msk.f32.gmra.mxu0 %vm1720_vm3, %v1719_v22  ;;  %5232 = vmatmul.msk.f32.gmra.mxu1 %vm1720_vm3, %v7903_v54  ;;  %v2454_v13 = vadd.f32 %v7901_v45, %v2121_v57  ;;  %v5418_v45 = vld [vmem:[%s10512_s7 + $0x498] sm:$0xff]  ;;  %v2573_v37 = vld [vmem:[%s10512_s7 + $0xc8] sm:$0xf] }
 0x2ed   :  { %3079 = vmatpush.msra.mxu0 %v5438_v12  ;;  %3133 = vmatpush.msra.mxu1 %v5475_v9  ;;  %v5514_v12 = vld [vmem:[%s10512_s7 + $0x738] sm:$0xff]  ;;  %v5416_v9 = vld [vmem:[%s10512_s7 + $0x488] sm:$0xff] }
 0x2ee   :  { %2995 = vmatpush.msrb.mxu3 %v5420_v53  ;;  %v2561_v57 = vld [vmem:[%s10512_s7 + $0x68] sm:$0xff] }
 0x2ef   :  { %5264 = vmatmul.msk.f32.gmra.mxu3 %vm1720_vm3, %v7548_v10  ;;  %v5434_v10 = vld [vmem:[%s10512_s7 + $0x4f8] sm:$0xff]  ;;  %3080 = vmatpush.msra.mxu0 %v5436_v56 }
 0x2f0   :  { %3134 = vmatpush.msra.mxu1 %v5473_v20  ;;  %2996 = vmatpush.msrb.mxu3 %v5418_v45  ;;  %v2571_v56 = vld [vmem:[%s10512_s7 + $0xb8] sm:$0xff]  ;;  %v5512_v20 = vld [vmem:[%s10512_s7 + $0x728] sm:$0xff] }
 0x2f1   :  { %3081 = vmatpush.msra.mxu0 %v5434_v10  ;;  %v2555_v45 = vld [vmem:[%s10512_s7 + $0x38] sm:$0xff] }
 0x2f2   :  { %3135 = vmatpush.msra.mxu1 %v5471_v30  ;;  %2997 = vmatpush.msrb.mxu3 %v5416_v9  ;;  %v5510_v30 = vld [vmem:[%s10512_s7 + $0x718] sm:$0xff]  ;;  %v2553_v9 = vld [vmem:[%s10512_s7 + $0x28] sm:$0xff] }
 0x2f3   :  { %v2367_v0 = vpop.f32.mrf.mxu3  ;;  %3082 = vmatpush.msra.mxu0 %v5432_v34 }
 0x2f4   :  { %v2455_v16 = vadd.f32 %v2367_v0, %v2124_v6  ;;  %3136 = vmatpush.msra.mxu1 %v5469_v14  ;;  %v5414_v6 = vld [vmem:[%s10512_s7 + $0x478] sm:$0xff]  ;;  %v2569_v0 = vld [vmem:[%s10512_s7 + $0xa8] sm:$0xff] }
 0x2f5   :  { %2998 = vmatpush.msrb.mxu3 %v5414_v6  ;;  %v2551_v6 = vld [vmem:[%s10512_s7 + $0x18] sm:$0xff] }
 0x2f6   :  { %v2489_v21 = vadd.f32 %v7944_v35, %v2455_v16  ;;  %3137 = vmatpush.msra.mxu1 %v5467_v42  ;;  %v5412_v16 = vld [vmem:[%s10512_s7 + $0x468] sm:$0xff] }
 0x2f7   :  { %5265 = vmatmul.msk.f32.gmra.mxu3 %vm1720_vm3, %v7564_v32  ;;  %v2570_v32 = vld [vmem:[%s10512_s7 + $0xb0] sm:$0xff]  ;;  %v5508_v42 = vld [vmem:[%s10512_s7 + $0x708] sm:$0xff] }
 0x2f8   :  { %v2519_v39 = vmax.f32 %v2489_v21, 0.0  ;;  %3138 = vmatpush.msra.mxu1 %v5465_v25  ;;  %v2567_v21 = vld [vmem:[%s10512_s7 + $0x98] sm:$0xff]  ;;  %2999 = vmatpush.msrb.mxu3 %v5412_v16 }
 0x2f9   :  { %v5410_v25 = vld [vmem:[%s10512_s7 + $0x458] sm:$0xff] }
 0x2fa   :  { %5304 = vmatmul.msk.f32.vlgmr.msra.gmra.mxu2 %vm1720_vm3, %v2519_v39  ;;  %3139 = vmatpush.msra.mxu1 %v5463_v58  ;;  %v5506_v58 = vld [vmem:[%s10512_s7 + $0x6f8] sm:$0xff] }
 0x2fb   :  { %5307 = vmatpush.msk.msra.mxu2 %vm171_vm0, %v2572_v48  ;;  %v7969_v60 = vpop.f32.mrf.mxu3  ;;  %v5545_v48 = vld [vmem:[%s10512_s7 + $0x810] sm:$0xf]  ;;  %3000 = vmatpush.msrb.mxu3 %v5410_v25  ;;  %v5574_v25 = vld [vmem:[%s10512_s7 + $0x8d8] sm:$0xff] }
 0x2fc   :  { %3140 = vmatpush.msra.mxu1 %v5461_v38  ;;  %v5543_v38 = vld [vmem:[%s10512_s7 + $0x800] sm:$0xff] }
 0x2fd   :  { %2663 = vmatpush.msra.mxu2 %v2570_v32  ;;  %v2565_v32 = vld [vmem:[%s10512_s7 + $0x88] sm:$0xff] }
 0x2ff   :  { %2664 = vmatpush.msra.mxu2 %v2568_v63  ;;  %5266 = vmatmul.msk.f32.gmra.mxu3 %vm1720_vm3, %v7587_v36  ;;  %v2558_v36 = vld [vmem:[%s10512_s7 + $0x50] sm:$0xff] }
 0x301   :  { %2665 = vmatpush.msra.mxu2 %v2566_v1  ;;  %v5408_v1 = vld [vmem:[%s10512_s7 + $0x448] sm:$0xff] }
 0x302   :  { %5306 = vmatmul.msk.f32.vlgmr.msrb.gmra.mxu2 %vm1720_vm3, %v2519_v39  ;;  %v2141_v39 = vpop.f32.mrf.mxu1  ;;  %3001 = vmatpush.msrb.mxu3 %v5408_v1  ;;  %v5572_v1 = vld [vmem:[%s10512_s7 + $0x8c8] sm:$0xff] }
 0x303   :  { %2666 = vmatpush.msra.mxu2 %v2564_v15  ;;  %v7992_v28 = vpop.f32.mrf.mxu3 }
 0x304   :  { %3002 = vmatpush.msrb.mxu3 %v5406_v11  ;;  %v5327_v11 = vld [vmem:[%s10512_s7 + $0x220] sm:$0xff] }
 0x305   :  { %2667 = vmatpush.msra.mxu2 %v2562_v4  ;;  %v2563_v4 = vld [vmem:[%s10512_s7 + $0x78] sm:$0xff] }
 0x307   :  { %2668 = vmatpush.msra.mxu2 %v2560_v50  ;;  %5267 = vmatmul.msk.f32.gmra.mxu3 %vm1720_vm3, %v7615_v18  ;;  %v2133_v18 = vadd.f32 %v7858_v31, %v7856_v41  ;;  %v1938_v41 = vpop.f32.mrf.mxu0  ;;  %v8027_v31 = vadd.f32 %v7944_v35, %v2454_v13  ;;  %v5504_v50 = vld [vmem:[%s10512_s7 + $0x6e8] sm:$0xff]  ;;  %v2559_v13 = vld [vmem:[%s10512_s7 + $0x58] sm:$0xff] }
 0x309   :  { %2669 = vmatpush.msra.mxu2 %v2558_v36  ;;  %v5541_v36 = vld [vmem:[%s10512_s7 + $0x7f0] sm:$0xff] }
 0x30b   :  { %2670 = vmatpush.msra.mxu2 %v2556_v43  ;;  %v2376_v47 = vpop.f32.mrf.mxu3  ;;  %v5502_v43 = vld [vmem:[%s10512_s7 + $0x6d8] sm:$0xff] }
 0x30c   :  { %v2458_v29 = vadd.f32 %v2376_v47, %v2133_v18  ;;  %v5537_v47 = vld [vmem:[%s10512_s7 + $0x7d0] sm:$0xff] }
 0x30d   :  { %2671 = vmatpush.msra.mxu2 %v2554_v5  ;;  %v5500_v5 = vld [vmem:[%s10512_s7 + $0x6c8] sm:$0xff] }
 0x30e   :  { %v8030_v3 = vadd.f32 %v7944_v35, %v2458_v29 }
 0x30f   :  { %2672 = vmatpush.msra.mxu2 %v2552_v7  ;;  %5268 = vmatmul.msk.f32.gmra.mxu3 %vm1720_vm3, %v7643_v55  ;;  %v2518_v55 = vmax.f32 %v8027_v31, 0.0  ;;  %v1941_v34 = vpop.f32.mrf.mxu0  ;;  %v2557_v7 = vld [vmem:[%s10512_s7 + $0x48] sm:$0xff] }
 0x310   :  { %v2522_v22 = vmax.f32 %v8030_v3, 0.0  ;;  %v2142_v29 = vadd.f32 %v2141_v39, %v1941_v34  ;;  %v5576_v34 = vld [vmem:[%s10512_s7 + $0x8e8] sm:$0xf]  ;;  %v5825_v3 = vld [vmem:[%s10512_s7 + $0xf90] sm:$0xff] }
 0x311   :  { %2673 = vmatpush.msra.mxu2 %v2550_v23  ;;  %v2144_v23 = vpop.f32.mrf.mxu1 }
 0x312   :  { %5400 = vmatmul.msk.f32.vlgmr.msrb.gmra.mxu0 %vm1720_vm3, %v2522_v22 }
 0x313   :  { %2674 = vmatpush.msra.mxu2 %v2548_v8  ;;  %5519 = vmatpush.msk.msrb.mxu0 %vm171_vm0, %v5516_v33  ;;  %v2379_v46 = vpop.f32.mrf.mxu3  ;;  %v5404_v8 = vld [vmem:[%s10512_s7 + $0x428] sm:$0xff] }
 0x314   :  { %v2459_v49 = vadd.f32 %v2379_v46, %v2136_v59  ;;  %5308 = vmatmul.msk.f32.vlgmr.msra.gmra.mxu2 %vm1720_vm3, %v2518_v55  ;;  %v5496_v59 = vld [vmem:[%s10512_s7 + $0x6a8] sm:$0xff]  ;;  %v5494_v46 = vld [vmem:[%s10512_s7 + $0x698] sm:$0xff]  ;;  %3003 = vmatpush.msrb.mxu3 %v5404_v8  ;;  %v5601_v8 = vld [vmem:[%s10512_s7 + $0x990] sm:$0xff] }
 0x315   :  { %5309 = vmatpush.msk.msrb.mxu2 %vm171_vm0, %v2573_v37  ;;  %3227 = vmatpush.msrb.mxu0 %v5514_v12  ;;  %v5533_v37 = vld [vmem:[%s10512_s7 + $0x7b0] sm:$0xff] }
 0x316   :  { %v8080_v10 = vadd.f32 %v7944_v35, %v2459_v49  ;;  %v5531_v49 = vld [vmem:[%s10512_s7 + $0x7a0] sm:$0xff] }
 0x317   :  { %2683 = vmatpush.msrb.mxu2 %v2571_v56  ;;  %3228 = vmatpush.msrb.mxu0 %v5512_v20  ;;  %v5402_v56 = vld [vmem:[%s10512_s7 + $0x418] sm:$0xff] }
 0x318   :  { %v2523_v14 = vmax.f32 %v8080_v10, 0.0  ;;  %5269 = vmatmul.msk.f32.gmra.mxu3 %vm1720_vm3, %v7678_v40  ;;  %v2139_v40 = vadd.f32 %v2138_v51, %v1938_v41  ;;  %v5498_v41 = vld [vmem:[%s10512_s7 + $0x6b8] sm:$0xff]  ;;  %v5535_v51 = vld [vmem:[%s10512_s7 + $0x7c0] sm:$0xff] }
 0x319   :  { %2684 = vmatpush.msrb.mxu2 %v2569_v0  ;;  %3229 = vmatpush.msrb.mxu0 %v5510_v30  ;;  %v5492_v0 = vld [vmem:[%s10512_s7 + $0x688] sm:$0xff]  ;;  %v5529_v30 = vld [vmem:[%s10512_s7 + $0x790] sm:$0xff]  ;;  %v5314_v10 = vld [vmem:[%s10512_s7 + $0x1b8] sm:$0xff] }
 0x31a   :  { %5428 = vmatmul.msk.f32.vlgmr.msrb.gmra.mxu1 %vm1720_vm3, %v2523_v14  ;;  %3004 = vmatpush.msrb.mxu3 %v5402_v56 }
 0x31b   :  { %2685 = vmatpush.msrb.mxu2 %v2567_v21  ;;  %3230 = vmatpush.msrb.mxu0 %v5508_v42  ;;  %v2382_v63 = vpop.f32.mrf.mxu3  ;;  %v5527_v42 = vld [vmem:[%s10512_s7 + $0x780] sm:$0xff] }
 0x31c   :  { %5547 = vmatpush.msk.msrb.mxu1 %vm171_vm0, %v5545_v48  ;;  %v2460_v15 = vadd.f32 %v2382_v63, %v2139_v40  ;;  %v5335_v48 = vld [vmem:[%s10512_s7 + $0x260] sm:$0xf] }
 0x31d   :  { %2686 = vmatpush.msrb.mxu2 %v2565_v32  ;;  %3231 = vmatpush.msrb.mxu0 %v5506_v58  ;;  %v2147_v32 = vpop.f32.mrf.mxu1  ;;  %v5525_v58 = vld [vmem:[%s10512_s7 + $0x770] sm:$0xff] }
 0x31e   :  { %v8132_v52 = vadd.f32 %v7944_v35, %v2460_v15  ;;  %3285 = vmatpush.msrb.mxu1 %v5543_v38  ;;  %v5333_v38 = vld [vmem:[%s10512_s7 + $0x250] sm:$0xff]  ;;  %v5523_v15 = vld [vmem:[%s10512_s7 + $0x760] sm:$0xff] }
 0x31f   :  { %2687 = vmatpush.msrb.mxu2 %v2563_v4  ;;  %3232 = vmatpush.msrb.mxu0 %v5504_v50  ;;  %v5570_v4 = vld [vmem:[%s10512_s7 + $0x8b8] sm:$0xff]  ;;  %v5521_v50 = vld [vmem:[%s10512_s7 + $0x750] sm:$0xff] }
 0x320   :  { %v2524_v18 = vmax.f32 %v8132_v52, 0.0  ;;  %3286 = vmatpush.msrb.mxu1 %v5541_v36  ;;  %5270 = vmatmul.msk.f32.gmra.mxu3 %vm1720_vm3, %v7725_v2  ;;  %v1944_v2 = vpop.f32.mrf.mxu0  ;;  %v5486_v36 = vld [vmem:[%s10512_s7 + $0x678] sm:$0xf]  ;;  %v5885_v52 = vld [vmem:[%s10512_s7 + $0x1130] sm:$0xff] }
 0x321   :  { %2688 = vmatpush.msrb.mxu2 %v2561_v57  ;;  %3233 = vmatpush.msrb.mxu0 %v5502_v43  ;;  %v2145_v16 = vadd.f32 %v2144_v23, %v1944_v2  ;;  %v5568_v43 = vld [vmem:[%s10512_s7 + $0x8a8] sm:$0xff]  ;;  %v5603_v2 = vld [vmem:[%s10512_s7 + $0x9a0] sm:$0xff] }
 0x322   :  { %3287 = vmatpush.msrb.mxu1 %v5539_v27  ;;  %5460 = vmatmul.msk.f32.vlgmr.msra.gmra.mxu0 %vm1720_vm3, %v2524_v18  ;;  %v5564_v23 = vld [vmem:[%s10512_s7 + $0x888] sm:$0xff] }
 0x323   :  { %2689 = vmatpush.msrb.mxu2 %v2559_v13  ;;  %3234 = vmatpush.msrb.mxu0 %v5500_v5  ;;  %v2385_v53 = vpop.f32.mrf.mxu3  ;;  %v5605_v13 = vld [vmem:[%s10512_s7 + $0x9b0] sm:$0xf]  ;;  %v5484_v5 = vld [vmem:[%s10512_s7 + $0x668] sm:$0xff] }
 0x324   :  { %3288 = vmatpush.msrb.mxu1 %v5537_v47  ;;  %v2461_v33 = vadd.f32 %v2385_v53, %v2142_v29  ;;  %v5566_v29 = vld [vmem:[%s10512_s7 + $0x898] sm:$0xff]  ;;  %5489 = vmatpush.msk.msra.mxu3 %vm171_vm0, %v5486_v36  ;;  %v5589_v36 = vld [vmem:[%s10512_s7 + $0x930] sm:$0xff] }
 0x325   :  { %2690 = vmatpush.msrb.mxu2 %v2557_v7  ;;  %3235 = vmatpush.msrb.mxu0 %v5498_v41  ;;  %v5325_v41 = vld [vmem:[%s10512_s7 + $0x210] sm:$0xff] }
 0x326   :  { %v8183_v12 = vadd.f32 %v7944_v35, %v2461_v33  ;;  %3289 = vmatpush.msrb.mxu1 %v5535_v51  ;;  %3149 = vmatpush.msra.mxu3 %v5484_v5  ;;  %v2150_v51 = vpop.f32.mrf.mxu1  ;;  %v5482_v33 = vld [vmem:[%s10512_s7 + $0x658] sm:$0xff] }
 0x327   :  { %2691 = vmatpush.msrb.mxu2 %v2555_v45  ;;  %3236 = vmatpush.msrb.mxu0 %v5496_v59  ;;  %v5323_v45 = vld [vmem:[%s10512_s7 + $0x200] sm:$0xff]  ;;  %v5562_v59 = vld [vmem:[%s10512_s7 + $0x878] sm:$0xff] }
 0x328   :  { %v2525_v20 = vmax.f32 %v8183_v12, 0.0  ;;  %3290 = vmatpush.msrb.mxu1 %v5533_v37  ;;  %5271 = vmatmul.msk.f32.gmra.mxu3 %vm1720_vm3, %v7771_v19  ;;  %v2549_v19 = vld [vmem:[%s10512_s7 + $0x8] sm:$0xff]  ;;  %v1947_v40 = vpop.f32.mrf.mxu0  ;;  %v5359_v12 = vld [vmem:[%s10512_s7 + $0x300] sm:$0xff] }
 0x329   :  { %2692 = vmatpush.msrb.mxu2 %v2553_v9  ;;  %3237 = vmatpush.msrb.mxu0 %v5494_v46  ;;  %v2148_v57 = vadd.f32 %v2147_v32, %v1947_v40  ;;  %v5599_v9 = vld [vmem:[%s10512_s7 + $0x980] sm:$0xff]  ;;  %v5321_v46 = vld [vmem:[%s10512_s7 + $0x1f0] sm:$0xff] }
 0x32a   :  { %3291 = vmatpush.msrb.mxu1 %v5531_v49  ;;  %3150 = vmatpush.msra.mxu3 %v5482_v33  ;;  %v5332_v33 = vld [vmem:[%s10512_s7 + $0x248] sm:$0xff] }
 0x32b   :  { %2693 = vmatpush.msrb.mxu2 %v2551_v6  ;;  %5488 = vmatmul.msk.f32.vlgmr.msra.gmra.mxu1 %vm1720_vm3, %v2525_v20  ;;  %v2388_v21 = vpop.f32.mrf.mxu3  ;;  %v5560_v6 = vld [vmem:[%s10512_s7 + $0x868] sm:$0xff] }
 0x32c   :  { %3238 = vmatpush.msrb.mxu0 %v5492_v0  ;;  %3292 = vmatpush.msrb.mxu1 %v5529_v30  ;;  %v2462_v39 = vadd.f32 %v2388_v21, %v2145_v16  ;;  %v5597_v0 = vld [vmem:[%s10512_s7 + $0x970] sm:$0xff]  ;;  %v2127_v30 = vadd.f32 %v7746_v62, %v7744_v44  ;;  %v5319_v16 = vld [vmem:[%s10512_s7 + $0x1e0] sm:$0xff]  ;;  %v5558_v44 = vld [vmem:[%s10512_s7 + $0x858] sm:$0xff] }
 0x32d   :  { %2694 = vmatpush.msrb.mxu2 %v2549_v19  ;;  %v5478_v19 = vld [vmem:[%s10512_s7 + $0x638] sm:$0xff]  ;;  %v5595_v62 = vld [vmem:[%s10512_s7 + $0x960] sm:$0xff] }
 0x32e   :  { %5579 = vmatpush.msk.msra.mxu0 %vm171_vm0, %v5576_v34  ;;  %v8232_v63 = vadd.f32 %v7944_v35, %v2462_v39  ;;  %5310 = vmatmul.msk.f32.vlgmr.msrb.gmra.mxu2 %vm1720_vm3, %v2518_v55  ;;  %v5331_v55 = vld [vmem:[%s10512_s7 + $0x240] sm:$0xff]  ;;  %v2456_v21 = vadd.f32 %v7969_v60, %v2127_v30  ;;  %v5556_v39 = vld [vmem:[%s10512_s7 + $0x848] sm:$0xff]  ;;  %v2153_v32 = vpop.f32.mrf.mxu1  ;;  %v5626_v30 = vld [vmem:[%s10512_s7 + $0xa38] sm:$0xff] }
 0x32f   :  { %3293 = vmatpush.msrb.mxu1 %v5527_v42  ;;  %5337 = vmatpush.msk.msra.mxu2 %vm171_vm0, %v5335_v48  ;;  %v5317_v42 = vld [vmem:[%s10512_s7 + $0x1d0] sm:$0xff]  ;;  %v5315_v60 = vld [vmem:[%s10512_s7 + $0x1c0] sm:$0xff] }
 0x330   :  { %3383 = vmatpush.msra.mxu0 %v5574_v25  ;;  %v2526_v31 = vmax.f32 %v8232_v63, 0.0  ;;  %5272 = vmatmul.msk.f32.gmra.mxu3 %vm1720_vm3, %v7822_v61  ;;  %v5329_v61 = vld [vmem:[%s10512_s7 + $0x230] sm:$0xff]  ;;  %v1950_v53 = vpop.f32.mrf.mxu0  ;;  %v5476_v25 = vld [vmem:[%s10512_s7 + $0x628] sm:$0xff] }
 0x331   :  { %3294 = vmatpush.msrb.mxu1 %v5525_v58  ;;  %2739 = vmatpush.msra.mxu2 %v5333_v38  ;;  %v2151_v49 = vadd.f32 %v2150_v51, %v1950_v53  ;;  %v5593_v48 = vld [vmem:[%s10512_s7 + $0x950] sm:$0xff]  ;;  %v5554_v38 = vld [vmem:[%s10512_s7 + $0x838] sm:$0xff]  ;;  %v5632_v53 = vld [vmem:[%s10512_s7 + $0xa68] sm:$0xff] }
 0x332   :  { %3384 = vmatpush.msra.mxu0 %v5572_v1  ;;  %v5591_v1 = vld [vmem:[%s10512_s7 + $0x940] sm:$0xff]  ;;  %v5472_v51 = vld [vmem:[%s10512_s7 + $0x608] sm:$0xff]  ;;  %v5945_v63 = vld [vmem:[%s10512_s7 + $0x12d0] sm:$0xff] }
 0x333   :  { %3295 = vmatpush.msrb.mxu1 %v5523_v15  ;;  %5520 = vmatmul.msk.f32.vlgmr.msrb.gmra.mxu0 %vm1720_vm3, %v2526_v31  ;;  %v2391_v27 = vpop.f32.mrf.mxu3  ;;  %v8372_v15 = vadd.f32 %v7944_v35, %v2456_v21  ;;  %v5661_v21 = vld [vmem:[%s10512_s7 + $0xb30] sm:$0xff] }
 0x334   :  { %2740 = vmatpush.msra.mxu2 %v5331_v55  ;;  %3385 = vmatpush.msra.mxu0 %v5570_v4  ;;  %v2463_v47 = vadd.f32 %v2391_v27, %v2148_v57  ;;  %v5313_v55 = vld [vmem:[%s10512_s7 + $0x1b0] sm:$0xff]  ;;  %v5636_v27 = vld [vmem:[%s10512_s7 + $0xa88] sm:$0xf] }
 0x335   :  { %3296 = vmatpush.msrb.mxu1 %v5521_v50  ;;  %v5552_v50 = vld [vmem:[%s10512_s7 + $0x828] sm:$0xff] }
 0x336   :  { %2741 = vmatpush.msra.mxu2 %v5329_v61  ;;  %3386 = vmatpush.msra.mxu0 %v5568_v43  ;;  %v8288_v7 = vadd.f32 %v7944_v35, %v2463_v47  ;;  %v5311_v61 = vld [vmem:[%s10512_s7 + $0x1a0] sm:$0xff]  ;;  %v5336_v47 = vld [vmem:[%s10512_s7 + $0x268] sm:$0xf] }
 0x337   :  { %5607 = vmatpush.msk.msra.mxu1 %vm171_vm0, %v5605_v13  ;;  %v2520_v13 = vmax.f32 %v8372_v15, 0.0  ;;  %v5692_v15 = vld [vmem:[%s10512_s7 + $0xc08] sm:$0xff] }
 0x338   :  { %2742 = vmatpush.msra.mxu2 %v5327_v11  ;;  %3387 = vmatpush.msra.mxu0 %v5566_v29  ;;  %v2527_v37 = vmax.f32 %v8288_v7, 0.0  ;;  %v1953_v40 = vpop.f32.mrf.mxu0  ;;  %v5587_v11 = vld [vmem:[%s10512_s7 + $0x920] sm:$0xff]  ;;  %v5634_v29 = vld [vmem:[%s10512_s7 + $0xa78] sm:$0xff]  ;;  %v5709_v7 = vld [vmem:[%s10512_s7 + $0xc70] sm:$0xff] }
 0x339   :  { %3441 = vmatpush.msra.mxu1 %v5603_v2  ;;  %5273 = vmatmul.msk.f32.gmra.mxu3 %vm1720_vm3, %v7866_v17  ;;  %v5480_v17 = vld [vmem:[%s10512_s7 + $0x648] sm:$0xff]  ;;  %v2154_v57 = vadd.f32 %v2153_v32, %v1953_v40  ;;  %v5334_v2 = vld [vmem:[%s10512_s7 + $0x258] sm:$0xff]  ;;  %v5659_v40 = vld [vmem:[%s10512_s7 + $0xb20] sm:$0xff] }
 0x33a   :  { %2743 = vmatpush.msra.mxu2 %v5325_v41  ;;  %3388 = vmatpush.msra.mxu0 %v5564_v23  ;;  %v5585_v41 = vld [vmem:[%s10512_s7 + $0x910] sm:$0xff]  ;;  %v5322_v32 = vld [vmem:[%s10512_s7 + $0x1f8] sm:$0xff] }
 0x33b   :  { %3442 = vmatpush.msra.mxu1 %v5601_v8  ;;  %v2394_v56 = vpop.f32.mrf.mxu3  ;;  %3151 = vmatpush.msra.mxu3 %v5480_v17  ;;  %v2238_v23 = vld [vmem:[#allocation3 + $0xf0] sm:$0xff]  ;;  %v5330_v17 = vld [vmem:[%s10512_s7 + $0x238] sm:$0xff] }
 0x33c   :  { %2744 = vmatpush.msra.mxu2 %v5323_v45  ;;  %3389 = vmatpush.msra.mxu0 %v5562_v59  ;;  %v2464_v34 = vadd.f32 %v2394_v56, %v2151_v49  ;;  %v5583_v45 = vld [vmem:[%s10512_s7 + $0x900] sm:$0xff]  ;;  %v5630_v59 = vld [vmem:[%s10512_s7 + $0xa58] sm:$0xff]  ;;  %v5628_v49 = vld [vmem:[%s10512_s7 + $0xa48] sm:$0xff] }
 0x33d   :  { %3443 = vmatpush.msra.mxu1 %v5599_v9  ;;  %3152 = vmatpush.msra.mxu3 %v5478_v19  ;;  %v5470_v9 = vld [vmem:[%s10512_s7 + $0x5f8] sm:$0xff]  ;;  %v5663_v19 = vld [vmem:[%s10512_s7 + $0xb40] sm:$0xff] }
 0x33e   :  { %2745 = vmatpush.msra.mxu2 %v5321_v46  ;;  %5548 = vmatmul.msk.f32.vlgmr.msrb.gmra.mxu1 %vm1720_vm3, %v2527_v37  ;;  %v8361_v58 = vadd.f32 %v7944_v35, %v2464_v34  ;;  %v5581_v46 = vld [vmem:[%s10512_s7 + $0x8f0] sm:$0xff]  ;;  %v5326_v34 = vld [vmem:[%s10512_s7 + $0x218] sm:$0xff] }
 0x33f   :  { %3390 = vmatpush.msra.mxu0 %v5560_v6  ;;  %3444 = vmatpush.msra.mxu1 %v5597_v0  ;;  %v5665_v6 = vld [vmem:[%s10512_s7 + $0xb50] sm:$0xf]  ;;  %v5328_v0 = vld [vmem:[%s10512_s7 + $0x228] sm:$0xff] }
 0x340   :  { %2746 = vmatpush.msra.mxu2 %v5319_v16  ;;  %3153 = vmatpush.msra.mxu3 %v5476_v25  ;;  %v2528_v43 = vmax.f32 %v8361_v58, 0.0  ;;  %v2239_v16 = vld [vmem:[#allocation3 + $0xf8] sm:$0xff]  ;;  %v6005_v58 = vld [vmem:[%s10512_s7 + $0x1470] sm:$0xff] }
 0x341   :  { %3391 = vmatpush.msra.mxu0 %v5558_v44  ;;  %3445 = vmatpush.msra.mxu1 %v5595_v62  ;;  %v5624_v44 = vld [vmem:[%s10512_s7 + $0xa28] sm:$0xff]  ;;  %v5466_v25 = vld [vmem:[%s10512_s7 + $0x5d8] sm:$0xff] }
 0x342   :  { %2747 = vmatpush.msra.mxu2 %v5317_v42  ;;  %5274 = vmatmul.msk.f32.gmra.mxu3 %vm1720_vm3, %v7903_v54  ;;  %v5474_v54 = vld [vmem:[%s10512_s7 + $0x618] sm:$0xff]  ;;  %v5468_v62 = vld [vmem:[%s10512_s7 + $0x5e8] sm:$0xff] }
 0x343   :  { %3392 = vmatpush.msra.mxu0 %v5556_v39  ;;  %3446 = vmatpush.msra.mxu1 %v5593_v48  ;;  %v2397_v4 = vpop.f32.mrf.mxu3  ;;  %v5324_v42 = vld [vmem:[%s10512_s7 + $0x208] sm:$0xff]  ;;  %v1956_v39 = vpop.f32.mrf.mxu0 }
 0x344   :  { %2748 = vmatpush.msra.mxu2 %v5315_v60  ;;  %3154 = vmatpush.msra.mxu3 %v5474_v54  ;;  %v2465_v5 = vadd.f32 %v2397_v4, %v2154_v57  ;;  %v2156_v48 = vpop.f32.mrf.mxu1  ;;  %v5622_v60 = vld [vmem:[%s10512_s7 + $0xa18] sm:$0xff]  ;;  %v5657_v4 = vld [vmem:[%s10512_s7 + $0xb10] sm:$0xff] }
 0x345   :  { %3393 = vmatpush.msra.mxu0 %v5554_v38  ;;  %3447 = vmatpush.msra.mxu1 %v5591_v1  ;;  %v5620_v1 = vld [vmem:[%s10512_s7 + $0xa08] sm:$0xff]  ;;  %v2157_v54 = vadd.f32 %v2156_v48, %v1956_v39  ;;  %v5462_v57 = vld [vmem:[%s10512_s7 + $0x5b8] sm:$0xff] }
 0x346   :  { %2749 = vmatpush.msra.mxu2 %v5313_v55  ;;  %v8424_v8 = vadd.f32 %v7944_v35, %v2465_v5  ;;  %3155 = vmatpush.msra.mxu3 %v5472_v51  ;;  %v5464_v55 = vld [vmem:[%s10512_s7 + $0x5c8] sm:$0xff]  ;;  %v5318_v5 = vld [vmem:[%s10512_s7 + $0x1d8] sm:$0xff]  ;;  %v5651_v51 = vld [vmem:[%s10512_s7 + $0xae0] sm:$0xff] }
 0x347   :  { %3394 = vmatpush.msra.mxu0 %v5552_v50  ;;  %3448 = vmatpush.msra.mxu1 %v5589_v36  ;;  %v5320_v50 = vld [vmem:[%s10512_s7 + $0x1e8] sm:$0xff]  ;;  %v5618_v36 = vld [vmem:[%s10512_s7 + $0x9f8] sm:$0xff] }
 0x348   :  { %2750 = vmatpush.msra.mxu2 %v5311_v61  ;;  %5580 = vmatmul.msk.f32.vlgmr.msra.gmra.mxu0 %vm1720_vm3, %v2528_v43  ;;  %v2529_v56 = vmax.f32 %v8424_v8, 0.0  ;;  %v5536_v48 = vld [vmem:[%s10512_s7 + $0x7c8] sm:$0xff]  ;;  %v5769_v8 = vld [vmem:[%s10512_s7 + $0xe10] sm:$0xff] }
 0x349   :  { %5639 = vmatpush.msk.msrb.mxu0 %vm171_vm0, %v5636_v27  ;;  %5338 = vmatmul.msk.f32.vlgmr.msra.gmra.mxu2 %vm1720_vm3, %v2520_v13  ;;  %v5655_v27 = vld [vmem:[%s10512_s7 + $0xb00] sm:$0xff] }
 0x34a   :  { %5339 = vmatpush.msk.msrb.mxu2 %vm171_vm0, %v5336_v47  ;;  %3449 = vmatpush.msra.mxu1 %v5587_v11  ;;  %v5616_v47 = vld [vmem:[%s10512_s7 + $0x9e8] sm:$0xff]  ;;  %v5546_v11 = vld [vmem:[%s10512_s7 + $0x818] sm:$0xf] }
 0x34b   :  { %3539 = vmatpush.msrb.mxu0 %v5634_v29  ;;  %5275 = vmatmul.msk.f32.gmra.mxu3 %vm1720_vm3, %v2238_v23  ;;  %v2400_v38 = vpop.f32.mrf.mxu3  ;;  %v5653_v29 = vld [vmem:[%s10512_s7 + $0xaf0] sm:$0xff] }
 0x34c   :  { %2759 = vmatpush.msrb.mxu2 %v5334_v2  ;;  %3450 = vmatpush.msra.mxu1 %v5585_v41  ;;  %v2466_v61 = vadd.f32 %v2400_v38, %v2157_v54  ;;  %v5316_v2 = vld [vmem:[%s10512_s7 + $0x1c8] sm:$0xff]  ;;  %v5614_v41 = vld [vmem:[%s10512_s7 + $0x9d8] sm:$0xff]  ;;  %v5725_v38 = vld [vmem:[%s10512_s7 + $0xcf0] sm:$0xf] }
 0x34d   :  { %3540 = vmatpush.msrb.mxu0 %v5632_v53  ;;  %3156 = vmatpush.msra.mxu3 %v5470_v9  ;;  %v5544_v53 = vld [vmem:[%s10512_s7 + $0x808] sm:$0xff]  ;;  %v5649_v9 = vld [vmem:[%s10512_s7 + $0xad0] sm:$0xff]  ;;  %v5686_v54 = vld [vmem:[%s10512_s7 + $0xbd8] sm:$0xff] }
 0x34e   :  { %2760 = vmatpush.msrb.mxu2 %v5332_v33  ;;  %3451 = vmatpush.msra.mxu1 %v5583_v45  ;;  %v8533_v23 = vadd.f32 %v7944_v35, %v2466_v61  ;;  %v1959_v33 = vpop.f32.mrf.mxu0  ;;  %v2159_v45 = vpop.f32.mrf.mxu1  ;;  %v5721_v61 = vld [vmem:[%s10512_s7 + $0xcd0] sm:$0xff] }
 0x34f   :  { %3541 = vmatpush.msrb.mxu0 %v5630_v59  ;;  %3157 = vmatpush.msra.mxu3 %v5468_v62  ;;  %v5542_v59 = vld [vmem:[%s10512_s7 + $0x7f8] sm:$0xff]  ;;  %v5363_v62 = vld [vmem:[%s10512_s7 + $0x320] sm:$0xff] }
 0x350   :  { %2761 = vmatpush.msrb.mxu2 %v5330_v17  ;;  %3452 = vmatpush.msra.mxu1 %v5581_v46  ;;  %v5312_v46 = vld [vmem:[%s10512_s7 + $0x1a8] sm:$0xff] }
 0x351   :  { %5608 = vmatmul.msk.f32.vlgmr.msra.gmra.mxu1 %vm1720_vm3, %v2529_v56  ;;  %3542 = vmatpush.msrb.mxu0 %v5628_v49  ;;  %v2160_v49 = vadd.f32 %v2159_v45, %v1959_v33  ;;  %v5680_v33 = vld [vmem:[%s10512_s7 + $0xba8] sm:$0xff]  ;;  %v5717_v45 = vld [vmem:[%s10512_s7 + $0xcb0] sm:$0xff] }
 0x352   :  { %5667 = vmatpush.msk.msrb.mxu1 %vm171_vm0, %v5665_v6  ;;  %2762 = vmatpush.msrb.mxu2 %v5328_v0  ;;  %v2530_v6 = vmax.f32 %v8533_v23, 0.0  ;;  %v5696_v0 = vld [vmem:[%s10512_s7 + $0xc28] sm:$0xf]  ;;  %v6065_v23 = vld [vmem:[%s10512_s7 + $0x1610] sm:$0xff] }
 0x353   :  { %3543 = vmatpush.msrb.mxu0 %v5626_v30  ;;  %5276 = vmatmul.msk.f32.gmra.mxu3 %vm1720_vm3, %v2239_v16  ;;  %v2403_v17 = vpop.f32.mrf.mxu3  ;;  %v5365_v30 = vld [vmem:[%s10512_s7 + $0x330] sm:$0xf]  ;;  %v5540_v16 = vld [vmem:[%s10512_s7 + $0x7e8] sm:$0xff] }
 0x354   :  { %3597 = vmatpush.msrb.mxu1 %v5663_v19  ;;  %2763 = vmatpush.msrb.mxu2 %v5326_v34  ;;  %v2467_v19 = vadd.f32 %v2403_v17, %v2160_v49  ;;  %v5647_v34 = vld [vmem:[%s10512_s7 + $0xac0] sm:$0xff]  ;;  %v5678_v17 = vld [vmem:[%s10512_s7 + $0xb98] sm:$0xff] }
 0x355   :  { %3544 = vmatpush.msrb.mxu0 %v5624_v44  ;;  %3158 = vmatpush.msra.mxu3 %v5466_v25  ;;  %v5694_v44 = vld [vmem:[%s10512_s7 + $0xc18] sm:$0xff]  ;;  %v5641_v25 = vld [vmem:[%s10512_s7 + $0xa90] sm:$0xff] }
 0x356   :  { %3598 = vmatpush.msrb.mxu1 %v5661_v21  ;;  %2764 = vmatpush.msrb.mxu2 %v5324_v42  ;;  %v5538_v21 = vld [vmem:[%s10512_s7 + $0x7d8] sm:$0xff]  ;;  %v5645_v42 = vld [vmem:[%s10512_s7 + $0xab0] sm:$0xff]  ;;  %v8600_v39 = vadd.f32 %v7944_v35, %v2467_v19 }
 0x357   :  { %3545 = vmatpush.msrb.mxu0 %v5622_v60  ;;  %3159 = vmatpush.msra.mxu3 %v5464_v55  ;;  %v5643_v60 = vld [vmem:[%s10512_s7 + $0xaa0] sm:$0xff]  ;;  %v5690_v35 = vld [vmem:[%s10512_s7 + $0xbf8] sm:$0xff]  ;;  %v5532_v55 = vld [vmem:[%s10512_s7 + $0x7a8] sm:$0xff] }
 0x358   :  { %3599 = vmatpush.msrb.mxu1 %v5659_v40  ;;  %2765 = vmatpush.msrb.mxu2 %v5322_v32  ;;  %v5688_v40 = vld [vmem:[%s10512_s7 + $0xbe8] sm:$0xff]  ;;  %v2531_v32 = vmax.f32 %v8600_v39, 0.0  ;;  %v5345_v19 = vld [vmem:[%s10512_s7 + $0x290] sm:$0xff] }
 0x359   :  { %3546 = vmatpush.msrb.mxu0 %v5620_v1  ;;  %3160 = vmatpush.msra.mxu3 %v5462_v57  ;;  %v5357_v1 = vld [vmem:[%s10512_s7 + $0x2f0] sm:$0xff]  ;;  %v5684_v57 = vld [vmem:[%s10512_s7 + $0xbc8] sm:$0xff] }
 0x35a   :  { %3600 = vmatpush.msrb.mxu1 %v5657_v4  ;;  %2766 = vmatpush.msrb.mxu2 %v5320_v50  ;;  %v5723_v4 = vld [vmem:[%s10512_s7 + $0xce0] sm:$0xff]  ;;  %v5829_v39 = vld [vmem:[%s10512_s7 + $0xfb0] sm:$0xff] }
 0x35b   :  { %3547 = vmatpush.msrb.mxu0 %v5618_v36  ;;  %5430 = vmatmul.msk.f32.vlgmr.msrb.gmra.mxu3 %vm1720_vm3, %v2523_v14  ;;  %v5612_v14 = vld [vmem:[%s10512_s7 + $0x9c8] sm:$0xff]  ;;  %v5355_v50 = vld [vmem:[%s10512_s7 + $0x2e0] sm:$0xff]  ;;  %v5530_v36 = vld [vmem:[%s10512_s7 + $0x798] sm:$0xff] }
 0x35c   :  { %3601 = vmatpush.msrb.mxu1 %v5655_v27  ;;  %2767 = vmatpush.msrb.mxu2 %v5318_v5  ;;  %v5353_v27 = vld [vmem:[%s10512_s7 + $0x2d0] sm:$0xff]  ;;  %v1962_v5 = vpop.f32.mrf.mxu0 }
 0x35d   :  { %3548 = vmatpush.msrb.mxu0 %v5616_v47  ;;  %5549 = vmatpush.msk.msrb.mxu3 %vm171_vm0, %v5546_v11  ;;  %v2162_v47 = vpop.f32.mrf.mxu1  ;;  %v5528_v11 = vld [vmem:[%s10512_s7 + $0x788] sm:$0xff] }
 0x35e   :  { %3602 = vmatpush.msrb.mxu1 %v5653_v29  ;;  %2768 = vmatpush.msrb.mxu2 %v5316_v2  ;;  %v5682_v29 = vld [vmem:[%s10512_s7 + $0xbb8] sm:$0xff]  ;;  %v5719_v2 = vld [vmem:[%s10512_s7 + $0xcc0] sm:$0xff] }
 0x35f   :  { %3549 = vmatpush.msrb.mxu0 %v5614_v41  ;;  %3305 = vmatpush.msrb.mxu3 %v5544_v53  ;;  %v5351_v41 = vld [vmem:[%s10512_s7 + $0x2c0] sm:$0xff]  ;;  %v2406_v53 = vpop.f32.mrf.mxu3 }
 0x360   :  { %3603 = vmatpush.msrb.mxu1 %v5651_v51  ;;  %2769 = vmatpush.msrb.mxu2 %v5314_v10  ;;  %v5526_v51 = vld [vmem:[%s10512_s7 + $0x778] sm:$0xff]  ;;  %v5349_v10 = vld [vmem:[%s10512_s7 + $0x2b0] sm:$0xff] }
 0x361   :  { %3550 = vmatpush.msrb.mxu0 %v5612_v14  ;;  %3306 = vmatpush.msrb.mxu3 %v5542_v59  ;;  %v2130_v14 = vadd.f32 %v7805_v26, %v7803_v24  ;;  %v2163_v59 = vadd.f32 %v2162_v47, %v1962_v5  ;;  %v5347_v24 = vld [vmem:[%s10512_s7 + $0x2a0] sm:$0xff]  ;;  %v5752_v5 = vld [vmem:[%s10512_s7 + $0xda8] sm:$0xff]  ;;  %v5362_v47 = vld [vmem:[%s10512_s7 + $0x318] sm:$0xff] }
 0x362   :  { %3604 = vmatpush.msrb.mxu1 %v5649_v9  ;;  %2770 = vmatpush.msrb.mxu2 %v5312_v46  ;;  %v5524_v9 = vld [vmem:[%s10512_s7 + $0x768] sm:$0xff]  ;;  %v5715_v46 = vld [vmem:[%s10512_s7 + $0xca0] sm:$0xff] }
 0x363   :  { %5640 = vmatmul.msk.f32.vlgmr.msrb.gmra.mxu0 %vm1720_vm3, %v2530_v6  ;;  %5340 = vmatmul.msk.f32.vlgmr.msrb.gmra.mxu2 %vm1720_vm3, %v2520_v13  ;;  %v5361_v13 = vld [vmem:[%s10512_s7 + $0x310] sm:$0xff]  ;;  %v2457_v26 = vadd.f32 %v7992_v28, %v2130_v14  ;;  %v2468_v49 = vadd.f32 %v2406_v53, %v2163_v59  ;;  %v5606_v28 = vld [vmem:[%s10512_s7 + $0x9b8] sm:$0xf]  ;;  %v5360_v53 = vld [vmem:[%s10512_s7 + $0x308] sm:$0xff] }
 0x364   :  { %5699 = vmatpush.msk.msra.mxu0 %vm171_vm0, %v5696_v0  ;;  %5367 = vmatpush.msk.msra.mxu2 %vm171_vm0, %v5365_v30  ;;  %v5522_v0 = vld [vmem:[%s10512_s7 + $0x758] sm:$0xff]  ;;  %v5676_v30 = vld [vmem:[%s10512_s7 + $0xb88] sm:$0xff]  ;;  %v5785_v59 = vld [vmem:[%s10512_s7 + $0xe90] sm:$0xf] }
 0x365   :  { %3307 = vmatpush.msrb.mxu3 %v5540_v16  ;;  %3605 = vmatpush.msrb.mxu1 %v5647_v34  ;;  %v5713_v16 = vld [vmem:[%s10512_s7 + $0xc90] sm:$0xff]  ;;  %v5674_v34 = vld [vmem:[%s10512_s7 + $0xb78] sm:$0xff] }
 0x366   :  { %3695 = vmatpush.msra.mxu0 %v5694_v44  ;;  %2817 = vmatpush.msra.mxu2 %v5363_v62  ;;  %v5711_v44 = vld [vmem:[%s10512_s7 + $0xc80] sm:$0xff]  ;;  %v1965_v62 = vpop.f32.mrf.mxu0 }
 0x367   :  { %5490 = vmatmul.msk.f32.vlgmr.msra.gmra.mxu3 %vm1720_vm3, %v2525_v20  ;;  %3606 = vmatpush.msrb.mxu1 %v5645_v42  ;;  %v5534_v20 = vld [vmem:[%s10512_s7 + $0x7b8] sm:$0xff]  ;;  %v8724_v42 = vld [vmem:[%s10511_s6] ss:$0 sm:$0xff] }
 0x368   :  { %3308 = vmatpush.msrb.mxu3 %v5538_v21  ;;  %3696 = vmatpush.msra.mxu0 %v5692_v15  ;;  %v2165_v21 = vpop.f32.mrf.mxu1  ;;  %v8727_v15 = vadd.f32 %v8724_v42, %v2457_v26  ;;  %v5356_v26 = vld [vmem:[%s10512_s7 + $0x2e8] sm:$0xff] }
 0x369   :  { %2818 = vmatpush.msra.mxu2 %v5361_v13  ;;  %3607 = vmatpush.msrb.mxu1 %v5643_v60  ;;  %v8730_v13 = vadd.f32 %v8724_v42, %v2468_v49  ;;  %v5343_v60 = vld [vmem:[%s10512_s7 + $0x280] sm:$0xff]  ;;  %v5590_v49 = vld [vmem:[%s10512_s7 + $0x938] sm:$0xff] }
 0x36a   :  { %3309 = vmatpush.msrb.mxu3 %v5536_v48  ;;  %3697 = vmatpush.msra.mxu0 %v5690_v35  ;;  %v5604_v48 = vld [vmem:[%s10512_s7 + $0x9a8] sm:$0xff] }
 0x36b   :  { %2819 = vmatpush.msra.mxu2 %v5359_v12  ;;  %3608 = vmatpush.msrb.mxu1 %v5641_v25  ;;  %v5672_v35 = vld [vmem:[%s10512_s7 + $0xb68] sm:$0xff]  ;;  %v5602_v12 = vld [vmem:[%s10512_s7 + $0x998] sm:$0xff]  ;;  %v2166_v25 = vadd.f32 %v2165_v21, %v1965_v62  ;;  %v5779_v62 = vld [vmem:[%s10512_s7 + $0xe60] sm:$0xff] }
 0x36c   :  { %3310 = vmatpush.msrb.mxu3 %v5534_v20  ;;  %5668 = vmatmul.msk.f32.vlgmr.msrb.gmra.mxu1 %vm1720_vm3, %v2531_v32  ;;  %v5341_v20 = vld [vmem:[%s10512_s7 + $0x270] sm:$0xff]  ;;  %v5352_v21 = vld [vmem:[%s10512_s7 + $0x2c8] sm:$0xff] }
 0x36d   :  { %3698 = vmatpush.msra.mxu0 %v5688_v40  ;;  %5727 = vmatpush.msk.msra.mxu1 %vm171_vm0, %v5725_v38  ;;  %v2521_v40 = vmax.f32 %v8727_v15, 0.0  ;;  %v2532_v38 = vmax.f32 %v8730_v13, 0.0  ;;  %v5765_v15 = vld [vmem:[%s10512_s7 + $0xdf0] sm:$0xff]  ;;  %v5751_v13 = vld [vmem:[%s10512_s7 + $0xda0] sm:$0xff] }
 0x36e   :  { %2820 = vmatpush.msra.mxu2 %v5357_v1  ;;  %3311 = vmatpush.msrb.mxu3 %v5532_v55  ;;  %v5756_v1 = vld [vmem:[%s10512_s7 + $0xdc8] sm:$0xf]  ;;  %v5366_v55 = vld [vmem:[%s10512_s7 + $0x338] sm:$0xf] }
 0x36f   :  { %3699 = vmatpush.msra.mxu0 %v5686_v54  ;;  %3753 = vmatpush.msra.mxu1 %v5723_v4  ;;  %v5600_v4 = vld [vmem:[%s10512_s7 + $0x988] sm:$0xff] }
 0x370   :  { %2821 = vmatpush.msra.mxu2 %v5355_v50  ;;  %3312 = vmatpush.msrb.mxu3 %v5530_v36  ;;  %v5707_v50 = vld [vmem:[%s10512_s7 + $0xc60] sm:$0xff]  ;;  %v5754_v36 = vld [vmem:[%s10512_s7 + $0xdb8] sm:$0xff] }
 0x371   :  { %3700 = vmatpush.msra.mxu0 %v5684_v57  ;;  %3754 = vmatpush.msra.mxu1 %v5721_v61  ;;  %v5364_v57 = vld [vmem:[%s10512_s7 + $0x328] sm:$0xff]  ;;  %v5598_v61 = vld [vmem:[%s10512_s7 + $0x978] sm:$0xff] }
 0x372   :  { %2822 = vmatpush.msra.mxu2 %v5353_v27  ;;  %3313 = vmatpush.msrb.mxu3 %v5528_v11  ;;  %v5705_v27 = vld [vmem:[%s10512_s7 + $0xc50] sm:$0xff] }
 0x373   :  { %3701 = vmatpush.msra.mxu0 %v5682_v29  ;;  %3755 = vmatpush.msra.mxu1 %v5719_v2  ;;  %v5596_v29 = vld [vmem:[%s10512_s7 + $0x968] sm:$0xff]  ;;  %v5703_v2 = vld [vmem:[%s10512_s7 + $0xc40] sm:$0xff] }
 0x374   :  { %2823 = vmatpush.msra.mxu2 %v5351_v41  ;;  %3314 = vmatpush.msrb.mxu3 %v5526_v51  ;;  %v5750_v41 = vld [vmem:[%s10512_s7 + $0xd98] sm:$0xff] }
 0x375   :  { %3702 = vmatpush.msra.mxu0 %v5680_v33  ;;  %3756 = vmatpush.msra.mxu1 %v5717_v45  ;;  %v5594_v51 = vld [vmem:[%s10512_s7 + $0x958] sm:$0xff]  ;;  %v5701_v33 = vld [vmem:[%s10512_s7 + $0xc30] sm:$0xff] }
 0x376   :  { %2824 = vmatpush.msra.mxu2 %v5349_v10  ;;  %3315 = vmatpush.msrb.mxu3 %v5524_v9  ;;  %v5748_v10 = vld [vmem:[%s10512_s7 + $0xd88] sm:$0xff]  ;;  %v5358_v9 = vld [vmem:[%s10512_s7 + $0x2f8] sm:$0xff] }
 0x377   :  { %3703 = vmatpush.msra.mxu0 %v5678_v17  ;;  %3757 = vmatpush.msra.mxu1 %v5715_v46  ;;  %v5592_v17 = vld [vmem:[%s10512_s7 + $0x948] sm:$0xff]  ;;  %v5746_v46 = vld [vmem:[%s10512_s7 + $0xd78] sm:$0xff] }
 0x378   :  { %2825 = vmatpush.msra.mxu2 %v5347_v24  ;;  %3316 = vmatpush.msrb.mxu3 %v5522_v0  ;;  %v5783_v24 = vld [vmem:[%s10512_s7 + $0xe80] sm:$0xff]  ;;  %v5744_v0 = vld [vmem:[%s10512_s7 + $0xd68] sm:$0xff] }
 0x379   :  { %3704 = vmatpush.msra.mxu0 %v5676_v30  ;;  %5550 = vmatmul.msk.f32.vlgmr.msrb.gmra.mxu3 %vm1720_vm3, %v2527_v37  ;;  %v2409_v37 = vpop.f32.mrf.mxu3  ;;  %v5781_v30 = vld [vmem:[%s10512_s7 + $0xe70] sm:$0xff] }
 0x37a   :  { %3758 = vmatpush.msra.mxu1 %v5713_v16  ;;  %5609 = vmatpush.msk.msra.mxu3 %vm171_vm0, %v5606_v28  ;;  %v2469_v54 = vadd.f32 %v2409_v37, %v2166_v25  ;;  %v5354_v16 = vld [vmem:[%s10512_s7 + $0x2d8] sm:$0xff]  ;;  %v1968_v28 = vpop.f32.mrf.mxu0  ;;  %v5584_v25 = vld [vmem:[%s10512_s7 + $0x908] sm:$0xff] }
 0x37b   :  { %2826 = vmatpush.msra.mxu2 %v5345_v19  ;;  %3705 = vmatpush.msra.mxu0 %v5674_v34  ;;  %v2168_v19 = vpop.f32.mrf.mxu1  ;;  %v5588_v34 = vld [vmem:[%s10512_s7 + $0x928] sm:$0xff]  ;;  %v5350_v37 = vld [vmem:[%s10512_s7 + $0x2b8] sm:$0xff] }
 0x37c   :  { %3759 = vmatpush.msra.mxu1 %v5711_v44  ;;  %3461 = vmatpush.msra.mxu3 %v5604_v48  ;;  %v8795_v11 = vadd.f32 %v8724_v42, %v2469_v54  ;;  %v5742_v44 = vld [vmem:[%s10512_s7 + $0xd58] sm:$0xff]  ;;  %v5348_v54 = vld [vmem:[%s10512_s7 + $0x2a8] sm:$0xff] }
 0x37d   :  { %2827 = vmatpush.msra.mxu2 %v5343_v60  ;;  %3706 = vmatpush.msra.mxu0 %v5672_v35  ;;  %v8815_v45 = vpop.f32.mrf.mxu2  ;;  %v5586_v60 = vld [vmem:[%s10512_s7 + $0x918] sm:$0xff]  ;;  %v5740_v35 = vld [vmem:[%s10512_s7 + $0xd48] sm:$0xff] }
 0x37e   :  { %3760 = vmatpush.msra.mxu1 %v5709_v7  ;;  %3462 = vmatpush.msra.mxu3 %v5602_v12  ;;  %v2533_v14 = vmax.f32 %v8795_v11, 0.0  ;;  %v5777_v7 = vld [vmem:[%s10512_s7 + $0xe50] sm:$0xff]  ;;  %v2169_v12 = vadd.f32 %v2168_v19, %v1968_v28  ;;  %v5658_v19 = vld [vmem:[%s10512_s7 + $0xb18] sm:$0xff] }
 0x37f   :  { %2828 = vmatpush.msra.mxu2 %v5341_v20  ;;  %5700 = vmatmul.msk.f32.vlgmr.msra.gmra.mxu0 %vm1720_vm3, %v2532_v38  ;;  %v5393_v28 = vld [vmem:[%s10512_s7 + $0x3f0] sm:$0xff] }
 0x380   :  { %5368 = vmatmul.msk.f32.vlgmr.msra.gmra.mxu2 %vm1720_vm3, %v2521_v40  ;;  %5759 = vmatpush.msk.msrb.mxu0 %vm171_vm0, %v5756_v1  ;;  %v5738_v1 = vld [vmem:[%s10512_s7 + $0xd38] sm:$0xff]  ;;  %v5889_v11 = vld [vmem:[%s10512_s7 + $0x1150] sm:$0xff] }
 0x381   :  { %5369 = vmatpush.msk.msrb.mxu2 %vm171_vm0, %v5366_v55  ;;  %3463 = vmatpush.msra.mxu3 %v5600_v4  ;;  %v2412_v48 = vpop.f32.mrf.mxu3  ;;  %v5775_v55 = vld [vmem:[%s10512_s7 + $0xe40] sm:$0xff] }
 0x382   :  { %3761 = vmatpush.msra.mxu1 %v5707_v50  ;;  %3851 = vmatpush.msrb.mxu0 %v5754_v36  ;;  %v2470_v4 = vadd.f32 %v2412_v48, %v2169_v12  ;;  %v5582_v50 = vld [vmem:[%s10512_s7 + $0x8f8] sm:$0xff]  ;;  %v5736_v36 = vld [vmem:[%s10512_s7 + $0xd28] sm:$0xff] }
 0x383   :  { %2837 = vmatpush.msrb.mxu2 %v5364_v57  ;;  %3464 = vmatpush.msra.mxu3 %v5598_v61  ;;  %v5773_v57 = vld [vmem:[%s10512_s7 + $0xe30] sm:$0xff]  ;;  %v5666_v61 = vld [vmem:[%s10512_s7 + $0xb58] sm:$0xf] }
 0x384   :  { %3762 = vmatpush.msra.mxu1 %v5705_v27  ;;  %3852 = vmatpush.msrb.mxu0 %v5752_v5  ;;  %v5346_v27 = vld [vmem:[%s10512_s7 + $0x298] sm:$0xff] }
 0x385   :  { %2838 = vmatpush.msrb.mxu2 %v5362_v47  ;;  %3465 = vmatpush.msra.mxu3 %v5596_v29  ;;  %v8879_v20 = vpop.f32.mrf.mxu2  ;;  %v5734_v5 = vld [vmem:[%s10512_s7 + $0xd18] sm:$0xff]  ;;  %v5771_v47 = vld [vmem:[%s10512_s7 + $0xe20] sm:$0xff]  ;;  %v1971_v29 = vpop.f32.mrf.mxu0 }
 0x386   :  { %3763 = vmatpush.msra.mxu1 %v5703_v2  ;;  %3853 = vmatpush.msrb.mxu0 %v5750_v41  ;;  %v2171_v2 = vpop.f32.mrf.mxu1  ;;  %v8915_v41 = vadd.f32 %v8724_v42, %v2470_v4  ;;  %v5810_v48 = vld [vmem:[%s10512_s7 + $0xf38] sm:$0xff]  ;;  %v5843_v4 = vld [vmem:[%s10512_s7 + $0x1020] sm:$0xff] }
 0x387   :  { %2839 = vmatpush.msrb.mxu2 %v5360_v53  ;;  %3466 = vmatpush.msra.mxu3 %v5594_v51  ;;  %v5664_v53 = vld [vmem:[%s10512_s7 + $0xb48] sm:$0xff] }
 0x388   :  { %3764 = vmatpush.msra.mxu1 %v5701_v33  ;;  %3854 = vmatpush.msrb.mxu0 %v5748_v10  ;;  %v5344_v51 = vld [vmem:[%s10512_s7 + $0x288] sm:$0xff]  ;;  %v5662_v10 = vld [vmem:[%s10512_s7 + $0xb38] sm:$0xff] }
 0x389   :  { %5728 = vmatmul.msk.f32.vlgmr.msra.gmra.mxu1 %vm1720_vm3, %v2533_v14  ;;  %2840 = vmatpush.msrb.mxu2 %v5358_v9  ;;  %v5732_v33 = vld [vmem:[%s10512_s7 + $0xd08] sm:$0xff] }
 0x38a   :  { %5787 = vmatpush.msk.msrb.mxu1 %vm171_vm0, %v5785_v59  ;;  %3467 = vmatpush.msra.mxu3 %v5592_v17  ;;  %v5342_v59 = vld [vmem:[%s10512_s7 + $0x278] sm:$0xff]  ;;  %v2172_v17 = vadd.f32 %v2171_v2, %v1971_v29  ;;  %v5648_v29 = vld [vmem:[%s10512_s7 + $0xac8] sm:$0xff] }
 0x38b   :  { %3855 = vmatpush.msrb.mxu0 %v5746_v46  ;;  %2841 = vmatpush.msrb.mxu2 %v5356_v26  ;;  %v5816_v26 = vld [vmem:[%s10512_s7 + $0xf68] sm:$0xf]  ;;  %v5802_v2 = vld [vmem:[%s10512_s7 + $0xef8] sm:$0xff] }
 0x38c   :  { %3909 = vmatpush.msrb.mxu1 %v5783_v24  ;;  %3468 = vmatpush.msra.mxu3 %v5590_v49  ;;  %v2534_v24 = vmax.f32 %v8915_v41, 0.0  ;;  %v5395_v49 = vld [vmem:[%s10512_s7 + $0x400] sm:$0xf]  ;;  %v6076_v41 = vld [vmem:[%s10512_s7 + $0x1668] sm:$0xff] }
 0x38d   :  { %3856 = vmatpush.msrb.mxu0 %v5744_v0  ;;  %2842 = vmatpush.msrb.mxu2 %v5354_v16  ;;  %v5814_v16 = vld [vmem:[%s10512_s7 + $0xf58] sm:$0xff] }
 0x38e   :  { %3910 = vmatpush.msrb.mxu1 %v5781_v30  ;;  %3469 = vmatpush.msra.mxu3 %v5588_v34  ;;  %v5767_v30 = vld [vmem:[%s10512_s7 + $0xe00] sm:$0xff] }
 0x38f   :  { %3857 = vmatpush.msrb.mxu0 %v5742_v44  ;;  %2843 = vmatpush.msrb.mxu2 %v5352_v21  ;;  %v5391_v34 = vld [vmem:[%s10512_s7 + $0x3e0] sm:$0xff] }
 0x390   :  { %3911 = vmatpush.msrb.mxu1 %v5779_v62  ;;  %3470 = vmatpush.msra.mxu3 %v5586_v60  ;;  %v5656_v62 = vld [vmem:[%s10512_s7 + $0xb08] sm:$0xff]  ;;  %v5763_v21 = vld [vmem:[%s10512_s7 + $0xde0] sm:$0xff]  ;;  %v5389_v60 = vld [vmem:[%s10512_s7 + $0x3d0] sm:$0xff] }
 0x391   :  { %3858 = vmatpush.msrb.mxu0 %v5740_v35  ;;  %2844 = vmatpush.msrb.mxu2 %v5350_v37  ;;  %v5654_v35 = vld [vmem:[%s10512_s7 + $0xaf8] sm:$0xff]  ;;  %v5808_v37 = vld [vmem:[%s10512_s7 + $0xf28] sm:$0xff] }
 0x392   :  { %3912 = vmatpush.msrb.mxu1 %v5777_v7  ;;  %3471 = vmatpush.msra.mxu3 %v5584_v25  ;;  %v5761_v7 = vld [vmem:[%s10512_s7 + $0xdd0] sm:$0xff] }
 0x393   :  { %3859 = vmatpush.msrb.mxu0 %v5738_v1  ;;  %2845 = vmatpush.msrb.mxu2 %v5348_v54  ;;  %v5845_v25 = vld [vmem:[%s10512_s7 + $0x1030] sm:$0xf]  ;;  %v5387_v1 = vld [vmem:[%s10512_s7 + $0x3c0] sm:$0xff]  ;;  %v5806_v54 = vld [vmem:[%s10512_s7 + $0xf18] sm:$0xff] }
 0x394   :  { %3913 = vmatpush.msrb.mxu1 %v5775_v55  ;;  %3472 = vmatpush.msra.mxu3 %v5582_v50  ;;  %v5652_v55 = vld [vmem:[%s10512_s7 + $0xae8] sm:$0xff]  ;;  %v5385_v50 = vld [vmem:[%s10512_s7 + $0x3b0] sm:$0xff] }
 0x395   :  { %3860 = vmatpush.msrb.mxu0 %v5736_v36  ;;  %5610 = vmatmul.msk.f32.vlgmr.msra.gmra.mxu3 %vm1720_vm3, %v2529_v56  ;;  %v2415_v56 = vpop.f32.mrf.mxu3  ;;  %v5650_v36 = vld [vmem:[%s10512_s7 + $0xad8] sm:$0xff] }
 0x396   :  { %3914 = vmatpush.msrb.mxu1 %v5773_v57  ;;  %5669 = vmatpush.msk.msrb.mxu3 %vm171_vm0, %v5666_v61  ;;  %v2471_v0 = vadd.f32 %v2415_v56, %v2172_v17  ;;  %v5804_v57 = vld [vmem:[%s10512_s7 + $0xf08] sm:$0xff]  ;;  %v5841_v61 = vld [vmem:[%s10512_s7 + $0x1010] sm:$0xff] }
 0x397   :  { %2846 = vmatpush.msrb.mxu2 %v5346_v27  ;;  %3861 = vmatpush.msrb.mxu0 %v5734_v5  ;;  %v2676_v9 = vpop.f32.mrf.mxu2  ;;  %v5383_v27 = vld [vmem:[%s10512_s7 + $0x3a0] sm:$0xff]  ;;  %v1974_v5 = vpop.f32.mrf.mxu0  ;;  %v5800_v56 = vld [vmem:[%s10512_s7 + $0xee8] sm:$0xff] }
 0x398   :  { %3915 = vmatpush.msrb.mxu1 %v5771_v47  ;;  %3617 = vmatpush.msrb.mxu3 %v5664_v53  ;;  %v8940_v46 = vadd.f32 %v2676_v9, %v8815_v45  ;;  %v5660_v45 = vld [vmem:[%s10512_s7 + $0xb28] sm:$0xff]  ;;  %v8982_v44 = vadd.f32 %v8724_v42, %v2471_v0  ;;  %v2174_v47 = vpop.f32.mrf.mxu1  ;;  %v5839_v53 = vld [vmem:[%s10512_s7 + $0x1000] sm:$0xff]  ;;  %v5377_v0 = vld [vmem:[%s10512_s7 + $0x370] sm:$0xff] }
 0x399   :  { %2847 = vmatpush.msrb.mxu2 %v5344_v51  ;;  %3862 = vmatpush.msrb.mxu0 %v5732_v33  ;;  %v5381_v51 = vld [vmem:[%s10512_s7 + $0x390] sm:$0xff]  ;;  %v2175_v9 = vadd.f32 %v2174_v47, %v1974_v5  ;;  %v5644_v17 = vld [vmem:[%s10512_s7 + $0xaa8] sm:$0xff]  ;;  %v5718_v5 = vld [vmem:[%s10512_s7 + $0xcb8] sm:$0xff] }
 0x39a   :  { %3916 = vmatpush.msrb.mxu1 %v5769_v8  ;;  %3618 = vmatpush.msrb.mxu3 %v5662_v10  ;;  %v2535_v12 = vmax.f32 %v8982_v44, 0.0  ;;  %v5646_v8 = vld [vmem:[%s10512_s7 + $0xab8] sm:$0xff]  ;;  %v5837_v10 = vld [vmem:[%s10512_s7 + $0xff0] sm:$0xff]  ;;  %v5451_v47 = vld [vmem:[%s10512_s7 + $0x580] sm:$0xff] }
 0x39b   :  { %2848 = vmatpush.msrb.mxu2 %v5342_v59  ;;  %5760 = vmatmul.msk.f32.vlgmr.msrb.gmra.mxu0 %vm1720_vm3, %v2534_v24  ;;  %v5379_v59 = vld [vmem:[%s10512_s7 + $0x380] sm:$0xff]  ;;  %v5949_v44 = vld [vmem:[%s10512_s7 + $0x12f0] sm:$0xff] }
 0x39c   :  { %5370 = vmatmul.msk.f32.vlgmr.msrb.gmra.mxu2 %vm1720_vm3, %v2521_v40  ;;  %5819 = vmatpush.msk.msra.mxu0 %vm171_vm0, %v5816_v26  ;;  %v5812_v40 = vld [vmem:[%s10512_s7 + $0xf48] sm:$0xff]  ;;  %v5798_v26 = vld [vmem:[%s10512_s7 + $0xed8] sm:$0xff] }
 0x39d   :  { %5397 = vmatpush.msk.msra.mxu2 %vm171_vm0, %v5395_v49  ;;  %3619 = vmatpush.msrb.mxu3 %v5660_v45  ;;  %v2418_v33 = vpop.f32.mrf.mxu3  ;;  %v5835_v49 = vld [vmem:[%s10512_s7 + $0xfe0] sm:$0xff] }
 0x39e   :  { %3917 = vmatpush.msrb.mxu1 %v5767_v30  ;;  %4007 = vmatpush.msra.mxu0 %v5814_v16  ;;  %v2472_v45 = vadd.f32 %v2418_v33, %v2175_v9  ;;  %v5642_v30 = vld [vmem:[%s10512_s7 + $0xa98] sm:$0xff]  ;;  %v5796_v16 = vld [vmem:[%s10512_s7 + $0xec8] sm:$0xff]  ;;  %v5449_v33 = vld [vmem:[%s10512_s7 + $0x570] sm:$0xff] }
 0x39f   :  { %2895 = vmatpush.msra.mxu2 %v5393_v28  ;;  %3620 = vmatpush.msrb.mxu3 %v5658_v19  ;;  %v5833_v28 = vld [vmem:[%s10512_s7 + $0xfd0] sm:$0xff]  ;;  %v5726_v19 = vld [vmem:[%s10512_s7 + $0xcf8] sm:$0xf] }
 0x3a0   :  { %3918 = vmatpush.msrb.mxu1 %v5765_v15  ;;  %4008 = vmatpush.msra.mxu0 %v5812_v40  ;;  %v5375_v15 = vld [vmem:[%s10512_s7 + $0x360] sm:$0xff]  ;;  %v5794_v40 = vld [vmem:[%s10512_s7 + $0xeb8] sm:$0xff]  ;;  %v5905_v9 = vld [vmem:[%s10512_s7 + $0x11d0] sm:$0xf] }
 0x3a1   :  { %2896 = vmatpush.msra.mxu2 %v5391_v34  ;;  %3621 = vmatpush.msrb.mxu3 %v5656_v62  ;;  %v5831_v34 = vld [vmem:[%s10512_s7 + $0xfc0] sm:$0xff]  ;;  %v1977_v62 = vpop.f32.mrf.mxu0 }
 0x3a2   :  { %3919 = vmatpush.msrb.mxu1 %v5763_v21  ;;  %4009 = vmatpush.msra.mxu0 %v5810_v48  ;;  %v2177_v21 = vpop.f32.mrf.mxu1  ;;  %v9098_v48 = vadd.f32 %v8724_v42, %v2472_v45  ;;  %v5445_v45 = vld [vmem:[%s10512_s7 + $0x550] sm:$0xff] }
 0x3a3   :  { %2897 = vmatpush.msra.mxu2 %v5389_v60  ;;  %3622 = vmatpush.msrb.mxu3 %v5654_v35  ;;  %v5724_v60 = vld [vmem:[%s10512_s7 + $0xce8] sm:$0xff]  ;;  %v5373_v35 = vld [vmem:[%s10512_s7 + $0x350] sm:$0xff] }
 0x3a4   :  { %3920 = vmatpush.msrb.mxu1 %v5761_v7  ;;  %4010 = vmatpush.msra.mxu0 %v5808_v37  ;;  %v5792_v7 = vld [vmem:[%s10512_s7 + $0xea8] sm:$0xff]  ;;  %v5722_v37 = vld [vmem:[%s10512_s7 + $0xcd8] sm:$0xff] }
 0x3a5   :  { %5788 = vmatmul.msk.f32.vlgmr.msrb.gmra.mxu1 %vm1720_vm3, %v2535_v12  ;;  %2898 = vmatpush.msra.mxu2 %v5387_v1  ;;  %v2178_v1 = vadd.f32 %v2177_v21, %v1977_v62  ;;  %v5708_v62 = vld [vmem:[%s10512_s7 + $0xc68] sm:$0xff]  ;;  %v5862_v21 = vld [vmem:[%s10512_s7 + $0x1098] sm:$0xff] }
 0x3a6   :  { %5847 = vmatpush.msk.msra.mxu1 %vm171_vm0, %v5845_v25  ;;  %3623 = vmatpush.msrb.mxu3 %v5652_v55  ;;  %v5371_v25 = vld [vmem:[%s10512_s7 + $0x340] sm:$0xff]  ;;  %v2536_v55 = vmax.f32 %v9098_v48, 0.0  ;;  %v6136_v48 = vld [vmem:[%s10512_s7 + $0x1808] sm:$0xff] }
 0x3a7   :  { %4011 = vmatpush.msra.mxu0 %v5806_v54  ;;  %2899 = vmatpush.msra.mxu2 %v5385_v50  ;;  %v5876_v54 = vld [vmem:[%s10512_s7 + $0x1108] sm:$0xf] }
 0x3a8   :  { %4065 = vmatpush.msra.mxu1 %v5843_v4  ;;  %3624 = vmatpush.msrb.mxu3 %v5650_v36  ;;  %v5455_v4 = vld [vmem:[%s10512_s7 + $0x5a0] sm:$0xf]  ;;  %v5720_v36 = vld [vmem:[%s10512_s7 + $0xcc8] sm:$0xff] }
 0x3a9   :  { %4012 = vmatpush.msra.mxu0 %v5804_v57  ;;  %2900 = vmatpush.msra.mxu2 %v5383_v27  ;;  %v5827_v57 = vld [vmem:[%s10512_s7 + $0xfa0] sm:$0xff]  ;;  %v5453_v27 = vld [vmem:[%s10512_s7 + $0x590] sm:$0xff] }
 0x3aa   :  { %4066 = vmatpush.msra.mxu1 %v5841_v61  ;;  %3625 = vmatpush.msrb.mxu3 %v5648_v29  ;;  %v5874_v61 = vld [vmem:[%s10512_s7 + $0x10f8] sm:$0xff] }
 0x3ab   :  { %4013 = vmatpush.msra.mxu0 %v5802_v2  ;;  %2901 = vmatpush.msra.mxu2 %v5381_v51  ;;  %v5716_v2 = vld [vmem:[%s10512_s7 + $0xca8] sm:$0xff]  ;;  %v5870_v51 = vld [vmem:[%s10512_s7 + $0x10d8] sm:$0xff] }
 0x3ac   :  { %4067 = vmatpush.msra.mxu1 %v5839_v53  ;;  %3626 = vmatpush.msrb.mxu3 %v5646_v8  ;;  %v5823_v53 = vld [vmem:[%s10512_s7 + $0xf80] sm:$0xff]  ;;  %v5714_v8 = vld [vmem:[%s10512_s7 + $0xc98] sm:$0xff] }
 0x3ad   :  { %4014 = vmatpush.msra.mxu0 %v5800_v56  ;;  %2902 = vmatpush.msra.mxu2 %v5379_v59  ;;  %v5821_v56 = vld [vmem:[%s10512_s7 + $0xf70] sm:$0xff] }
 0x3ae   :  { %4068 = vmatpush.msra.mxu1 %v5837_v10  ;;  %3627 = vmatpush.msrb.mxu3 %v5644_v17  ;;  %v5868_v10 = vld [vmem:[%s10512_s7 + $0x10c8] sm:$0xff]  ;;  %v5447_v17 = vld [vmem:[%s10512_s7 + $0x560] sm:$0xff] }
 0x3af   :  { %4015 = vmatpush.msra.mxu0 %v5798_v26  ;;  %2903 = vmatpush.msra.mxu2 %v5377_v0  ;;  %v5712_v26 = vld [vmem:[%s10512_s7 + $0xc88] sm:$0xff]  ;;  %v5903_v0 = vld [vmem:[%s10512_s7 + $0x11c0] sm:$0xff] }
 0x3b0   :  { %4069 = vmatpush.msra.mxu1 %v5835_v49  ;;  %3628 = vmatpush.msrb.mxu3 %v5642_v30  ;;  %v5866_v49 = vld [vmem:[%s10512_s7 + $0x10b8] sm:$0xff] }
 0x3b1   :  { %4016 = vmatpush.msra.mxu0 %v5796_v16  ;;  %5670 = vmatmul.msk.f32.vlgmr.msrb.gmra.mxu3 %vm1720_vm3, %v2531_v32  ;;  %v2421_v32 = vpop.f32.mrf.mxu3  ;;  %v5710_v30 = vld [vmem:[%s10512_s7 + $0xc78] sm:$0xff]  ;;  %v5864_v16 = vld [vmem:[%s10512_s7 + $0x10a8] sm:$0xff] }
 0x3b2   :  { %4070 = vmatpush.msra.mxu1 %v5833_v28  ;;  %5729 = vmatpush.msk.msra.mxu3 %vm171_vm0, %v5726_v19  ;;  %v2473_v50 = vadd.f32 %v2421_v32, %v2178_v1  ;;  %v1980_v28 = vpop.f32.mrf.mxu0  ;;  %v5901_v19 = vld [vmem:[%s10512_s7 + $0x11b0] sm:$0xff]  ;;  %v5860_v32 = vld [vmem:[%s10512_s7 + $0x1088] sm:$0xff] }
 0x3b3   :  { %2904 = vmatpush.msra.mxu2 %v5375_v15  ;;  %4017 = vmatpush.msra.mxu0 %v5794_v40  ;;  %v5443_v15 = vld [vmem:[%s10512_s7 + $0x540] sm:$0xff]  ;;  %v2180_v40 = vpop.f32.mrf.mxu1 }
 0x3b4   :  { %4071 = vmatpush.msra.mxu1 %v5831_v34  ;;  %3773 = vmatpush.msra.mxu3 %v5724_v60  ;;  %v9162_v29 = vadd.f32 %v8724_v42, %v2473_v50  ;;  %v9220_v34 = vpop.f32.mrf.mxu2  ;;  %v5899_v60 = vld [vmem:[%s10512_s7 + $0x11a0] sm:$0xff]  ;;  %v2181_v1 = vadd.f32 %v2180_v40, %v1980_v28  ;;  %v5780_v28 = vld [vmem:[%s10512_s7 + $0xe68] sm:$0xff]  ;;  %v5513_v40 = vld [vmem:[%s10512_s7 + $0x730] sm:$0xff] }
 0x3b5   :  { %2905 = vmatpush.msra.mxu2 %v5373_v35  ;;  %4018 = vmatpush.msra.mxu0 %v5792_v7  ;;  %v5441_v35 = vld [vmem:[%s10512_s7 + $0x530] sm:$0xff]  ;;  %v5895_v50 = vld [vmem:[%s10512_s7 + $0x1180] sm:$0xff] }
 0x3b6   :  { %4072 = vmatpush.msra.mxu1 %v5829_v39  ;;  %3774 = vmatpush.msra.mxu3 %v5722_v37  ;;  %v2537_v59 = vmax.f32 %v9162_v29, 0.0  ;;  %v5706_v39 = vld [vmem:[%s10512_s7 + $0xc58] sm:$0xff]  ;;  %v5897_v37 = vld [vmem:[%s10512_s7 + $0x1190] sm:$0xff] }
 0x3b7   :  { %2906 = vmatpush.msra.mxu2 %v5371_v25  ;;  %5820 = vmatmul.msk.f32.vlgmr.msra.gmra.mxu0 %vm1720_vm3, %v2536_v55  ;;  %v5439_v25 = vld [vmem:[%s10512_s7 + $0x520] sm:$0xff]  ;;  %v6009_v29 = vld [vmem:[%s10512_s7 + $0x1490] sm:$0xff] }
 0x3b8   :  { %5398 = vmatmul.msk.f32.vlgmr.msra.gmra.mxu2 %vm1720_vm3, %v2522_v22  ;;  %5879 = vmatpush.msk.msrb.mxu0 %vm171_vm0, %v5876_v54  ;;  %v5872_v22 = vld [vmem:[%s10512_s7 + $0x10e8] sm:$0xff] }
 0x3b9   :  { %5457 = vmatpush.msk.msrb.mxu2 %vm171_vm0, %v5455_v4  ;;  %3775 = vmatpush.msra.mxu3 %v5720_v36  ;;  %v2424_v7 = vpop.f32.mrf.mxu3  ;;  %v5704_v54 = vld [vmem:[%s10512_s7 + $0xc48] sm:$0xff]  ;;  %v5858_v4 = vld [vmem:[%s10512_s7 + $0x1078] sm:$0xff]  ;;  %v5437_v36 = vld [vmem:[%s10512_s7 + $0x510] sm:$0xff] }
 0x3ba   :  { %4073 = vmatpush.msra.mxu1 %v5827_v57  ;;  %4163 = vmatpush.msrb.mxu0 %v5874_v61  ;;  %v2474_v57 = vadd.f32 %v2424_v7, %v2181_v1  ;;  %v5702_v61 = vld [vmem:[%s10512_s7 + $0xc38] sm:$0xff]  ;;  %v5883_v7 = vld [vmem:[%s10512_s7 + $0x1120] sm:$0xff]  ;;  %v5928_v1 = vld [vmem:[%s10512_s7 + $0x1268] sm:$0xff] }
 0x3bb   :  { %3051 = vmatpush.msrb.mxu2 %v5453_v27  ;;  %3776 = vmatpush.msra.mxu3 %v5718_v5  ;;  %v5856_v27 = vld [vmem:[%s10512_s7 + $0x1068] sm:$0xff]  ;;  %v5893_v5 = vld [vmem:[%s10512_s7 + $0x1170] sm:$0xff] }
 0x3bc   :  { %4074 = vmatpush.msra.mxu1 %v5825_v3  ;;  %4164 = vmatpush.msrb.mxu0 %v5872_v22  ;;  %v5786_v3 = vld [vmem:[%s10512_s7 + $0xe98] sm:$0xf]  ;;  %v5435_v22 = vld [vmem:[%s10512_s7 + $0x500] sm:$0xff] }
 0x3bd   :  { %3052 = vmatpush.msrb.mxu2 %v5451_v47  ;;  %3777 = vmatpush.msra.mxu3 %v5716_v2  ;;  %v5854_v2 = vld [vmem:[%s10512_s7 + $0x1058] sm:$0xff] }
 0x3be   :  { %4075 = vmatpush.msra.mxu1 %v5823_v53  ;;  %4165 = vmatpush.msrb.mxu0 %v5870_v51  ;;  %v5891_v53 = vld [vmem:[%s10512_s7 + $0x1160] sm:$0xff] }
 0x3bf   :  { %3053 = vmatpush.msrb.mxu2 %v5449_v33  ;;  %3778 = vmatpush.msra.mxu3 %v5714_v8  ;;  %v1983_v33 = vpop.f32.mrf.mxu0  ;;  %v2183_v8 = vpop.f32.mrf.mxu1 }
 0x3c0   :  { %4076 = vmatpush.msra.mxu1 %v5821_v56  ;;  %4166 = vmatpush.msrb.mxu0 %v5868_v10  ;;  %v9283_v56 = vadd.f32 %v8724_v42, %v2474_v57  ;;  %v5784_v10 = vld [vmem:[%s10512_s7 + $0xe88] sm:$0xff]  ;;  %v5926_v57 = vld [vmem:[%s10512_s7 + $0x1258] sm:$0xff] }
 0x3c1   :  { %5848 = vmatmul.msk.f32.vlgmr.msra.gmra.mxu1 %vm1720_vm3, %v2537_v59  ;;  %3054 = vmatpush.msrb.mxu2 %v5447_v17  ;;  %v5782_v17 = vld [vmem:[%s10512_s7 + $0xe78] sm:$0xff] }
 0x3c2   :  { %5907 = vmatpush.msk.msrb.mxu1 %vm171_vm0, %v5905_v9  ;;  %3779 = vmatpush.msra.mxu3 %v5712_v26  ;;  %v5433_v9 = vld [vmem:[%s10512_s7 + $0x4f0] sm:$0xff]  ;;  %v5431_v26 = vld [vmem:[%s10512_s7 + $0x4e0] sm:$0xff] }
 0x3c3   :  { %4167 = vmatpush.msrb.mxu0 %v5866_v49  ;;  %3055 = vmatpush.msrb.mxu2 %v5445_v45  ;;  %v2184_v49 = vadd.f32 %v2183_v8, %v1983_v33  ;;  %v5936_v45 = vld [vmem:[%s10512_s7 + $0x12a8] sm:$0xf]  ;;  %v5922_v8 = vld [vmem:[%s10512_s7 + $0x1238] sm:$0xff] }
 0x3c4   :  { %4221 = vmatpush.msrb.mxu1 %v5903_v0  ;;  %3780 = vmatpush.msra.mxu3 %v5710_v30  ;;  %v2538_v0 = vmax.f32 %v9283_v56, 0.0  ;;  %v5515_v30 = vld [vmem:[%s10512_s7 + $0x740] sm:$0xf]  ;;  %v5768_v33 = vld [vmem:[%s10512_s7 + $0xe08] sm:$0xff] }
 0x3c5   :  { %4168 = vmatpush.msrb.mxu0 %v5864_v16  ;;  %3056 = vmatpush.msrb.mxu2 %v5443_v15  ;;  %v5934_v15 = vld [vmem:[%s10512_s7 + $0x1298] sm:$0xff]  ;;  %v5927_v56 = vld [vmem:[%s10512_s7 + $0x1260] sm:$0xff] }
 0x3c6   :  { %4222 = vmatpush.msrb.mxu1 %v5901_v19  ;;  %3781 = vmatpush.msra.mxu3 %v5708_v62  ;;  %v5887_v19 = vld [vmem:[%s10512_s7 + $0x1140] sm:$0xff]  ;;  %v5778_v62 = vld [vmem:[%s10512_s7 + $0xe58] sm:$0xff] }
 0x3c7   :  { %4169 = vmatpush.msrb.mxu0 %v5862_v21  ;;  %3057 = vmatpush.msrb.mxu2 %v5441_v35  ;;  %v5511_v21 = vld [vmem:[%s10512_s7 + $0x720] sm:$0xff]  ;;  %v5776_v35 = vld [vmem:[%s10512_s7 + $0xe48] sm:$0xff] }
 0x3c8   :  { %4223 = vmatpush.msrb.mxu1 %v5899_v60  ;;  %3782 = vmatpush.msra.mxu3 %v5706_v39  ;;  %v5930_v39 = vld [vmem:[%s10512_s7 + $0x1278] sm:$0xff] }
 0x3c9   :  { %4170 = vmatpush.msrb.mxu0 %v5860_v32  ;;  %3058 = vmatpush.msrb.mxu2 %v5439_v25  ;;  %v5509_v32 = vld [vmem:[%s10512_s7 + $0x710] sm:$0xff] }
 0x3ca   :  { %4224 = vmatpush.msrb.mxu1 %v5897_v37  ;;  %3783 = vmatpush.msra.mxu3 %v5704_v54  ;;  %v5774_v37 = vld [vmem:[%s10512_s7 + $0xe38] sm:$0xff]  ;;  %v5881_v25 = vld [vmem:[%s10512_s7 + $0x1110] sm:$0xff] }
 0x3cb   :  { %4171 = vmatpush.msrb.mxu0 %v5858_v4  ;;  %3059 = vmatpush.msrb.mxu2 %v5437_v36  ;;  %v5965_v4 = vld [vmem:[%s10512_s7 + $0x1370] sm:$0xf]  ;;  %v5772_v36 = vld [vmem:[%s10512_s7 + $0xe28] sm:$0xff] }
 0x3cc   :  { %4225 = vmatpush.msrb.mxu1 %v5895_v50  ;;  %v2752_v47 = vpop.f32.mrf.mxu2  ;;  %3784 = vmatpush.msra.mxu3 %v5702_v61  ;;  %v5507_v50 = vld [vmem:[%s10512_s7 + $0x700] sm:$0xff] }
 0x3cd   :  { %4172 = vmatpush.msrb.mxu0 %v5856_v27  ;;  %v9280_v51 = vadd.f32 %v2752_v47, %v8940_v46  ;;  %5730 = vmatmul.msk.f32.vlgmr.msra.gmra.mxu3 %vm1720_vm3, %v2533_v14  ;;  %v5852_v46 = vld [vmem:[%s10512_s7 + $0x1048] sm:$0xff]  ;;  %v2427_v14 = vpop.f32.mrf.mxu3  ;;  %v5963_v61 = vld [vmem:[%s10512_s7 + $0x1360] sm:$0xff]  ;;  %v5505_v27 = vld [vmem:[%s10512_s7 + $0x6f0] sm:$0xff] }
 0x3ce   :  { %4226 = vmatpush.msrb.mxu1 %v5893_v5  ;;  %5789 = vmatpush.msk.msrb.mxu3 %vm171_vm0, %v5786_v3  ;;  %v2475_v16 = vadd.f32 %v2427_v14, %v2184_v49  ;;  %v5770_v5 = vld [vmem:[%s10512_s7 + $0xe18] sm:$0xff]  ;;  %v5924_v3 = vld [vmem:[%s10512_s7 + $0x1248] sm:$0xff]  ;;  %v5503_v47 = vld [vmem:[%s10512_s7 + $0x6e0] sm:$0xff] }
 0x3cf   :  { %3060 = vmatpush.msrb.mxu2 %v5435_v22  ;;  %4173 = vmatpush.msrb.mxu0 %v5854_v2  ;;  %v5961_v22 = vld [vmem:[%s10512_s7 + $0x1350] sm:$0xff]  ;;  %v1986_v2 = vpop.f32.mrf.mxu0  ;;  %v5920_v14 = vld [vmem:[%s10512_s7 + $0x1228] sm:$0xff] }
 0x3d0   :  { %4227 = vmatpush.msrb.mxu1 %v5891_v53  ;;  %3929 = vmatpush.msrb.mxu3 %v5784_v10  ;;  %v9347_v60 = vadd.f32 %v8724_v42, %v2475_v16  ;;  %v2186_v53 = vpop.f32.mrf.mxu1  ;;  %v5959_v10 = vld [vmem:[%s10512_s7 + $0x1340] sm:$0xff] }
 0x3d1   :  { %3061 = vmatpush.msrb.mxu2 %v5433_v9  ;;  %4174 = vmatpush.msrb.mxu0 %v5852_v46  ;;  %v5501_v9 = vld [vmem:[%s10512_s7 + $0x6d0] sm:$0xff]  ;;  %v2187_v49 = vadd.f32 %v2186_v53, %v1986_v2  ;;  %v5955_v16 = vld [vmem:[%s10512_s7 + $0x1320] sm:$0xff]  ;;  %v5838_v2 = vld [vmem:[%s10512_s7 + $0xff8] sm:$0xff] }
 0x3d2   :  { %4228 = vmatpush.msrb.mxu1 %v5889_v11  ;;  %3930 = vmatpush.msrb.mxu3 %v5782_v17  ;;  %v2539_v54 = vmax.f32 %v9347_v60, 0.0  ;;  %v5766_v11 = vld [vmem:[%s10512_s7 + $0xdf8] sm:$0xff]  ;;  %v5957_v17 = vld [vmem:[%s10512_s7 + $0x1330] sm:$0xff]  ;;  %v5571_v53 = vld [vmem:[%s10512_s7 + $0x8c0] sm:$0xff] }
 0x3d3   :  { %3062 = vmatpush.msrb.mxu2 %v5431_v26  ;;  %5880 = vmatmul.msk.f32.vlgmr.msrb.gmra.mxu0 %vm1720_vm3, %v2538_v0  ;;  %v5499_v26 = vld [vmem:[%s10512_s7 + $0x6c0] sm:$0xff]  ;;  %v6069_v60 = vld [vmem:[%s10512_s7 + $0x1630] sm:$0xff] }
 0x3d4   :  { %5458 = vmatmul.msk.f32.vlgmr.msrb.gmra.mxu2 %vm1720_vm3, %v2524_v18  ;;  %5939 = vmatpush.msk.msra.mxu0 %vm171_vm0, %v5936_v45  ;;  %v5932_v18 = vld [vmem:[%s10512_s7 + $0x1288] sm:$0xff] }
 0x3d5   :  { %5517 = vmatpush.msk.msra.mxu2 %vm171_vm0, %v5515_v30  ;;  %3931 = vmatpush.msrb.mxu3 %v5780_v28  ;;  %v2430_v46 = vpop.f32.mrf.mxu3  ;;  %v5764_v45 = vld [vmem:[%s10512_s7 + $0xde8] sm:$0xff]  ;;  %v5918_v30 = vld [vmem:[%s10512_s7 + $0x1218] sm:$0xff]  ;;  %v5497_v28 = vld [vmem:[%s10512_s7 + $0x6b0] sm:$0xff] }
 0x3d6   :  { %4229 = vmatpush.msrb.mxu1 %v5887_v19  ;;  %4319 = vmatpush.msra.mxu0 %v5934_v15  ;;  %v2476_v19 = vadd.f32 %v2430_v46, %v2187_v49  ;;  %v5762_v15 = vld [vmem:[%s10512_s7 + $0xdd8] sm:$0xff] }
 0x3d7   :  { %3207 = vmatpush.msra.mxu2 %v5513_v40  ;;  %3932 = vmatpush.msrb.mxu3 %v5778_v62  ;;  %v5916_v40 = vld [vmem:[%s10512_s7 + $0x1208] sm:$0xff]  ;;  %v5953_v62 = vld [vmem:[%s10512_s7 + $0x1310] sm:$0xff]  ;;  %v5990_v46 = vld [vmem:[%s10512_s7 + $0x1418] sm:$0xff] }
 0x3d8   :  { %4230 = vmatpush.msrb.mxu1 %v5885_v52  ;;  %4320 = vmatpush.msra.mxu0 %v5932_v18  ;;  %v5846_v52 = vld [vmem:[%s10512_s7 + $0x1038] sm:$0xf]  ;;  %v5495_v18 = vld [vmem:[%s10512_s7 + $0x6a0] sm:$0xff] }
 0x3d9   :  { %3208 = vmatpush.msra.mxu2 %v5511_v21  ;;  %3933 = vmatpush.msrb.mxu3 %v5776_v35  ;;  %v5914_v21 = vld [vmem:[%s10512_s7 + $0x11f8] sm:$0xff]  ;;  %v5951_v35 = vld [vmem:[%s10512_s7 + $0x1300] sm:$0xff] }
 0x3da   :  { %4231 = vmatpush.msrb.mxu1 %v5883_v7  ;;  %4321 = vmatpush.msra.mxu0 %v5930_v39  ;;  %v1989_v7 = vpop.f32.mrf.mxu0  ;;  %v2189_v39 = vpop.f32.mrf.mxu1 }
 0x3db   :  { %3209 = vmatpush.msra.mxu2 %v5509_v32  ;;  %3934 = vmatpush.msrb.mxu3 %v5774_v37  ;;  %v9463_v32 = vadd.f32 %v8724_v42, %v2476_v19  ;;  %v5844_v37 = vld [vmem:[%s10512_s7 + $0x1028] sm:$0xff]  ;;  %v6023_v19 = vld [vmem:[%s10512_s7 + $0x1500] sm:$0xff] }
 0x3dc   :  { %4232 = vmatpush.msrb.mxu1 %v5881_v25  ;;  %4322 = vmatpush.msra.mxu0 %v5928_v1  ;;  %v5493_v25 = vld [vmem:[%s10512_s7 + $0x690] sm:$0xff]  ;;  %v5912_v42 = vld [vmem:[%s10512_s7 + $0x11e8] sm:$0xff]  ;;  %v5842_v1 = vld [vmem:[%s10512_s7 + $0x1018] sm:$0xff] }
 0x3dd   :  { %5908 = vmatmul.msk.f32.vlgmr.msrb.gmra.mxu1 %vm1720_vm3, %v2539_v54  ;;  %3210 = vmatpush.msra.mxu2 %v5507_v50  ;;  %v2190_v50 = vadd.f32 %v2189_v39, %v1989_v7  ;;  %v5828_v39 = vld [vmem:[%s10512_s7 + $0xfa8] sm:$0xff] }
 0x3de   :  { %5967 = vmatpush.msk.msra.mxu1 %vm171_vm0, %v5965_v4  ;;  %3935 = vmatpush.msrb.mxu3 %v5772_v36  ;;  %v5491_v4 = vld [vmem:[%s10512_s7 + $0x680] sm:$0xff]  ;;  %v2540_v36 = vmax.f32 %v9463_v32, 0.0 }
 0x3df   :  { %4323 = vmatpush.msra.mxu0 %v5926_v57  ;;  %3211 = vmatpush.msra.mxu2 %v5505_v27  ;;  %v5996_v57 = vld [vmem:[%s10512_s7 + $0x1448] sm:$0xf]  ;;  %v5987_v32 = vld [vmem:[%s10512_s7 + $0x1400] sm:$0xff] }
 0x3e0   :  { %4377 = vmatpush.msra.mxu1 %v5963_v61  ;;  %3936 = vmatpush.msrb.mxu3 %v5770_v5  ;;  %v5575_v61 = vld [vmem:[%s10512_s7 + $0x8e0] sm:$0xf]  ;;  %v5840_v5 = vld [vmem:[%s10512_s7 + $0x1008] sm:$0xff] }
 0x3e1   :  { %4324 = vmatpush.msra.mxu0 %v5924_v3  ;;  %3212 = vmatpush.msra.mxu2 %v5503_v47  ;;  %v5947_v3 = vld [vmem:[%s10512_s7 + $0x12e0] sm:$0xff]  ;;  %v5573_v47 = vld [vmem:[%s10512_s7 + $0x8d0] sm:$0xff] }
 0x3e2   :  { %4378 = vmatpush.msra.mxu1 %v5961_v22  ;;  %3937 = vmatpush.msrb.mxu3 %v5768_v33  ;;  %v5994_v22 = vld [vmem:[%s10512_s7 + $0x1438] sm:$0xff]  ;;  %v9529_v33 = vld [vmem:[%s10511_s6] ss:$0 sm:$0xff]  ;;  %v2192_v7 = vpop.f32.mrf.mxu1 }
 0x3e3   :  { %4325 = vmatpush.msra.mxu0 %v5922_v8  ;;  %3213 = vmatpush.msra.mxu2 %v5501_v9  ;;  %v5943_v9 = vld [vmem:[%s10512_s7 + $0x12c0] sm:$0xff] }
 0x3e4   :  { %4379 = vmatpush.msra.mxu1 %v5959_v10  ;;  %3938 = vmatpush.msrb.mxu3 %v5766_v11  ;;  %v5836_v10 = vld [vmem:[%s10512_s7 + $0xfe8] sm:$0xff]  ;;  %v5569_v11 = vld [vmem:[%s10512_s7 + $0x8b0] sm:$0xff] }
 0x3e5   :  { %4326 = vmatpush.msra.mxu0 %v5920_v14  ;;  %3214 = vmatpush.msra.mxu2 %v5499_v26  ;;  %v5834_v14 = vld [vmem:[%s10512_s7 + $0xfd8] sm:$0xff]  ;;  %v5988_v26 = vld [vmem:[%s10512_s7 + $0x1408] sm:$0xff] }
 0x3e6   :  { %4380 = vmatpush.msra.mxu1 %v5957_v17  ;;  %3939 = vmatpush.msrb.mxu3 %v5764_v45  ;;  %v5941_v17 = vld [vmem:[%s10512_s7 + $0x12b0] sm:$0xff] }
 0x3e7   :  { %4327 = vmatpush.msra.mxu0 %v5918_v30  ;;  %3215 = vmatpush.msra.mxu2 %v5497_v28  ;;  %v6025_v45 = vld [vmem:[%s10512_s7 + $0x1510] sm:$0xf]  ;;  %v5567_v30 = vld [vmem:[%s10512_s7 + $0x8a0] sm:$0xff]  ;;  %v5986_v28 = vld [vmem:[%s10512_s7 + $0x13f8] sm:$0xff] }
 0x3e8   :  { %4381 = vmatpush.msra.mxu1 %v5955_v16  ;;  %3940 = vmatpush.msrb.mxu3 %v5762_v15  ;;  %v5832_v16 = vld [vmem:[%s10512_s7 + $0xfc8] sm:$0xff]  ;;  %v5565_v15 = vld [vmem:[%s10512_s7 + $0x890] sm:$0xff] }
 0x3e9   :  { %4328 = vmatpush.msra.mxu0 %v5916_v40  ;;  %5790 = vmatmul.msk.f32.vlgmr.msrb.gmra.mxu3 %vm1720_vm3, %v2535_v12  ;;  %v2433_v12 = vpop.f32.mrf.mxu3  ;;  %v5830_v40 = vld [vmem:[%s10512_s7 + $0xfb8] sm:$0xff] }
 0x3ea   :  { %4382 = vmatpush.msra.mxu1 %v5953_v62  ;;  %5849 = vmatpush.msk.msra.mxu3 %vm171_vm0, %v5846_v52  ;;  %v2477_v27 = vadd.f32 %v2433_v12, %v2190_v50  ;;  %v5984_v62 = vld [vmem:[%s10512_s7 + $0x13e8] sm:$0xff]  ;;  %v9584_v52 = vpop.f32.mrf.mxu2  ;;  %v5826_v12 = vld [vmem:[%s10512_s7 + $0xf98] sm:$0xff]  ;;  %v5559_v50 = vld [vmem:[%s10512_s7 + $0x860] sm:$0xff] }
 0x3eb   :  { %3216 = vmatpush.msra.mxu2 %v5495_v18  ;;  %4329 = vmatpush.msra.mxu0 %v5914_v21  ;;  %v6021_v18 = vld [vmem:[%s10512_s7 + $0x14f0] sm:$0xff]  ;;  %v5563_v21 = vld [vmem:[%s10512_s7 + $0x880] sm:$0xff] }
 0x3ec   :  { %4383 = vmatpush.msra.mxu1 %v5951_v35  ;;  %4085 = vmatpush.msra.mxu3 %v5844_v37  ;;  %v9532_v8 = vadd.f32 %v9529_v33, %v2477_v27  ;;  %v1992_v35 = vpop.f32.mrf.mxu0  ;;  %v5982_v37 = vld [vmem:[%s10512_s7 + $0x13d8] sm:$0xff] }
 0x3ed   :  { %3217 = vmatpush.msra.mxu2 %v5493_v25  ;;  %4330 = vmatpush.msra.mxu0 %v5912_v42  ;;  %v6019_v25 = vld [vmem:[%s10512_s7 + $0x14e0] sm:$0xff]  ;;  %v5561_v42 = vld [vmem:[%s10512_s7 + $0x870] sm:$0xff]  ;;  %v5978_v27 = vld [vmem:[%s10512_s7 + $0x13b8] sm:$0xff] }
 0x3ee   :  { %4384 = vmatpush.msra.mxu1 %v5949_v44  ;;  %4086 = vmatpush.msra.mxu3 %v5842_v1  ;;  %v2541_v49 = vmax.f32 %v9532_v8, 0.0  ;;  %v5980_v1 = vld [vmem:[%s10512_s7 + $0x13c8] sm:$0xff]  ;;  %v6129_v8 = vld [vmem:[%s10512_s7 + $0x17d0] sm:$0xff] }
 0x3ef   :  { %3218 = vmatpush.msra.mxu2 %v5491_v4  ;;  %5940 = vmatmul.msk.f32.vlgmr.msra.gmra.mxu0 %vm1720_vm3, %v2540_v36  ;;  %v6017_v4 = vld [vmem:[%s10512_s7 + $0x14d0] sm:$0xff] }
 0x3f0   :  { %5518 = vmatmul.msk.f32.vlgmr.msra.gmra.mxu2 %vm1720_vm3, %v2526_v31  ;;  %5999 = vmatpush.msk.msrb.mxu0 %vm171_vm0, %v5996_v57  ;;  %v5992_v31 = vld [vmem:[%s10512_s7 + $0x1428] sm:$0xff]  ;;  %v2193_v57 = vadd.f32 %v2192_v7, %v1992_v35  ;;  %v6007_v35 = vld [vmem:[%s10512_s7 + $0x1480] sm:$0xff]  ;;  %v6054_v7 = vld [vmem:[%s10512_s7 + $0x15d8] sm:$0xff] }
 0x3f1   :  { %5577 = vmatpush.msk.msrb.mxu2 %vm171_vm0, %v5575_v61  ;;  %4087 = vmatpush.msra.mxu3 %v5840_v5  ;;  %v2436_v44 = vpop.f32.mrf.mxu3  ;;  %v5824_v61 = vld [vmem:[%s10512_s7 + $0xf88] sm:$0xff]  ;;  %v6015_v5 = vld [vmem:[%s10512_s7 + $0x14c0] sm:$0xff] }
 0x3f2   :  { %4385 = vmatpush.msra.mxu1 %v5947_v3  ;;  %4475 = vmatpush.msrb.mxu0 %v5994_v22  ;;  %v5557_v3 = vld [vmem:[%s10512_s7 + $0x850] sm:$0xff]  ;;  %v2478_v22 = vadd.f32 %v2436_v44, %v2193_v57  ;;  %v5896_v44 = vld [vmem:[%s10512_s7 + $0x1188] sm:$0xff] }
 0x3f3   :  { %3363 = vmatpush.msrb.mxu2 %v5573_v47  ;;  %4088 = vmatpush.msra.mxu3 %v5838_v2  ;;  %v5822_v47 = vld [vmem:[%s10512_s7 + $0xf78] sm:$0xff]  ;;  %v5976_v2 = vld [vmem:[%s10512_s7 + $0x13a8] sm:$0xff]  ;;  %v6001_v57 = vld [vmem:[%s10512_s7 + $0x1450] sm:$0xff] }
 0x3f4   :  { %4386 = vmatpush.msra.mxu1 %v5945_v63  ;;  %4476 = vmatpush.msrb.mxu0 %v5992_v31  ;;  %v6013_v63 = vld [vmem:[%s10512_s7 + $0x14b0] sm:$0xff] }
 0x3f5   :  { %3364 = vmatpush.msrb.mxu2 %v5571_v53  ;;  %4089 = vmatpush.msra.mxu3 %v5836_v10  ;;  %v5906_v53 = vld [vmem:[%s10512_s7 + $0x11d8] sm:$0xf]  ;;  %v5555_v10 = vld [vmem:[%s10512_s7 + $0x840] sm:$0xff] }
 0x3f6   :  { %4387 = vmatpush.msra.mxu1 %v5943_v9  ;;  %4477 = vmatpush.msrb.mxu0 %v5990_v46  ;;  %v5974_v46 = vld [vmem:[%s10512_s7 + $0x1398] sm:$0xff] }
 0x3f7   :  { %3365 = vmatpush.msrb.mxu2 %v5569_v11  ;;  %4090 = vmatpush.msra.mxu3 %v5834_v14  ;;  %v6011_v11 = vld [vmem:[%s10512_s7 + $0x14a0] sm:$0xff]  ;;  %v1995_v14 = vpop.f32.mrf.mxu0 }
 0x3f8   :  { %4388 = vmatpush.msra.mxu1 %v5941_v17  ;;  %4478 = vmatpush.msrb.mxu0 %v5988_v26  ;;  %v2195_v17 = vpop.f32.mrf.mxu1  ;;  %v9653_v26 = vadd.f32 %v9529_v33, %v2478_v22  ;;  %v5892_v22 = vld [vmem:[%s10512_s7 + $0x1168] sm:$0xff] }
 0x3f9   :  { %5968 = vmatmul.msk.f32.vlgmr.msra.gmra.mxu1 %vm1720_vm3, %v2541_v49  ;;  %3366 = vmatpush.msrb.mxu2 %v5567_v30  ;;  %v5972_v30 = vld [vmem:[%s10512_s7 + $0x1388] sm:$0xff] }
 0x3fa   :  { %6027 = vmatpush.msk.msrb.mxu1 %vm171_vm0, %v6025_v45  ;;  %4091 = vmatpush.msra.mxu3 %v5832_v16  ;;  %v5553_v45 = vld [vmem:[%s10512_s7 + $0x830] sm:$0xff]  ;;  %v5902_v16 = vld [vmem:[%s10512_s7 + $0x11b8] sm:$0xff] }
 0x3fb   :  { %4479 = vmatpush.msrb.mxu0 %v5986_v28  ;;  %3367 = vmatpush.msrb.mxu2 %v5565_v15  ;;  %v5551_v28 = vld [vmem:[%s10512_s7 + $0x820] sm:$0xff]  ;;  %v2542_v15 = vmax.f32 %v9653_v26, 0.0 }
 0x3fc   :  { %4533 = vmatpush.msrb.mxu1 %v6023_v19  ;;  %4092 = vmatpush.msra.mxu3 %v5830_v40  ;;  %v2196_v19 = vadd.f32 %v2195_v17, %v1995_v14  ;;  %v6056_v40 = vld [vmem:[%s10512_s7 + $0x15e8] sm:$0xf]  ;;  %v6047_v26 = vld [vmem:[%s10512_s7 + $0x15a0] sm:$0xff] }
 0x3fd   :  { %4480 = vmatpush.msrb.mxu0 %v5984_v62  ;;  %3368 = vmatpush.msrb.mxu2 %v5563_v21  ;;  %v5635_v62 = vld [vmem:[%s10512_s7 + $0xa80] sm:$0xf]  ;;  %v5900_v21 = vld [vmem:[%s10512_s7 + $0x11a8] sm:$0xff] }
 0x3fe   :  { %4534 = vmatpush.msrb.mxu1 %v6021_v18  ;;  %4093 = vmatpush.msra.mxu3 %v5828_v39  ;;  %v5633_v39 = vld [vmem:[%s10512_s7 + $0xa70] sm:$0xff]  ;;  %v5888_v17 = vld [vmem:[%s10512_s7 + $0x1148] sm:$0xff] }
 0x3ff   :  { %4481 = vmatpush.msrb.mxu0 %v5982_v37  ;;  %3369 = vmatpush.msrb.mxu2 %v5561_v42  ;;  %v5898_v37 = vld [vmem:[%s10512_s7 + $0x1198] sm:$0xff] }
 0x400   :  { %4535 = vmatpush.msrb.mxu1 %v6019_v25  ;;  %4094 = vmatpush.msra.mxu3 %v5826_v12  ;;  %v5631_v25 = vld [vmem:[%s10512_s7 + $0xa60] sm:$0xff]  ;;  %v2198_v14 = vpop.f32.mrf.mxu1 }
 0x401   :  { %4482 = vmatpush.msrb.mxu0 %v5980_v1  ;;  %3370 = vmatpush.msrb.mxu2 %v5559_v50  ;;  %v6003_v12 = vld [vmem:[%s10512_s7 + $0x1460] sm:$0xff]  ;;  %v6050_v1 = vld [vmem:[%s10512_s7 + $0x15b8] sm:$0xff] }
 0x402   :  { %4536 = vmatpush.msrb.mxu1 %v6017_v4  ;;  %4095 = vmatpush.msra.mxu3 %v5824_v61  ;;  %v5629_v4 = vld [vmem:[%s10512_s7 + $0xa50] sm:$0xff]  ;;  %v5894_v50 = vld [vmem:[%s10512_s7 + $0x1178] sm:$0xff]  ;;  %v6048_v61 = vld [vmem:[%s10512_s7 + $0x15a8] sm:$0xff] }
 0x403   :  { %4483 = vmatpush.msrb.mxu0 %v5978_v27  ;;  %v2830_v31 = vpop.f32.mrf.mxu2  ;;  %3371 = vmatpush.msrb.mxu2 %v5557_v3  ;;  %v5627_v3 = vld [vmem:[%s10512_s7 + $0xa40] sm:$0xff] }
 0x404   :  { %4537 = vmatpush.msrb.mxu1 %v6015_v5  ;;  %v9644_v9 = vadd.f32 %v2830_v31, %v9280_v51  ;;  %4096 = vmatpush.msra.mxu3 %v5822_v47  ;;  %v5904_v51 = vld [vmem:[%s10512_s7 + $0x11c8] sm:$0xff]  ;;  %v6085_v5 = vld [vmem:[%s10512_s7 + $0x16b0] sm:$0xf]  ;;  %v6046_v47 = vld [vmem:[%s10512_s7 + $0x1598] sm:$0xff] }
 0x405   :  { %4484 = vmatpush.msrb.mxu0 %v5976_v2  ;;  %5850 = vmatmul.msk.f32.vlgmr.msra.gmra.mxu3 %vm1720_vm3, %v2537_v59  ;;  %v2439_v59 = vpop.f32.mrf.mxu3  ;;  %v6083_v2 = vld [vmem:[%s10512_s7 + $0x16a0] sm:$0xff]  ;;  %v5890_v31 = vld [vmem:[%s10512_s7 + $0x1158] sm:$0xff] }
 0x406   :  { %4538 = vmatpush.msrb.mxu1 %v6013_v63  ;;  %5909 = vmatpush.msk.msrb.mxu3 %vm171_vm0, %v5906_v53  ;;  %v2479_v18 = vadd.f32 %v2439_v59, %v2196_v19  ;;  %v5625_v63 = vld [vmem:[%s10512_s7 + $0xa30] sm:$0xff]  ;;  %v6044_v53 = vld [vmem:[%s10512_s7 + $0x1588] sm:$0xff]  ;;  %v5886_v59 = vld [vmem:[%s10512_s7 + $0x1138] sm:$0xff] }
 0x407   :  { %3372 = vmatpush.msrb.mxu2 %v5555_v10  ;;  %4485 = vmatpush.msrb.mxu0 %v5974_v46  ;;  %v6081_v10 = vld [vmem:[%s10512_s7 + $0x1690] sm:$0xff]  ;;  %v5623_v46 = vld [vmem:[%s10512_s7 + $0xa20] sm:$0xff] }
 0x408   :  { %4539 = vmatpush.msrb.mxu1 %v6011_v11  ;;  %4241 = vmatpush.msrb.mxu3 %v5904_v51  ;;  %v9717_v42 = vadd.f32 %v9529_v33, %v2479_v18  ;;  %v1998_v11 = vpop.f32.mrf.mxu0  ;;  %v6042_v51 = vld [vmem:[%s10512_s7 + $0x1578] sm:$0xff]  ;;  %v5619_v19 = vld [vmem:[%s10512_s7 + $0xa00] sm:$0xff] }
 0x409   :  { %3373 = vmatpush.msrb.mxu2 %v5553_v45  ;;  %4486 = vmatpush.msrb.mxu0 %v5972_v30  ;;  %v6079_v45 = vld [vmem:[%s10512_s7 + $0x1680] sm:$0xff]  ;;  %v5621_v30 = vld [vmem:[%s10512_s7 + $0xa10] sm:$0xff]  ;;  %v6038_v18 = vld [vmem:[%s10512_s7 + $0x1558] sm:$0xff] }
 0x40a   :  { %4540 = vmatpush.msrb.mxu1 %v6009_v29  ;;  %4242 = vmatpush.msrb.mxu3 %v5902_v16  ;;  %v2543_v27 = vmax.f32 %v9717_v42, 0.0  ;;  %v6040_v16 = vld [vmem:[%s10512_s7 + $0x1568] sm:$0xff]  ;;  %v5815_v42 = vld [vmem:[%s10512_s7 + $0xf60] sm:$0xf] }
 0x40b   :  { %3374 = vmatpush.msrb.mxu2 %v5551_v28  ;;  %6000 = vmatmul.msk.f32.vlgmr.msrb.gmra.mxu0 %vm1720_vm3, %v2542_v15  ;;  %v6077_v28 = vld [vmem:[%s10512_s7 + $0x1670] sm:$0xff] }
 0x40c   :  { %5578 = vmatmul.msk.f32.vlgmr.msrb.gmra.mxu2 %vm1720_vm3, %v2528_v43  ;;  %6059 = vmatpush.msk.msra.mxu0 %vm171_vm0, %v6056_v40  ;;  %v6052_v43 = vld [vmem:[%s10512_s7 + $0x15c8] sm:$0xff]  ;;  %v2199_v40 = vadd.f32 %v2198_v14, %v1998_v11  ;;  %v6114_v11 = vld [vmem:[%s10512_s7 + $0x1778] sm:$0xff]  ;;  %v5693_v14 = vld [vmem:[%s10512_s7 + $0xc10] sm:$0xff] }
 0x40d   :  { %5637 = vmatpush.msk.msra.mxu2 %vm171_vm0, %v5635_v62  ;;  %4243 = vmatpush.msrb.mxu3 %v5900_v21  ;;  %v2442_v29 = vpop.f32.mrf.mxu3  ;;  %v5884_v62 = vld [vmem:[%s10512_s7 + $0x1128] sm:$0xff]  ;;  %v6075_v21 = vld [vmem:[%s10512_s7 + $0x1660] sm:$0xff] }
 0x40e   :  { %4541 = vmatpush.msrb.mxu1 %v6007_v35  ;;  %4631 = vmatpush.msra.mxu0 %v6054_v7  ;;  %v5617_v35 = vld [vmem:[%s10512_s7 + $0x9f0] sm:$0xff]  ;;  %v2480_v7 = vadd.f32 %v2442_v29, %v2199_v40  ;;  %v6063_v29 = vld [vmem:[%s10512_s7 + $0x1600] sm:$0xff]  ;;  %v6108_v40 = vld [vmem:[%s10512_s7 + $0x1748] sm:$0xff] }
 0x40f   :  { %3519 = vmatpush.msra.mxu2 %v5633_v39  ;;  %4244 = vmatpush.msrb.mxu3 %v5898_v37  ;;  %v5882_v39 = vld [vmem:[%s10512_s7 + $0x1118] sm:$0xff]  ;;  %v6036_v37 = vld [vmem:[%s10512_s7 + $0x1548] sm:$0xff] }
 0x410   :  { %4542 = vmatpush.msrb.mxu1 %v6005_v58  ;;  %4632 = vmatpush.msra.mxu0 %v6052_v43  ;;  %v6073_v58 = vld [vmem:[%s10512_s7 + $0x1650] sm:$0xff]  ;;  %v5966_v43 = vld [vmem:[%s10512_s7 + $0x1378] sm:$0xf] }
 0x411   :  { %3520 = vmatpush.msra.mxu2 %v5631_v25  ;;  %4245 = vmatpush.msrb.mxu3 %v5896_v44  ;;  %v5615_v25 = vld [vmem:[%s10512_s7 + $0x9e0] sm:$0xff]  ;;  %v6034_v44 = vld [vmem:[%s10512_s7 + $0x1538] sm:$0xff] }
 0x412   :  { %4543 = vmatpush.msrb.mxu1 %v6003_v12  ;;  %4633 = vmatpush.msra.mxu0 %v6050_v1  ;;  %v6071_v12 = vld [vmem:[%s10512_s7 + $0x1640] sm:$0xff]  ;;  %v2001_v1 = vpop.f32.mrf.mxu0 }
 0x413   :  { %3521 = vmatpush.msra.mxu2 %v5629_v4  ;;  %4246 = vmatpush.msrb.mxu3 %v5894_v50  ;;  %v2201_v4 = vpop.f32.mrf.mxu1  ;;  %v9833_v50 = vadd.f32 %v9529_v33, %v2480_v7  ;;  %v6106_v7 = vld [vmem:[%s10512_s7 + $0x1738] sm:$0xff] }
 0x414   :  { %4544 = vmatpush.msrb.mxu1 %v6001_v57  ;;  %4634 = vmatpush.msra.mxu0 %v6048_v61  ;;  %v5964_v57 = vld [vmem:[%s10512_s7 + $0x1368] sm:$0xff]  ;;  %v5613_v61 = vld [vmem:[%s10512_s7 + $0x9d0] sm:$0xff] }
 0x415   :  { %6028 = vmatmul.msk.f32.vlgmr.msrb.gmra.mxu1 %vm1720_vm3, %v2543_v27  ;;  %3522 = vmatpush.msra.mxu2 %v5627_v3  ;;  %v5962_v3 = vld [vmem:[%s10512_s7 + $0x1358] sm:$0xff] }
 0x416   :  { %6087 = vmatpush.msk.msra.mxu1 %vm171_vm0, %v6085_v5  ;;  %4247 = vmatpush.msrb.mxu3 %v5892_v22  ;;  %v6032_v5 = vld [vmem:[%s10512_s7 + $0x1528] sm:$0xff]  ;;  %v5611_v22 = vld [vmem:[%s10512_s7 + $0x9c0] sm:$0xff] }
 0x417   :  { %4635 = vmatpush.msra.mxu0 %v6046_v47  ;;  %3523 = vmatpush.msra.mxu2 %v5625_v63  ;;  %v2202_v47 = vadd.f32 %v2201_v4, %v2001_v1  ;;  %v6116_v63 = vld [vmem:[%s10512_s7 + $0x1788] sm:$0xf] }
 0x418   :  { %4689 = vmatpush.msra.mxu1 %v6083_v2  ;;  %4248 = vmatpush.msrb.mxu3 %v5890_v31  ;;  %v2544_v2 = vmax.f32 %v9833_v50, 0.0  ;;  %v5695_v31 = vld [vmem:[%s10512_s7 + $0xc20] sm:$0xf]  ;;  %v5948_v4 = vld [vmem:[%s10512_s7 + $0x12e8] sm:$0xff] }
 0x419   :  { %4636 = vmatpush.msra.mxu0 %v6044_v53  ;;  %3524 = vmatpush.msra.mxu2 %v5623_v46  ;;  %v6067_v46 = vld [vmem:[%s10512_s7 + $0x1620] sm:$0xff] }
 0x41a   :  { %4690 = vmatpush.msra.mxu1 %v6081_v10  ;;  %4249 = vmatpush.msrb.mxu3 %v5888_v17  ;;  %v5960_v10 = vld [vmem:[%s10512_s7 + $0x1348] sm:$0xff]  ;;  %v5958_v17 = vld [vmem:[%s10512_s7 + $0x1338] sm:$0xff] }
 0x41b   :  { %4637 = vmatpush.msra.mxu0 %v6042_v51  ;;  %3525 = vmatpush.msra.mxu2 %v5621_v30  ;;  %v5691_v51 = vld [vmem:[%s10512_s7 + $0xc00] sm:$0xff]  ;;  %v5956_v30 = vld [vmem:[%s10512_s7 + $0x1328] sm:$0xff]  ;;  %v2204_v1 = vpop.f32.mrf.mxu1 }
 0x41c   :  { %4691 = vmatpush.msra.mxu1 %v6079_v45  ;;  %4250 = vmatpush.msrb.mxu3 %v5886_v59  ;;  %v6110_v59 = vld [vmem:[%s10512_s7 + $0x1758] sm:$0xff] }
 0x41d   :  { %4638 = vmatpush.msra.mxu0 %v6040_v16  ;;  %3526 = vmatpush.msra.mxu2 %v5619_v19  ;;  %v5689_v16 = vld [vmem:[%s10512_s7 + $0xbf0] sm:$0xff] }
 0x41e   :  { %4692 = vmatpush.msra.mxu1 %v6077_v28  ;;  %4251 = vmatpush.msrb.mxu3 %v5884_v62  ;;  %v5954_v28 = vld [vmem:[%s10512_s7 + $0x1318] sm:$0xff]  ;;  %v6061_v19 = vld [vmem:[%s10512_s7 + $0x15f0] sm:$0xff] }
 0x41f   :  { %4639 = vmatpush.msra.mxu0 %v6038_v18  ;;  %3527 = vmatpush.msra.mxu2 %v5617_v35  ;;  %v6145_v18 = vld [vmem:[%s10512_s7 + $0x1850] sm:$0xf]  ;;  %v5952_v35 = vld [vmem:[%s10512_s7 + $0x1308] sm:$0xff] }
 0x420   :  { %4693 = vmatpush.msra.mxu1 %v6075_v21  ;;  %4252 = vmatpush.msrb.mxu3 %v5882_v39  ;;  %v5687_v21 = vld [vmem:[%s10512_s7 + $0xbe0] sm:$0xff] }
 0x421   :  { %4640 = vmatpush.msra.mxu0 %v6036_v37  ;;  %5910 = vmatmul.msk.f32.vlgmr.msrb.gmra.mxu3 %vm1720_vm3, %v2539_v54  ;;  %v2445_v54 = vpop.f32.mrf.mxu3  ;;  %v6143_v39 = vld [vmem:[%s10512_s7 + $0x1840] sm:$0xff]  ;;  %v5685_v37 = vld [vmem:[%s10512_s7 + $0xbd0] sm:$0xff] }
 0x422   :  { %4694 = vmatpush.msra.mxu1 %v6073_v58  ;;  %5969 = vmatpush.msk.msra.mxu3 %vm171_vm0, %v5966_v43  ;;  %v2481_v53 = vadd.f32 %v2445_v54, %v2202_v47  ;;  %v5950_v58 = vld [vmem:[%s10512_s7 + $0x12f8] sm:$0xff]  ;;  %v6104_v43 = vld [vmem:[%s10512_s7 + $0x1728] sm:$0xff]  ;;  %v5679_v47 = vld [vmem:[%s10512_s7 + $0xba0] sm:$0xff] }
 0x423   :  { %3528 = vmatpush.msra.mxu2 %v5615_v25  ;;  %4641 = vmatpush.msra.mxu0 %v6034_v44  ;;  %v6141_v25 = vld [vmem:[%s10512_s7 + $0x1830] sm:$0xff]  ;;  %v5683_v44 = vld [vmem:[%s10512_s7 + $0xbc0] sm:$0xff]  ;;  %v5946_v54 = vld [vmem:[%s10512_s7 + $0x12d8] sm:$0xff] }
 0x424   :  { %4695 = vmatpush.msra.mxu1 %v6071_v12  ;;  %4397 = vmatpush.msra.mxu3 %v5964_v57  ;;  %v9897_v45 = vadd.f32 %v9529_v33, %v2481_v53  ;;  %v2004_v12 = vpop.f32.mrf.mxu0  ;;  %v6102_v57 = vld [vmem:[%s10512_s7 + $0x1718] sm:$0xff] }
 0x425   :  { %3529 = vmatpush.msra.mxu2 %v5613_v61  ;;  %4642 = vmatpush.msra.mxu0 %v6032_v5  ;;  %v6139_v61 = vld [vmem:[%s10512_s7 + $0x1820] sm:$0xff]  ;;  %v5681_v5 = vld [vmem:[%s10512_s7 + $0xbb0] sm:$0xff]  ;;  %v6098_v53 = vld [vmem:[%s10512_s7 + $0x16f8] sm:$0xff] }
 0x426   :  { %4696 = vmatpush.msra.mxu1 %v6069_v60  ;;  %4398 = vmatpush.msra.mxu3 %v5962_v3  ;;  %v2545_v62 = vmax.f32 %v9897_v45, 0.0  ;;  %v6100_v3 = vld [vmem:[%s10512_s7 + $0x1708] sm:$0xff]  ;;  %v5875_v45 = vld [vmem:[%s10512_s7 + $0x1100] sm:$0xf] }
 0x427   :  { %3530 = vmatpush.msra.mxu2 %v5611_v22  ;;  %6060 = vmatmul.msk.f32.vlgmr.msra.gmra.mxu0 %vm1720_vm3, %v2544_v2  ;;  %v6137_v22 = vld [vmem:[%s10512_s7 + $0x1810] sm:$0xff] }
 0x428   :  { %5638 = vmatmul.msk.f32.vlgmr.msra.gmra.mxu2 %vm1720_vm3, %v2530_v6  ;;  %6119 = vmatpush.msk.msrb.mxu0 %vm171_vm0, %v6116_v63  ;;  %v6112_v6 = vld [vmem:[%s10512_s7 + $0x1768] sm:$0xff]  ;;  %v2205_v63 = vadd.f32 %v2204_v1, %v2004_v12  ;;  %v6018_v12 = vld [vmem:[%s10512_s7 + $0x14d8] sm:$0xff]  ;;  %v6125_v1 = vld [vmem:[%s10512_s7 + $0x17b0] sm:$0xff] }
 0x429   :  { %5697 = vmatpush.msk.msrb.mxu2 %vm171_vm0, %v5695_v31  ;;  %4399 = vmatpush.msra.mxu3 %v5960_v10  ;;  %v2448_v60 = vpop.f32.mrf.mxu3  ;;  %v5944_v31 = vld [vmem:[%s10512_s7 + $0x12c8] sm:$0xff]  ;;  %v6135_v10 = vld [vmem:[%s10512_s7 + $0x1800] sm:$0xff] }
 0x42a   :  { %4697 = vmatpush.msra.mxu1 %v6067_v46  ;;  %4787 = vmatpush.msrb.mxu0 %v6114_v11  ;;  %v5677_v46 = vld [vmem:[%s10512_s7 + $0xb90] sm:$0xff]  ;;  %v2482_v11 = vadd.f32 %v2448_v60, %v2205_v63  ;;  %v5747_v60 = vld [vmem:[%s10512_s7 + $0xd80] sm:$0xff] }
 0x42b   :  { %3675 = vmatpush.msrb.mxu2 %v5693_v14  ;;  %4400 = vmatpush.msra.mxu3 %v5958_v17  ;;  %v5942_v14 = vld [vmem:[%s10512_s7 + $0x12b8] sm:$0xff]  ;;  %v6096_v17 = vld [vmem:[%s10512_s7 + $0x16e8] sm:$0xff]  ;;  %v5743_v63 = vld [vmem:[%s10512_s7 + $0xd60] sm:$0xff] }
 0x42c   :  { %4698 = vmatpush.msra.mxu1 %v6065_v23  ;;  %4788 = vmatpush.msrb.mxu0 %v6112_v6  ;;  %v6133_v23 = vld [vmem:[%s10512_s7 + $0x17f0] sm:$0xff]  ;;  %v6026_v6 = vld [vmem:[%s10512_s7 + $0x1518] sm:$0xf] }
 0x42d   :  { %3676 = vmatpush.msrb.mxu2 %v5691_v51  ;;  %4401 = vmatpush.msra.mxu3 %v5956_v30  ;;  %v5675_v51 = vld [vmem:[%s10512_s7 + $0xb80] sm:$0xff]  ;;  %v6094_v30 = vld [vmem:[%s10512_s7 + $0x16d8] sm:$0xff] }
 0x42e   :  { %4699 = vmatpush.msra.mxu1 %v6063_v29  ;;  %4789 = vmatpush.msrb.mxu0 %v6110_v59  ;;  %v6131_v29 = vld [vmem:[%s10512_s7 + $0x17e0] sm:$0xff]  ;;  %v2007_v59 = vpop.f32.mrf.mxu0 }
 0x42f   :  { %3677 = vmatpush.msrb.mxu2 %v5689_v16  ;;  %4402 = vmatpush.msra.mxu3 %v5954_v28  ;;  %v2207_v16 = vpop.f32.mrf.mxu1  ;;  %v10013_v28 = vadd.f32 %v9529_v33, %v2482_v11  ;;  %v6004_v11 = vld [vmem:[%s10512_s7 + $0x1468] sm:$0xff] }
 0x430   :  { %4700 = vmatpush.msra.mxu1 %v6061_v19  ;;  %4790 = vmatpush.msrb.mxu0 %v6108_v40  ;;  %v6024_v19 = vld [vmem:[%s10512_s7 + $0x1508] sm:$0xff]  ;;  %v5673_v40 = vld [vmem:[%s10512_s7 + $0xb70] sm:$0xff] }
 0x431   :  { %6088 = vmatmul.msk.f32.vlgmr.msra.gmra.mxu1 %vm1720_vm3, %v2545_v62  ;;  %3678 = vmatpush.msrb.mxu2 %v5687_v21  ;;  %v6022_v21 = vld [vmem:[%s10512_s7 + $0x14f8] sm:$0xff] }
 0x432   :  { %6147 = vmatpush.msk.msrb.mxu1 %vm171_vm0, %v6145_v18  ;;  %4403 = vmatpush.msra.mxu3 %v5952_v35  ;;  %v6092_v18 = vld [vmem:[%s10512_s7 + $0x16c8] sm:$0xff]  ;;  %v5671_v35 = vld [vmem:[%s10512_s7 + $0xb60] sm:$0xff] }
 0x433   :  { %4791 = vmatpush.msrb.mxu0 %v6106_v7  ;;  %3679 = vmatpush.msrb.mxu2 %v5685_v37  ;;  %v2208_v7 = vadd.f32 %v2207_v16, %v2007_v59  ;;  %v5755_v37 = vld [vmem:[%s10512_s7 + $0xdc0] sm:$0xf]  ;;  %v6082_v59 = vld [vmem:[%s10512_s7 + $0x1698] sm:$0xff]  ;;  %v5813_v16 = vld [vmem:[%s10512_s7 + $0xf50] sm:$0xff] }
 0x434   :  { %4845 = vmatpush.msrb.mxu1 %v6143_v39  ;;  %4404 = vmatpush.msra.mxu3 %v5950_v58  ;;  %v2546_v39 = vmax.f32 %v10013_v28, 0.0  ;;  %v6020_v58 = vld [vmem:[%s10512_s7 + $0x14e8] sm:$0xff] }
 0x435   :  { %4792 = vmatpush.msrb.mxu0 %v6104_v43  ;;  %3680 = vmatpush.msrb.mxu2 %v5683_v44  ;;  %v5753_v44 = vld [vmem:[%s10512_s7 + $0xdb0] sm:$0xff] }
 0x436   :  { %4846 = vmatpush.msrb.mxu1 %v6141_v25  ;;  %4405 = vmatpush.msra.mxu3 %v5948_v4  ;;  %v6127_v25 = vld [vmem:[%s10512_s7 + $0x17c0] sm:$0xff] }
 0x437   :  { %4793 = vmatpush.msrb.mxu0 %v6102_v57  ;;  %3681 = vmatpush.msrb.mxu2 %v5681_v5  ;;  %v6123_v57 = vld [vmem:[%s10512_s7 + $0x17a0] sm:$0xff]  ;;  %v6014_v5 = vld [vmem:[%s10512_s7 + $0x14b8] sm:$0xff] }
 0x438   :  { %4847 = vmatpush.msrb.mxu1 %v6139_v61  ;;  %4406 = vmatpush.msra.mxu3 %v5946_v54  ;;  %v5749_v61 = vld [vmem:[%s10512_s7 + $0xd90] sm:$0xff] }
 0x439   :  { %4794 = vmatpush.msrb.mxu0 %v6100_v3  ;;  %3682 = vmatpush.msrb.mxu2 %v5679_v47  ;;  %v6012_v3 = vld [vmem:[%s10512_s7 + $0x14a8] sm:$0xff]  ;;  %v6010_v47 = vld [vmem:[%s10512_s7 + $0x1498] sm:$0xff] }
 0x43a   :  { %4848 = vmatpush.msrb.mxu1 %v6137_v22  ;;  %4407 = vmatpush.msra.mxu3 %v5944_v31  ;;  %v5745_v22 = vld [vmem:[%s10512_s7 + $0xd70] sm:$0xff]  ;;  %v6008_v31 = vld [vmem:[%s10512_s7 + $0x1488] sm:$0xff] }
 0x43b   :  { %4795 = vmatpush.msrb.mxu0 %v6098_v53  ;;  %3683 = vmatpush.msrb.mxu2 %v5677_v46  ;;  %v5741_v53 = vld [vmem:[%s10512_s7 + $0xd50] sm:$0xff]  ;;  %v5739_v46 = vld [vmem:[%s10512_s7 + $0xd40] sm:$0xff] }
 0x43c   :  { %4849 = vmatpush.msrb.mxu1 %v6135_v10  ;;  %4408 = vmatpush.msra.mxu3 %v5942_v14  ;;  %v6006_v10 = vld [vmem:[%s10512_s7 + $0x1478] sm:$0xff]  ;;  %v5737_v14 = vld [vmem:[%s10512_s7 + $0xd30] sm:$0xff] }
 0x43d   :  { %4796 = vmatpush.msrb.mxu0 %v6096_v17  ;;  %5970 = vmatmul.msk.f32.vlgmr.msra.gmra.mxu3 %vm1720_vm3, %v2541_v49  ;;  %v2451_v49 = vpop.f32.mrf.mxu3  ;;  %v6002_v17 = vld [vmem:[%s10512_s7 + $0x1458] sm:$0xff] }
 0x43e   :  { %4850 = vmatpush.msrb.mxu1 %v6133_v23  ;;  %6029 = vmatpush.msk.msrb.mxu3 %vm171_vm0, %v6026_v6  ;;  %v2483_v43 = vadd.f32 %v2451_v49, %v2208_v7  ;;  %v5735_v23 = vld [vmem:[%s10512_s7 + $0xd20] sm:$0xff]  ;;  %v6086_v6 = vld [vmem:[%s10512_s7 + $0x16b8] sm:$0xf]  ;;  %v6072_v49 = vld [vmem:[%s10512_s7 + $0x1648] sm:$0xff] }
 0x43f   :  { %3684 = vmatpush.msrb.mxu2 %v5675_v51  ;;  %4797 = vmatpush.msrb.mxu0 %v6094_v30  ;;  %v5733_v51 = vld [vmem:[%s10512_s7 + $0xd10] sm:$0xff]  ;;  %v6084_v30 = vld [vmem:[%s10512_s7 + $0x16a8] sm:$0xff]  ;;  %v5803_v7 = vld [vmem:[%s10512_s7 + $0xf00] sm:$0xff] }
 0x440   :  { %4851 = vmatpush.msrb.mxu1 %v6131_v29  ;;  %4553 = vmatpush.msrb.mxu3 %v6024_v19  ;;  %v10070_v4 = vadd.f32 %v9529_v33, %v2483_v43  ;;  %v6121_v33 = vld [vmem:[%s10512_s7 + $0x1790] sm:$0xff]  ;;  %v5731_v29 = vld [vmem:[%s10512_s7 + $0xd00] sm:$0xff]  ;;  %v6078_v19 = vld [vmem:[%s10512_s7 + $0x1678] sm:$0xff] }
 0x441   :  { %3685 = vmatpush.msrb.mxu2 %v5673_v40  ;;  %4798 = vmatpush.msrb.mxu0 %v6092_v18  ;;  %v5811_v40 = vld [vmem:[%s10512_s7 + $0xf40] sm:$0xff]  ;;  %v6074_v18 = vld [vmem:[%s10512_s7 + $0x1658] sm:$0xff] }
 0x442   :  { %4852 = vmatpush.msrb.mxu1 %v6129_v8  ;;  %4554 = vmatpush.msrb.mxu3 %v6022_v21  ;;  %v2547_v54 = vmax.f32 %v10070_v4, 0.0  ;;  %v5807_v8 = vld [vmem:[%s10512_s7 + $0xf20] sm:$0xff]  ;;  %v5805_v21 = vld [vmem:[%s10512_s7 + $0xf10] sm:$0xff]  ;;  %v6066_v43 = vld [vmem:[%s10512_s7 + $0x1618] sm:$0xff] }
 0x443   :  { %3686 = vmatpush.msrb.mxu2 %v5671_v35  ;;  %6120 = vmatmul.msk.f32.vlgmr.msrb.gmra.mxu0 %vm1720_vm3, %v2546_v39  ;;  %v6070_v35 = vld [vmem:[%s10512_s7 + $0x1638] sm:$0xff]  ;;  %v5933_v4 = vld [vmem:[%s10512_s7 + $0x1290] sm:$0xff] }
 0x444   :  { %5698 = vmatmul.msk.f32.vlgmr.msrb.gmra.mxu2 %vm1720_vm3, %v2532_v38  ;;  %4555 = vmatpush.msrb.mxu3 %v6020_v58  ;;  %v6016_v38 = vld [vmem:[%s10512_s7 + $0x14c8] sm:$0xff]  ;;  %v5801_v58 = vld [vmem:[%s10512_s7 + $0xef0] sm:$0xff] }
 0x445   :  { %5757 = vmatpush.msk.msra.mxu2 %vm171_vm0, %v5755_v37  ;;  %4853 = vmatpush.msrb.mxu1 %v6127_v25  ;;  %v6068_v37 = vld [vmem:[%s10512_s7 + $0x1628] sm:$0xff]  ;;  %v5799_v25 = vld [vmem:[%s10512_s7 + $0xee0] sm:$0xff] }
 0x446   :  { %4556 = vmatpush.msrb.mxu3 %v6018_v12  ;;  %v5797_v12 = vld [vmem:[%s10512_s7 + $0xed0] sm:$0xff] }
 0x447   :  { %3831 = vmatpush.msra.mxu2 %v5753_v44  ;;  %4854 = vmatpush.msrb.mxu1 %v6125_v1  ;;  %v6064_v44 = vld [vmem:[%s10512_s7 + $0x1608] sm:$0xff]  ;;  %v6062_v1 = vld [vmem:[%s10512_s7 + $0x15f8] sm:$0xff] }
 0x448   :  { %4557 = vmatpush.msrb.mxu3 %v6016_v38  ;;  %v6146_v38 = vld [vmem:[%s10512_s7 + $0x1858] sm:$0xf] }
 0x449   :  { %3832 = vmatpush.msra.mxu2 %v5751_v13  ;;  %4855 = vmatpush.msrb.mxu1 %v6123_v57  ;;  %v5795_v13 = vld [vmem:[%s10512_s7 + $0xec0] sm:$0xff]  ;;  %v5793_v57 = vld [vmem:[%s10512_s7 + $0xeb0] sm:$0xff] }
 0x44a   :  { %4558 = vmatpush.msrb.mxu3 %v6014_v5  ;;  %v5791_v5 = vld [vmem:[%s10512_s7 + $0xea0] sm:$0xff] }
 0x44b   :  { %3833 = vmatpush.msra.mxu2 %v5749_v61  ;;  %4856 = vmatpush.msrb.mxu1 %v6121_v33  ;;  %v6144_v61 = vld [vmem:[%s10512_s7 + $0x1848] sm:$0xff]  ;;  %v6142_v33 = vld [vmem:[%s10512_s7 + $0x1838] sm:$0xff] }
 0x44c   :  { %6148 = vmatmul.msk.f32.vlgmr.msrb.gmra.mxu1 %vm1720_vm3, %v2547_v54  ;;  %4559 = vmatpush.msrb.mxu3 %v6012_v3  ;;  %v6138_v3 = vld [vmem:[%s10512_s7 + $0x1818] sm:$0xff] }
 0x44d   :  { %3834 = vmatpush.msra.mxu2 %v5747_v60  ;;  %v5873_v60 = vld [vmem:[%s10512_s7 + $0x10f0] sm:$0xff] }
 0x44e   :  { %4560 = vmatpush.msrb.mxu3 %v6010_v47  ;;  %v6134_v47 = vld [vmem:[%s10512_s7 + $0x17f8] sm:$0xff] }
 0x44f   :  { %3835 = vmatpush.msra.mxu2 %v5745_v22  ;;  %v5871_v22 = vld [vmem:[%s10512_s7 + $0x10e0] sm:$0xff] }
 0x450   :  { %4561 = vmatpush.msrb.mxu3 %v6008_v31  ;;  %v6132_v31 = vld [vmem:[%s10512_s7 + $0x17e8] sm:$0xff] }
 0x451   :  { %3836 = vmatpush.msra.mxu2 %v5743_v63  ;;  %v5867_v63 = vld [vmem:[%s10512_s7 + $0x10c0] sm:$0xff] }
 0x452   :  { %4562 = vmatpush.msrb.mxu3 %v6006_v10  ;;  %v6130_v10 = vld [vmem:[%s10512_s7 + $0x17d8] sm:$0xff] }
 0x453   :  { %3837 = vmatpush.msra.mxu2 %v5741_v53  ;;  %v5865_v53 = vld [vmem:[%s10512_s7 + $0x10b0] sm:$0xff] }
 0x454   :  { %4563 = vmatpush.msrb.mxu3 %v6004_v11  ;;  %v6128_v11 = vld [vmem:[%s10512_s7 + $0x17c8] sm:$0xff] }
 0x455   :  { %3838 = vmatpush.msra.mxu2 %v5739_v46  ;;  %v5863_v46 = vld [vmem:[%s10512_s7 + $0x10a0] sm:$0xff] }
 0x456   :  { %4564 = vmatpush.msrb.mxu3 %v6002_v17  ;;  %v6126_v17 = vld [vmem:[%s10512_s7 + $0x17b8] sm:$0xff] }
 0x457   :  { %3839 = vmatpush.msra.mxu2 %v5737_v14  ;;  %6030 = vmatmul.msk.f32.vlgmr.msrb.gmra.mxu3 %vm1720_vm3, %v2543_v27  ;;  %v6080_v27 = vld [vmem:[%s10512_s7 + $0x1688] sm:$0xff]  ;;  %v5861_v14 = vld [vmem:[%s10512_s7 + $0x1090] sm:$0xff] }
 0x458   :  { %6089 = vmatpush.msk.msra.mxu3 %vm171_vm0, %v6086_v6  ;;  %v6124_v6 = vld [vmem:[%s10512_s7 + $0x17a8] sm:$0xff] }
 0x459   :  { %3840 = vmatpush.msra.mxu2 %v5735_v23  ;;  %v5859_v23 = vld [vmem:[%s10512_s7 + $0x1080] sm:$0xff] }
 0x45a   :  { %4709 = vmatpush.msra.mxu3 %v6084_v30  ;;  %v6122_v30 = vld [vmem:[%s10512_s7 + $0x1798] sm:$0xff] }
 0x45b   :  { %3841 = vmatpush.msra.mxu2 %v5733_v51  ;;  %v5857_v51 = vld [vmem:[%s10512_s7 + $0x1070] sm:$0xff] }
 0x45c   :  { %4710 = vmatpush.msra.mxu3 %v6082_v59  ;;  %v5853_v59 = vld [vmem:[%s10512_s7 + $0x1050] sm:$0xff] }
 0x45d   :  { %3842 = vmatpush.msra.mxu2 %v5731_v29  ;;  %v5855_v29 = vld [vmem:[%s10512_s7 + $0x1060] sm:$0xff] }
 0x45e   :  { %5758 = vmatmul.msk.f32.vlgmr.msra.gmra.mxu2 %vm1720_vm3, %v2534_v24  ;;  %4711 = vmatpush.msra.mxu3 %v6080_v27  ;;  %v5809_v24 = vld [vmem:[%s10512_s7 + $0xf30] sm:$0xff]  ;;  %v5935_v27 = vld [vmem:[%s10512_s7 + $0x12a0] sm:$0xf] }
 0x45f   :  { %5817 = vmatpush.msk.msrb.mxu2 %vm171_vm0, %v5815_v42  ;;  %v5851_v42 = vld [vmem:[%s10512_s7 + $0x1040] sm:$0xff] }
 0x460   :  { %4712 = vmatpush.msra.mxu3 %v6078_v19  ;;  %v5923_v19 = vld [vmem:[%s10512_s7 + $0x1240] sm:$0xff] }
 0x461   :  { %3987 = vmatpush.msrb.mxu2 %v5813_v16  ;;  %v5929_v16 = vld [vmem:[%s10512_s7 + $0x1270] sm:$0xff] }
 0x462   :  { %4713 = vmatpush.msra.mxu3 %v6076_v41  ;;  %v5919_v41 = vld [vmem:[%s10512_s7 + $0x1220] sm:$0xff] }
 0x463   :  { %3988 = vmatpush.msrb.mxu2 %v5811_v40  ;;  %v5921_v40 = vld [vmem:[%s10512_s7 + $0x1230] sm:$0xff] }
 0x464   :  { %4714 = vmatpush.msra.mxu3 %v6074_v18  ;;  %v5915_v18 = vld [vmem:[%s10512_s7 + $0x1200] sm:$0xff] }
 0x465   :  { %3989 = vmatpush.msrb.mxu2 %v5809_v24  ;;  %v5917_v24 = vld [vmem:[%s10512_s7 + $0x1210] sm:$0xff] }
 0x466   :  { %4715 = vmatpush.msra.mxu3 %v6072_v49  ;;  %v5911_v49 = vld [vmem:[%s10512_s7 + $0x11e0] sm:$0xff] }
 0x467   :  { %3990 = vmatpush.msrb.mxu2 %v5807_v8  ;;  %v5913_v8 = vld [vmem:[%s10512_s7 + $0x11f0] sm:$0xff] }
 0x468   :  { %4716 = vmatpush.msra.mxu3 %v6070_v35  ;;  %v5993_v35 = vld [vmem:[%s10512_s7 + $0x1430] sm:$0xff] }
 0x469   :  { %3991 = vmatpush.msrb.mxu2 %v5805_v21  ;;  %v5995_v21 = vld [vmem:[%s10512_s7 + $0x1440] sm:$0xf] }
 0x46a   :  { %4717 = vmatpush.msra.mxu3 %v6068_v37  ;;  %v3006_v37 = vpop.f32.mrf.mxu3 }
 0x46b   :  { %3992 = vmatpush.msrb.mxu2 %v5803_v7  ;;  %v2928_v7 = vpop.f32.mrf.mxu0 }
 0x46c   :  { %4718 = vmatpush.msra.mxu3 %v6066_v43  ;;  %v5989_v43 = vld [vmem:[%s10512_s7 + $0x1410] sm:$0xff] }
 0x46d   :  { %3993 = vmatpush.msrb.mxu2 %v5801_v58  ;;  %v5991_v58 = vld [vmem:[%s10512_s7 + $0x1420] sm:$0xff] }
 0x46e   :  { %4719 = vmatpush.msra.mxu3 %v6064_v44 }
 0x46f   :  { %3994 = vmatpush.msrb.mxu2 %v5799_v25  ;;  %v2697_v25 = vadd.f32 %v9220_v34, %v8879_v20  ;;  %v5979_v20 = vld [vmem:[%s10512_s7 + $0x13c0] sm:$0xff]  ;;  %v5977_v34 = vld [vmem:[%s10512_s7 + $0x13b0] sm:$0xff] }
 0x470   :  { %4720 = vmatpush.msra.mxu3 %v6062_v1  ;;  %v5983_v1 = vld [vmem:[%s10512_s7 + $0x13e0] sm:$0xff] }
 0x471   :  { %3995 = vmatpush.msrb.mxu2 %v5797_v12  ;;  %6090 = vmatmul.msk.f32.vlgmr.msra.gmra.mxu3 %vm1720_vm3, %v2545_v62  ;;  %v6140_v62 = vld [vmem:[%s10512_s7 + $0x1828] sm:$0xff]  ;;  %v2850_v12 = vpop.f32.mrf.mxu2 }
 0x472   :  { %6149 = vmatpush.msk.msrb.mxu3 %vm171_vm0, %v6146_v38  ;;  %v3162_v38 = vpop.f32.mrf.mxu3 }
 0x473   :  { %3996 = vmatpush.msrb.mxu2 %v5795_v13  ;;  %v3084_v44 = vpop.f32.mrf.mxu0  ;;  %v2776_v13 = vadd.f32 %v9584_v52, %v2697_v25  ;;  %v6099_v25 = vld [vmem:[%s10512_s7 + $0x1700] sm:$0xff] }
 0x474   :  { %4865 = vmatpush.msrb.mxu3 %v6144_v61 }
 0x475   :  { %3997 = vmatpush.msrb.mxu2 %v5793_v57  ;;  %v5981_v57 = vld [vmem:[%s10512_s7 + $0x13d0] sm:$0xff]  ;;  %v2854_v61 = vadd.f32 %v2850_v12, %v2776_v13  ;;  %v6095_v13 = vld [vmem:[%s10512_s7 + $0x16e0] sm:$0xff] }
 0x476   :  { %4866 = vmatpush.msrb.mxu3 %v6142_v33  ;;  %v5975_v33 = vld [vmem:[%s10512_s7 + $0x13a0] sm:$0xff]  ;;  %v6097_v12 = vld [vmem:[%s10512_s7 + $0x16f0] sm:$0xff] }
 0x477   :  { %3998 = vmatpush.msrb.mxu2 %v5791_v5  ;;  %v2932_v5 = vadd.f32 %v2928_v7, %v2854_v61  ;;  %v6105_v7 = vld [vmem:[%s10512_s7 + $0x1730] sm:$0xff] }
 0x478   :  { %5818 = vmatmul.msk.f32.vlgmr.msrb.gmra.mxu2 %vm1720_vm3, %v2536_v55  ;;  %4867 = vmatpush.msrb.mxu3 %v6140_v62  ;;  %v5869_v55 = vld [vmem:[%s10512_s7 + $0x10d0] sm:$0xff] }
 0x479   :  { %5877 = vmatpush.msk.msra.mxu2 %vm171_vm0, %v5875_v45  ;;  %v5973_v62 = vld [vmem:[%s10512_s7 + $0x1390] sm:$0xff] }
 0x47a   :  { %4868 = vmatpush.msrb.mxu3 %v6138_v3  ;;  %v3318_v45 = vpop.f32.mrf.mxu3  ;;  %v5971_v3 = vld [vmem:[%s10512_s7 + $0x1380] sm:$0xff] }
 0x47b   :  { %4143 = vmatpush.msra.mxu2 %v5873_v60  ;;  %v3240_v52 = vpop.f32.mrf.mxu0  ;;  %v3010_v60 = vadd.f32 %v3006_v37, %v2932_v5  ;;  %v6103_v37 = vld [vmem:[%s10512_s7 + $0x1720] sm:$0xff] }
 0x47c   :  { %4869 = vmatpush.msrb.mxu3 %v6136_v48 }
 0x47d   :  { %4144 = vmatpush.msra.mxu2 %v5871_v22  ;;  %v6055_v22 = vld [vmem:[%s10512_s7 + $0x15e0] sm:$0xf]  ;;  %v3088_v48 = vadd.f32 %v3084_v44, %v3010_v60 }
 0x47e   :  { %4870 = vmatpush.msrb.mxu3 %v6134_v47  ;;  %v6053_v47 = vld [vmem:[%s10512_s7 + $0x15d0] sm:$0xff] }
 0x47f   :  { %4145 = vmatpush.msra.mxu2 %v5869_v55 }
 0x480   :  { %4871 = vmatpush.msrb.mxu3 %v6132_v31  ;;  %v6051_v31 = vld [vmem:[%s10512_s7 + $0x15c0] sm:$0xff] }
 0x481   :  { %4146 = vmatpush.msra.mxu2 %v5867_v63 }
 0x482   :  { %4872 = vmatpush.msrb.mxu3 %v6130_v10  ;;  %v3474_v63 = vpop.f32.mrf.mxu3  ;;  %v6049_v10 = vld [vmem:[%s10512_s7 + $0x15b0] sm:$0xff] }
 0x483   :  { %4147 = vmatpush.msra.mxu2 %v5865_v53  ;;  %v3396_v55 = vpop.f32.mrf.mxu0  ;;  %v3166_v53 = vadd.f32 %v3162_v38, %v3088_v48 }
 0x484   :  { %4873 = vmatpush.msrb.mxu3 %v6128_v11  ;;  %v6045_v11 = vld [vmem:[%s10512_s7 + $0x1590] sm:$0xff] }
 0x485   :  { %4148 = vmatpush.msra.mxu2 %v5863_v46 }
 0x486   :  { %4874 = vmatpush.msrb.mxu3 %v6126_v17  ;;  %v6043_v17 = vld [vmem:[%s10512_s7 + $0x1580] sm:$0xff] }
 0x487   :  { %4149 = vmatpush.msra.mxu2 %v5861_v14 }
 0x488   :  { %4875 = vmatpush.msrb.mxu3 %v6124_v6  ;;  %v6041_v6 = vld [vmem:[%s10512_s7 + $0x1570] sm:$0xff] }
 0x489   :  { %4150 = vmatpush.msra.mxu2 %v5859_v23 }
 0x48a   :  { %4876 = vmatpush.msrb.mxu3 %v6122_v30  ;;  %v3630_v14 = vpop.f32.mrf.mxu3 }
 0x48b   :  { %4151 = vmatpush.msra.mxu2 %v5857_v51  ;;  %6150 = vmatmul.msk.f32.vlgmr.msrb.gmra.mxu3 %vm1720_vm3, %v2547_v54  ;;  %v5931_v54 = vld [vmem:[%s10512_s7 + $0x1280] sm:$0xff]  ;;  %v3552_v46 = vpop.f32.mrf.mxu0 }
 0x48c   :  { %v6039_v51 = vld [vmem:[%s10512_s7 + $0x1560] sm:$0xff] }
 0x48d   :  { %4152 = vmatpush.msra.mxu2 %v5855_v29 }
 0x48f   :  { %4153 = vmatpush.msra.mxu2 %v5853_v59  ;;  %v6037_v59 = vld [vmem:[%s10512_s7 + $0x1550] sm:$0xff] }
 0x491   :  { %4154 = vmatpush.msra.mxu2 %v5851_v42 }
 0x492   :  { %5878 = vmatmul.msk.f32.vlgmr.msra.gmra.mxu2 %vm1720_vm3, %v2538_v0  ;;  %v5925_v0 = vld [vmem:[%s10512_s7 + $0x1250] sm:$0xff]  ;;  %v3786_v42 = vpop.f32.mrf.mxu3 }
 0x493   :  { %5937 = vmatpush.msk.msrb.mxu2 %vm171_vm0, %v5935_v27  ;;  %v3708_v29 = vpop.f32.mrf.mxu0  ;;  %v6035_v27 = vld [vmem:[%s10512_s7 + $0x1540] sm:$0xff] }
 0x495   :  { %4299 = vmatpush.msrb.mxu2 %v5933_v4 }
 0x497   :  { %4300 = vmatpush.msrb.mxu2 %v5931_v54  ;;  %v6033_v54 = vld [vmem:[%s10512_s7 + $0x1530] sm:$0xff] }
 0x499   :  { %4301 = vmatpush.msrb.mxu2 %v5929_v16  ;;  %v6031_v16 = vld [vmem:[%s10512_s7 + $0x1520] sm:$0xff] }
 0x49b   :  { %4302 = vmatpush.msrb.mxu2 %v5927_v56 }
 0x49d   :  { %4303 = vmatpush.msrb.mxu2 %v5925_v0  ;;  %v3864_v0 = vpop.f32.mrf.mxu0 }
 0x49f   :  { %4304 = vmatpush.msrb.mxu2 %v5923_v19  ;;  %v6115_v19 = vld [vmem:[%s10512_s7 + $0x1780] sm:$0xf] }
 0x4a1   :  { %4305 = vmatpush.msrb.mxu2 %v5921_v40  ;;  %v3942_v40 = vpop.f32.mrf.mxu3 }
 0x4a3   :  { %4306 = vmatpush.msrb.mxu2 %v5919_v41  ;;  %v6113_v41 = vld [vmem:[%s10512_s7 + $0x1770] sm:$0xff] }
 0x4a5   :  { %4307 = vmatpush.msrb.mxu2 %v5917_v24  ;;  %v4020_v50 = vpop.f32.mrf.mxu0 }
 0x4a7   :  { %4308 = vmatpush.msrb.mxu2 %v5915_v18  ;;  %v6111_v18 = vld [vmem:[%s10512_s7 + $0x1760] sm:$0xff] }
 0x4a9   :  { %4309 = vmatpush.msrb.mxu2 %v5913_v8  ;;  %v6109_v8 = vld [vmem:[%s10512_s7 + $0x1750] sm:$0xff] }
 0x4ab   :  { %4310 = vmatpush.msrb.mxu2 %v5911_v49 }
 0x4ac   :  { %5938 = vmatmul.msk.f32.vlgmr.msrb.gmra.mxu2 %vm1720_vm3, %v2540_v36  ;;  %v5985_v36 = vld [vmem:[%s10512_s7 + $0x13f0] sm:$0xff] }
 0x4ad   :  { %5997 = vmatpush.msk.msra.mxu2 %vm171_vm0, %v5995_v21 }
 0x4af   :  { %4455 = vmatpush.msra.mxu2 %v5993_v35  ;;  %v4098_v35 = vpop.f32.mrf.mxu3 }
 0x4b1   :  { %4456 = vmatpush.msra.mxu2 %v5991_v58 }
 0x4b3   :  { %4457 = vmatpush.msra.mxu2 %v5989_v43  ;;  %v6101_v43 = vld [vmem:[%s10512_s7 + $0x1710] sm:$0xff] }
 0x4b5   :  { %4458 = vmatpush.msra.mxu2 %v5987_v32 }
 0x4b7   :  { %4459 = vmatpush.msra.mxu2 %v5985_v36  ;;  %v4176_v36 = vpop.f32.mrf.mxu0  ;;  %v4254_v44 = vpop.f32.mrf.mxu3 }
 0x4b9   :  { %4460 = vmatpush.msra.mxu2 %v5983_v1 }
 0x4bb   :  { %4461 = vmatpush.msra.mxu2 %v5981_v57  ;;  %v6093_v57 = vld [vmem:[%s10512_s7 + $0x16d0] sm:$0xff] }
 0x4bd   :  { %4462 = vmatpush.msra.mxu2 %v5979_v20  ;;  %v6091_v20 = vld [vmem:[%s10512_s7 + $0x16c0] sm:$0xff] }
 0x4bf   :  { %4463 = vmatpush.msra.mxu2 %v5977_v34  ;;  %v4332_v61 = vpop.f32.mrf.mxu0 }
 0x4c0   :  { %v4410_v5 = vpop.f32.mrf.mxu3 }
 0x4c1   :  { %4464 = vmatpush.msra.mxu2 %v5975_v33 }
 0x4c3   :  { %4465 = vmatpush.msra.mxu2 %v5973_v62 }
 0x4c5   :  { %4466 = vmatpush.msra.mxu2 %v5971_v3 }
 0x4c6   :  { %5998 = vmatmul.msk.f32.vlgmr.msra.gmra.mxu2 %vm1720_vm3, %v2542_v15  ;;  %v3244_v15 = vadd.f32 %v3240_v52, %v3166_v53 }
 0x4c7   :  { %6057 = vmatpush.msk.msrb.mxu2 %vm171_vm0, %v6055_v22 }
 0x4c8   :  { %v3322_v23 = vadd.f32 %v3318_v45, %v3244_v15  ;;  %v4488_v45 = vpop.f32.mrf.mxu0 }
 0x4c9   :  { %4611 = vmatpush.msrb.mxu2 %v6053_v47 }
 0x4ca   :  { %v3400_v30 = vadd.f32 %v3396_v55, %v3322_v23 }
 0x4cb   :  { %4612 = vmatpush.msrb.mxu2 %v6051_v31  ;;  %v10489_v31 = vld [vmem:[%s10513_s8] sm:$0x3] }
 0x4cc   :  { %v3478_v4 = vadd.f32 %v3474_v63, %v3400_v30  ;;  %v4886_v28 = vperm.slane %v10489_v31, 1 }
 0x4cd   :  { %4613 = vmatpush.msrb.mxu2 %v6049_v10 }
 0x4ce   :  { %v3556_v56 = vadd.f32 %v3552_v46, %v3478_v4 }
 0x4cf   :  { %4614 = vmatpush.msrb.mxu2 %v6047_v26 }
 0x4d0   :  { %v3634_v24 = vadd.f32 %v3630_v14, %v3556_v56  ;;  %v4644_v48 = vpop.f32.mrf.mxu0  ;;  %v2986_v14 = vpop.f32.mrf.mxu1 }
 0x4d1   :  { %4615 = vmatpush.msrb.mxu2 %v6045_v11  ;;  %v2908_v11 = vpop.f32.mrf.mxu2 }
 0x4d2   :  { %v3712_v49 = vadd.f32 %v3708_v29, %v3634_v24  ;;  %v2931_v29 = vadd.f32 %v2908_v11, %v9644_v9 }
 0x4d3   :  { %4616 = vmatpush.msrb.mxu2 %v6043_v17 }
 0x4d4   :  { %v3790_v21 = vadd.f32 %v3786_v42, %v3712_v49  ;;  %v3009_v42 = vadd.f32 %v2986_v14, %v2931_v29 }
 0x4d5   :  { %4617 = vmatpush.msrb.mxu2 %v6041_v6 }
 0x4d6   :  { %v3868_v58 = vadd.f32 %v3864_v0, %v3790_v21 }
 0x4d7   :  { %4618 = vmatpush.msrb.mxu2 %v6039_v51 }
 0x4d8   :  { %v3946_v32 = vadd.f32 %v3942_v40, %v3868_v58  ;;  %v4800_v53 = vpop.f32.mrf.mxu0  ;;  %v3142_v23 = vpop.f32.mrf.mxu1 }
 0x4d9   :  { %4619 = vmatpush.msrb.mxu2 %v6037_v59  ;;  %v3064_v17 = vpop.f32.mrf.mxu2 }
 0x4da   :  { %v4024_v1 = vadd.f32 %v4020_v50, %v3946_v32  ;;  %v4566_v60 = vpop.f32.mrf.mxu3 }
 0x4db   :  { %4620 = vmatpush.msrb.mxu2 %v6035_v27  ;;  %v3087_v27 = vadd.f32 %v3064_v17, %v3009_v42 }
 0x4dc   :  { %v4102_v38 = vadd.f32 %v4098_v35, %v4024_v1 }
 0x4dd   :  { %4621 = vmatpush.msrb.mxu2 %v6033_v54 }
 0x4de   :  { %v4180_v34 = vadd.f32 %v4176_v36, %v4102_v38  ;;  %v16_v38 = vstv %s10515_s10 }
 0x4df   :  { %4622 = vmatpush.msrb.mxu2 %v6031_v16  ;;  %v3165_v16 = vadd.f32 %v3142_v23, %v3087_v27  ;;  %17 = vst [vmem:[#allocation4] sm:$0x1] %v16_v38 }
 0x4e0   :  { %6058 = vmatmul.msk.f32.vlgmr.msrb.gmra.mxu2 %vm1720_vm3, %v2544_v2  ;;  %v6107_v2 = vld [vmem:[%s10512_s7 + $0x1740] sm:$0xff]  ;;  %v4258_v52 = vadd.f32 %v4254_v44, %v4180_v34  ;;  %v3298_v51 = vpop.f32.mrf.mxu1 }
 0x4e1   :  { %6117 = vmatpush.msk.msra.mxu2 %vm171_vm0, %v6115_v19  ;;  %v3220_v6 = vpop.f32.mrf.mxu2 }
 0x4e2   :  { %v4336_v33 = vadd.f32 %v4332_v61, %v4258_v52  ;;  %v3243_v56 = vadd.f32 %v3220_v6, %v3165_v16  ;;  %v6163_v61 = vmov 0  }
 0x4e3   :  { %4767 = vmatpush.msra.mxu2 %v6113_v41  ;;  %6155 = vset.pattern.permute.xlu0 %v6163_v61 }
 0x4e4   :  { %v4414_v62 = vadd.f32 %v4410_v5, %v4336_v33  ;;  %v3321_v19 = vadd.f32 %v3298_v51, %v3243_v56 }
 0x4e5   :  { %4768 = vmatpush.msra.mxu2 %v6111_v18 }
 0x4e6   :  { %v4492_v3 = vadd.f32 %v4488_v45, %v4414_v62  ;;  %v4894_v33 = vld [vmem:[#allocation4] sm:$0x1] }
 0x4e7   :  { %4769 = vmatpush.msra.mxu2 %v6109_v8  ;;  %4897 = vperm.xlu0 %6155, %v4894_v33  }
 0x4e8   :  { %v4570_v22 = vadd.f32 %v4566_v60, %v4492_v3  ;;  %v3454_v59 = vpop.f32.mrf.mxu1 }
 0x4e9   :  { %4770 = vmatpush.msra.mxu2 %v6107_v2  ;;  %v3376_v30 = vpop.f32.mrf.mxu2 }
 0x4ea   :  { %v4648_v47 = vadd.f32 %v4644_v48, %v4570_v22  ;;  %v3399_v41 = vadd.f32 %v3376_v30, %v3321_v19 }
 0x4eb   :  { %4771 = vmatpush.msra.mxu2 %v6105_v7 }
 0x4ec   :  { %v3477_v24 = vadd.f32 %v3454_v59, %v3399_v41 }
 0x4ed   :  { %4772 = vmatpush.msra.mxu2 %v6103_v37 }
 0x4ef   :  { %4773 = vmatpush.msra.mxu2 %v6101_v43 }
 0x4f0   :  { %v3610_v54 = vpop.f32.mrf.mxu1 }
 0x4f1   :  { %4774 = vmatpush.msra.mxu2 %v6099_v25  ;;  %v3532_v4 = vpop.f32.mrf.mxu2 }
 0x4f2   :  { %v3555_v8 = vadd.f32 %v3532_v4, %v3477_v24 }
 0x4f3   :  { %4775 = vmatpush.msra.mxu2 %v6097_v12  ;;  %v4893_v12 = vld [vmem:[%s10514_s9] sm:$0x3] }
 0x4f4   :  { %v4722_v55 = vpop.f32.mrf.mxu3  ;;  %v3633_v50 = vadd.f32 %v3610_v54, %v3555_v8 }
 0x4f5   :  { %4776 = vmatpush.msra.mxu2 %v6095_v13  ;;  %v4726_v63 = vadd.f32 %v4722_v55, %v4648_v47  ;;  %v4903_v13 = vperm.slane %v4893_v12, 1 }
 0x4f7   :  { %4777 = vmatpush.msra.mxu2 %v6093_v57  ;;  %v4804_v10 = vadd.f32 %v4800_v53, %v4726_v63  ;;  %v4885_v63 = vperm.slane %v10489_v31, 0 }
 0x4f8   :  { %v3766_v40 = vpop.f32.mrf.mxu1 }
 0x4f9   :  { %4778 = vmatpush.msra.mxu2 %v6091_v20  ;;  %v3688_v0 = vpop.f32.mrf.mxu2 }
 0x4fa   :  { %6118 = vmatmul.msk.f32.vlgmr.msra.gmra.mxu2 %vm1720_vm3, %v2546_v39  ;;  %v3711_v2 = vadd.f32 %v3688_v0, %v3633_v50 }
 0x4fc   :  { %v3789_v9 = vadd.f32 %v3766_v40, %v3711_v2 }
 0x500   :  { %v3922_v49 = vpop.f32.mrf.mxu1 }
 0x501   :  { %v3844_v18 = vpop.f32.mrf.mxu2 }
 0x502   :  { %v3867_v7 = vadd.f32 %v3844_v18, %v3789_v9 }
 0x504   :  { %v3945_v58 = vadd.f32 %v3922_v49, %v3867_v7 }
 0x508   :  { %v4078_v35 = vpop.f32.mrf.mxu1 }
 0x509   :  { %v4000_v21 = vpop.f32.mrf.mxu2 }
 0x50a   :  { %v4023_v32 = vadd.f32 %v4000_v21, %v3945_v58 }
 0x50c   :  { %v4101_v36 = vadd.f32 %v4078_v35, %v4023_v32 }
 0x50e   :  { %v4878_v39 = vpop.f32.mrf.mxu3 }
 0x50f   :  { %v4882_v26 = vadd.f32 %v4878_v39, %v4804_v10 }
 0x510   :  { %v4234_v43 = vpop.f32.mrf.mxu1 }
 0x511   :  { %v4890_v15 = vadd.f32 %v4886_v28, %v4882_v26  ;;  %v4902_v26 = vperm.slane %v4893_v12, 0 }
 0x513   :  { %v4892_v46 = vmax.f32 %v4890_v15, 0.0 }
 0x515   :  { %6151 = vmatpush.xpose.msk.msra.mxu0 %vm453_vm2, %v4892_v46  ;;  %v4156_v37 = vpop.f32.mrf.mxu2 }
 0x516   :  { %v4179_v44 = vadd.f32 %v4156_v37, %v4101_v36 }
 0x518   :  { %v4390_v1 = vpop.f32.mrf.mxu1  ;;  %6152 = vmatmul.msk.f32.vlgmr.msra.gmra.mxu0 %vm453_vm2, %v4903_v13  ;;  %v4257_v57 = vadd.f32 %v4234_v43, %v4179_v44 }
 0x520   :  { %v4546_v5 = vpop.f32.mrf.mxu1 }
 0x528   :  { %v4702_v3 = vpop.f32.mrf.mxu1 }
 0x52f   :  { %v4312_v25 = vpop.f32.mrf.mxu2 }
 0x530   :  { %v4335_v20 = vadd.f32 %v4312_v25, %v4257_v57  ;;  %v4858_v53 = vpop.f32.mrf.mxu1 }
 0x532   :  { %v4413_v52 = vadd.f32 %v4390_v1, %v4335_v20 }
 0x549   :  { %v4468_v34 = vpop.f32.mrf.mxu2 }
 0x54a   :  { %v4491_v45 = vadd.f32 %v4468_v34, %v4413_v52 }
 0x54c   :  { %v4569_v60 = vadd.f32 %v4546_v5, %v4491_v45 }
 0x559   :  { %v4898_v15 = vpop.permute.xlu0 %4897 }
 0x55a   :  { %v4900_v46 = vperm.slane %v4898_v15, 0 }
 0x563   :  { %v4624_v62 = vpop.f32.mrf.mxu2 }
 0x564   :  { %v4647_v22 = vadd.f32 %v4624_v62, %v4569_v60 }
 0x566   :  { %v4725_v48 = vadd.f32 %v4702_v3, %v4647_v22 }
 0x57d   :  { %v4780_v55 = vpop.f32.mrf.mxu2 }
 0x57e   :  { %v4803_v47 = vadd.f32 %v4780_v55, %v4725_v48 }
 0x580   :  { %v4881_v10 = vadd.f32 %v4858_v53, %v4803_v47 }
 0x582   :  { %v4889_v28 = vadd.f32 %v4885_v63, %v4881_v10 }
 0x584   :  { %v4891_v39 = vmax.f32 %v4889_v28, 0.0 }
 0x586   :  { %4925 = vmatpush.xpose.msrb.mxu2 %v4891_v39 }
 0x589   :  { %4926 = vmatmul.f32.vlgmr.msrb.gmra.mxu2 %v4902_v26 }
 0x595   :  { %v4947_v14 = vpop.f32.mrf.mxu0 }
 0x60c   :  { %v4927_v11 = vpop.f32.mrf.mxu2 }
 0x60d   :  { %v4928_v17 = vadd.f32 %v4927_v11, %v4900_v46 }
 0x60f   :  { %v4948_v23 = vadd.f32 %v4947_v14, %v4928_v17 }
 0x611   :  { %4951 = vst.msk [vmem:[%s10516_s11] sm:$0x1] %vm4950_vm4, %v4948_v23 }

</bundles_post_ra>
